<compile_context>
chip_gen: v5e
topology: v5e:2x2
jax: 0.10.0
libtpu: 0.0.40
codegen_flags: <defaults>
</compile_context>

<pallas_src>
import math

import numpy as np

import jax
import jax.numpy as jnp
from jax.experimental import pallas as pl
from jax.experimental.pallas import tpu as pltpu

# MeanShift constants (rgb_range=1, rgb_std=(1,1,1)): sub_mean = x - mean,
# add_mean = x + mean.
RGB_MEAN = (0.4488, 0.4371, 0.4040)


# ----------------------------------------------------------------------------
# Host-side (numpy) preparation — run ONCE, outside jit.
# ----------------------------------------------------------------------------
def _banded_taps(w, W):
    """3x3 conv weight (3,3,Cin,Cout) -> per-dy band matrices (3, W*Cin, W*Cout).

    (row_{h+dy} @ band[dy+1])[w_out*Cout + c_out]
        = sum_{dx,cin} x[h+dy, w_out+dx, cin] * w[dy+1, dx+1, cin, c_out]
    Taps with w_out+dx outside [0, W) are absent == zero padding along width.
    """
    w = np.asarray(w, np.float32)
    cin, cout = w.shape[2], w.shape[3]
    bands = []
    for dy in (-1, 0, 1):
        B = np.zeros((W * cin, W * cout), np.float32)
        for dx in (-1, 0, 1):
            B += np.kron(np.eye(W, k=-dx, dtype=np.float32), w[dy + 1, dx + 1])
        bands.append(B)
    return np.stack(bands)


def _interleave_perm(Nb, H):
    """(2*Nb*H, 2*Nb*H) PixelShuffle row-interleave permutation.

    Input rows are the concat [e0; e1] of the even/odd row planes of Nb
    stacked images of height H; output row n*2H + 2h+ry <- plane ry, row
    n*H + h.
    """
    M = Nb * H
    P = np.zeros((2 * M, 2 * M), np.float32)
    for n in range(Nb):
        for r in range(2 * H):
            P[n * 2 * H + r, (r % 2) * M + n * H + r // 2] = 1.0
    return P


def build_edsr_program(params, H0, W0, block_n, compute_dtype=jnp.bfloat16):
    """Builds the flat list of constant kernel operands + an index 'program'."""
    consts = []

    def add(a, dtype):
        consts.append(jnp.asarray(np.asarray(a), dtype=dtype))
        return len(consts) - 1

    def conv_entry(w, b, W, extra_bias=None):
        cin = np.asarray(w).shape[2]
        bands = _banded_taps(w, W)                     # (3, W*Cin, W*Cout)
        if (W * cin) % 128 == 0:
            # Lane-aligned input width: stack the 3 bands along K so the conv
            # becomes a single fused dot (lane-concat of the shifted rows is
            # then a free, aligned layout op).
            bands = bands.reshape(-1, bands.shape[-1])
        beff = np.asarray(b, np.float32)
        if extra_bias is not None:
            beff = beff + np.asarray(extra_bias, np.float32)
        return (add(bands, compute_dtype),
                add(np.tile(beff, W)[None, :], jnp.float32))

    n_up = len(params["ups"])
    F = params["fea"][0].shape[-1]
    Hs = [H0 * (1 << l) for l in range(n_up + 1)]
    Ws = [W0 * (1 << l) for l in range(n_up + 1)]

    prog = {}
    prog["mean_row"] = add(
        np.tile(np.array(RGB_MEAN, np.float32), W0)[None, :], jnp.float32)

    prog["fea_w"], prog["fea_b"] = conv_entry(*params["fea"], Ws[0])

    # ResBlock constants, stacked along a leading axis (fori_loop-indexed).
    L0 = Ws[0] * F

    def stack_body(which):
        ws = np.stack([_banded_taps(blk[which][0], Ws[0])
                       for blk in params["body"]])
        if L0 % 128 == 0:
            ws = ws.reshape(ws.shape[0], 3 * L0, -1)
        bs = np.stack([np.tile(np.asarray(blk[which][1], np.float32),
                               Ws[0])[None, :] for blk in params["body"]])
        return add(ws, compute_dtype), add(bs, jnp.float32)

    prog["body_w1"], prog["body_b1"] = stack_body("conv1")
    prog["body_w2"], prog["body_b2"] = stack_body("conv2")

    prog["bt_w"], prog["bt_b"] = conv_entry(*params["body_tail"], Ws[0])

    prog["ups"] = []
    for lvl, (wu, bu) in enumerate(params["ups"]):
        wu, bu = np.asarray(wu, np.float32), np.asarray(bu, np.float32)
        # PyTorch PixelShuffle reads conv channel o = c*4 + ry*2 + rx; reorder
        # output channels to (ry, rx, c) so each ry-half already has the
        # (w_next, c) lane layout of the next (row-flattened) resolution.
        perm = np.array([(j % F) * 4 + (j // F) for j in range(4 * F)])
        wp, bp = wu[..., perm], bu[perm]
        w0_id, b0_id = conv_entry(wp[..., :2 * F], bp[:2 * F], Ws[lvl])
        w1_id, b1_id = conv_entry(wp[..., 2 * F:], bp[2 * F:], Ws[lvl])
        prog["ups"].append(dict(
            w0=w0_id, b0=b0_id, w1=w1_id, b1=b1_id,
            P=add(_interleave_perm(block_n, Hs[lvl]), jnp.float32)))

    # add_mean folded into the tail conv bias (exact: applied post-conv).
    prog["tail_w"], prog["tail_b"] = conv_entry(
        params["tail"][0], params["tail"][1], Ws[n_up],
        extra_bias=np.array(RGB_MEAN, np.float32))
    return consts, prog


# ----------------------------------------------------------------------------
# The fused kernel: one grid step == full EDSR forward for block_n images.
# ----------------------------------------------------------------------------
def _make_kernel(prog, n_consts, n_resblocks, H0):
    def kernel(*refs):
        x_ref = refs[0]
        cref = refs[1:1 + n_consts]
        o_ref = refs[1 + n_consts]

        def cval(i):
            return cref[i][...]

        def shifted(a, H):
            # Rows h-1 / h+1 of every image (block_n images of height H are
            # stacked on the sublane axis); zeroed at each image's vertical
            # border == PyTorch zero padding.  Rolls run on the XLU, the mask
            # on the VPU — no MXU work.
            M = a.shape[0]
            r = jax.lax.broadcasted_iota(jnp.int32, (M, 1), 0) % H
            up = jnp.where(r == 0, 0.0, pltpu.roll(a, 1, 0))
            dn = jnp.where(r == H - 1, 0.0, pltpu.roll(a, M - 1, 0))
            return up, dn

        def conv(a, H, w, b, relu=False):
            up, dn = shifted(a, H)
            if w.ndim == 2:
                # Lane-aligned width: single fused dot with K = 3*W*Cin.
                a3 = jnp.concatenate([up, a, dn], axis=1).astype(w.dtype)
                out = jnp.dot(a3, w, preferred_element_type=jnp.float32)
            else:
                # Narrow / unaligned width: one dot per vertical tap.
                out = (jnp.dot(up.astype(w.dtype), w[0],
                               preferred_element_type=jnp.float32)
                       + jnp.dot(a.astype(w.dtype), w[1],
                                 preferred_element_type=jnp.float32)
                       + jnp.dot(dn.astype(w.dtype), w[2],
                                 preferred_element_type=jnp.float32))
            out = out + b
            return jnp.maximum(out, 0.0) if relu else out

        nb = x_ref.shape[0]
        # (Nb, H0, W0*Cin) -> (Nb*H0, W0*Cin): rows of Nb images stacked.
        a = x_ref[...].reshape(nb * H0, x_ref.shape[2]).astype(jnp.float32)
        a = a - cval(prog["mean_row"])                       # sub_mean

        # fea_conv
        fea = conv(a, H0, cval(prog["fea_w"]), cval(prog["fea_b"]))

        # body: ResBlocks via fori_loop over the stacked weight refs.
        w1_ref, b1_ref = cref[prog["body_w1"]], cref[prog["body_b1"]]
        w2_ref, b2_ref = cref[prog["body_w2"]], cref[prog["body_b2"]]

        def resblock(i, res):
            t = conv(res, H0, w1_ref[i], b1_ref[i], relu=True)
            return res + conv(t, H0, w2_ref[i], b2_ref[i])

        res = jax.lax.fori_loop(0, n_resblocks, resblock, fea)
        res = fea + conv(res, H0, cval(prog["bt_w"]), cval(prog["bt_b"]))

        # Upsampler: per stage, two half-convs (even / odd output rows of the
        # 2x image) + one permutation matmul interleaving the row planes.
        u, H = res, H0
        for st in prog["ups"]:
            e0 = conv(u, H, cval(st["w0"]), cval(st["b0"]))   # rows 2h
            e1 = conv(u, H, cval(st["w1"]), cval(st["b1"]))   # rows 2h+1
            u = jnp.dot(cval(st["P"]),
                        jnp.concatenate([e0, e1], axis=0),
                        preferred_element_type=jnp.float32)
            H = 2 * H

        # Final conv (add_mean already folded into its bias); single store.
        out = conv(u, H, cval(prog["tail_w"]), cval(prog["tail_b"]))
        o_ref[...] = out.reshape(nb, H, out.shape[-1]).astype(o_ref.dtype)

    return kernel


def _pick_block_n(N, H0, target_rows=64):
    """Largest divisor of N giving ~target_rows input rows per grid step,
    while keeping >= 2 grid steps when possible (v7x megacore)."""
    target = max(1, target_rows // H0)
    best = 1
    for d in range(1, N + 1):
        if N % d == 0 and d <= target:
            best = d
    if N // best == 1 and best > 1:
        for d in range(best - 1, 0, -1):
            if N % d == 0 and N // d >= 2:
                best = d
                break
    return best


def make_edsr_forward(params, x_shape, block_n=None,
                      compute_dtype=jnp.bfloat16):
    """Returns a jitted forward: (N, 3, H, W) -> (N, 3, H*scale, W*scale).

    All constant-operand construction happens here, once, on the host.
    """
    N, Cin, H0, W0 = x_shape
    n_up = len(params["ups"])
    scale = 1 << n_up
    H2, W2 = H0 * scale, W0 * scale
    Cout = params["tail"][0].shape[-1]
    n_resblocks = len(params["body"])

    if block_n is None:
        block_n = _pick_block_n(N, H0)
    assert N % block_n == 0, (N, block_n)

    consts, prog = build_edsr_program(params, H0, W0, block_n, compute_dtype)
    kernel = _make_kernel(prog, len(consts), n_resblocks, H0)

    in_specs = [pl.BlockSpec((block_n, H0, W0 * Cin), lambda n: (n, 0, 0))]
    for c in consts:
        in_specs.append(
            pl.BlockSpec(c.shape, lambda n, _nd=c.ndim: (0,) * _nd))

    fused = pl.pallas_call(
        kernel,
        out_shape=jax.ShapeDtypeStruct((N, H2, W2 * Cout), jnp.float32),
        grid=(N // block_n,),
        in_specs=in_specs,
        out_specs=pl.BlockSpec((block_n, H2, W2 * Cout), lambda n: (n, 0, 0)),
        compiler_params=pltpu.CompilerParams(
            dimension_semantics=("parallel",),
            # Explicit scoped-VMEM budget (v5e's default is only 16 MiB).
            vmem_limit_bytes=32 * 1024 * 1024),
    )

    @jax.jit
    def forward(x_nchw):
        # NCHW -> row-flattened (N, H, W*C): lanes hold (w, c).
        x_rows = jnp.transpose(x_nchw, (0, 2, 3, 1)).reshape(N, H0, W0 * Cin)
        y = fused(x_rows.astype(jnp.float32), *consts)
        return y.reshape(N, H2, W2, Cout).transpose(0, 3, 1, 2)

    return forward


# ----------------------------------------------------------------------------
# Parameter init (module-equivalent shapes) and a pure-JAX reference.
# ----------------------------------------------------------------------------
def _init_conv(key, cin, cout):
    kw, kb = jax.random.split(key)
    w = jax.random.normal(kw, (3, 3, cin, cout), jnp.float32) * 0.05
    b = jax.random.normal(kb, (cout,), jnp.float32) * 0.01
    return w, b


def init_edsr_params(key, in_channels=3, num_fea=8, out_channels=3,
                     n_resblocks=2, upscale_factor=4):
    n_up = int(math.log2(upscale_factor))
    keys = jax.random.split(key, 2 + 2 * n_resblocks + n_up + 1)
    ki = iter(keys)
    params = {
        "fea": _init_conv(next(ki), in_channels, num_fea),
        "body": [{"conv1": _init_conv(next(ki), num_fea, num_fea),
                  "conv2": _init_conv(next(ki), num_fea, num_fea)}
                 for _ in range(n_resblocks)],
        "body_tail": _init_conv(next(ki), num_fea, num_fea),
        "ups": [_init_conv(next(ki), num_fea, 4 * num_fea) for _ in range(n_up)],
        "tail": _init_conv(next(ki), num_fea, out_channels),
    }
    return params


def _conv3x3_ref(x, w, b):
    y = jax.lax.conv_general_dilated(
        x, w, window_strides=(1, 1), padding=((1, 1), (1, 1)),
        dimension_numbers=("NHWC", "HWIO", "NHWC"),
        precision=jax.lax.Precision.HIGHEST)
    return y + b


def _pixel_shuffle_ref(x, r):
    N, H, W, Crr = x.shape
    C = Crr // (r * r)
    x = x.reshape(N, H, W, C, r, r)
    x = x.transpose(0, 1, 4, 2, 5, 3)
    return x.reshape(N, H * r, W * r, C)


def edsr_reference(params, x_nchw):
    mean = jnp.array(RGB_MEAN, jnp.float32)
    x = jnp.transpose(x_nchw, (0, 2, 3, 1)).astype(jnp.float32) - mean
    fea = _conv3x3_ref(x, *params["fea"])
    res = fea
    for blk in params["body"]:
        t = jax.nn.relu(_conv3x3_ref(res, *blk["conv1"]))
        res = res + _conv3x3_ref(t, *blk["conv2"])
    res = fea + _conv3x3_ref(res, *params["body_tail"])
    u = res
    for (wu, bu) in params["ups"]:
        u = _pixel_shuffle_ref(_conv3x3_ref(u, wu, bu), 2)
    out = _conv3x3_ref(u, *params["tail"]) + mean
    return jnp.transpose(out, (0, 3, 1, 2))


if __name__ == "__main__":
    key = jax.random.PRNGKey(0)
    kp, kx = jax.random.split(key)

    upscale_factor = 4
    params = init_edsr_params(
        kp, in_channels=3, num_fea=8, out_channels=3,
        n_resblocks=2, upscale_factor=upscale_factor,
    )

    # Small NCHW input; batch of 8 so several images stack into each grid
    # step's M dimension (block_n=4 -> grid of 2 "parallel" steps).
    x = jax.random.uniform(kx, (8, 3, 8, 8), dtype=jnp.float32)

    forward = make_edsr_forward(params, x.shape)      # consts built once, host-side
    y = forward(x)
    jax.block_until_ready(y)

    assert y.shape == (8, 3, 8 * upscale_factor, 8 * upscale_factor), y.shape
    assert y.dtype == jnp.float32

    # Cross-check against a plain XLA reference of the module.  bf16 weights
    # with f32 accumulation => ~1e-3 level error expected at these magnitudes.
    y_ref = edsr_reference(params, x)
    err = float(jnp.max(jnp.abs(y - y_ref)))
    assert err < 2e-2, f"max abs error vs reference: {err}"

    print("KERNEL_OK")
</pallas_src>

<mosaic_0001>
module attributes {stable_mosaic.version = 11 : i64} {
  func.func @kernel(%arg0: i32, %arg1: memref<4x8x24xf32, #tpu.memory_space<vmem>>, %arg2: memref<1x24xf32, #tpu.memory_space<vmem>>, %arg3: memref<3x24x64xbf16, #tpu.memory_space<vmem>>, %arg4: memref<1x64xf32, #tpu.memory_space<vmem>>, %arg5: memref<2x3x64x64xbf16, #tpu.memory_space<vmem>>, %arg6: memref<2x1x64xf32, #tpu.memory_space<vmem>>, %arg7: memref<2x3x64x64xbf16, #tpu.memory_space<vmem>>, %arg8: memref<2x1x64xf32, #tpu.memory_space<vmem>>, %arg9: memref<3x64x64xbf16, #tpu.memory_space<vmem>>, %arg10: memref<1x64xf32, #tpu.memory_space<vmem>>, %arg11: memref<3x64x128xbf16, #tpu.memory_space<vmem>>, %arg12: memref<1x128xf32, #tpu.memory_space<vmem>>, %arg13: memref<3x64x128xbf16, #tpu.memory_space<vmem>>, %arg14: memref<1x128xf32, #tpu.memory_space<vmem>>, %arg15: memref<64x64xf32, #tpu.memory_space<vmem>>, %arg16: memref<384x256xbf16, #tpu.memory_space<vmem>>, %arg17: memref<1x256xf32, #tpu.memory_space<vmem>>, %arg18: memref<384x256xbf16, #tpu.memory_space<vmem>>, %arg19: memref<1x256xf32, #tpu.memory_space<vmem>>, %arg20: memref<128x128xf32, #tpu.memory_space<vmem>>, %arg21: memref<768x96xbf16, #tpu.memory_space<vmem>>, %arg22: memref<1x96xf32, #tpu.memory_space<vmem>>, %arg23: memref<4x32x96xf32, #tpu.memory_space<vmem>>) attributes {dimension_semantics = [#tpu.dimension_semantics<parallel>], iteration_bounds = array<i64: 2>, scalar_prefetch = 0 : i64, scratch_operands = 0 : i64, tpu.core_type = #tpu.core_type<tc>, window_params = [{transform_indices = @transform_0, window_bounds = array<i64: 4, 8, 24>}, {pipeline_mode = #tpu.pipeline_mode<synchronous>, transform_indices = @transform_1, window_bounds = array<i64: 1, 24>}, {pipeline_mode = #tpu.pipeline_mode<synchronous>, transform_indices = @transform_2, window_bounds = array<i64: 3, 24, 64>}, {pipeline_mode = #tpu.pipeline_mode<synchronous>, transform_indices = @transform_3, window_bounds = array<i64: 1, 64>}, {pipeline_mode = #tpu.pipeline_mode<synchronous>, transform_indices = @transform_4, window_bounds = array<i64: 2, 3, 64, 64>}, {pipeline_mode = #tpu.pipeline_mode<synchronous>, transform_indices = @transform_5, window_bounds = array<i64: 2, 1, 64>}, {pipeline_mode = #tpu.pipeline_mode<synchronous>, transform_indices = @transform_6, window_bounds = array<i64: 2, 3, 64, 64>}, {pipeline_mode = #tpu.pipeline_mode<synchronous>, transform_indices = @transform_7, window_bounds = array<i64: 2, 1, 64>}, {pipeline_mode = #tpu.pipeline_mode<synchronous>, transform_indices = @transform_8, window_bounds = array<i64: 3, 64, 64>}, {pipeline_mode = #tpu.pipeline_mode<synchronous>, transform_indices = @transform_9, window_bounds = array<i64: 1, 64>}, {pipeline_mode = #tpu.pipeline_mode<synchronous>, transform_indices = @transform_10, window_bounds = array<i64: 3, 64, 128>}, {pipeline_mode = #tpu.pipeline_mode<synchronous>, transform_indices = @transform_11, window_bounds = array<i64: 1, 128>}, {pipeline_mode = #tpu.pipeline_mode<synchronous>, transform_indices = @transform_12, window_bounds = array<i64: 3, 64, 128>}, {pipeline_mode = #tpu.pipeline_mode<synchronous>, transform_indices = @transform_13, window_bounds = array<i64: 1, 128>}, {pipeline_mode = #tpu.pipeline_mode<synchronous>, transform_indices = @transform_14, window_bounds = array<i64: 64, 64>}, {pipeline_mode = #tpu.pipeline_mode<synchronous>, transform_indices = @transform_15, window_bounds = array<i64: 384, 256>}, {pipeline_mode = #tpu.pipeline_mode<synchronous>, transform_indices = @transform_16, window_bounds = array<i64: 1, 256>}, {pipeline_mode = #tpu.pipeline_mode<synchronous>, transform_indices = @transform_17, window_bounds = array<i64: 384, 256>}, {pipeline_mode = #tpu.pipeline_mode<synchronous>, transform_indices = @transform_18, window_bounds = array<i64: 1, 256>}, {pipeline_mode = #tpu.pipeline_mode<synchronous>, transform_indices = @transform_19, window_bounds = array<i64: 128, 128>}, {pipeline_mode = #tpu.pipeline_mode<synchronous>, transform_indices = @transform_20, window_bounds = array<i64: 768, 96>}, {pipeline_mode = #tpu.pipeline_mode<synchronous>, transform_indices = @transform_21, window_bounds = array<i64: 1, 96>}, {transform_indices = @transform_22, window_bounds = array<i64: 4, 32, 96>}]} {
    %c0 = arith.constant 0 : index
    %c0_0 = arith.constant 0 : index
    %c0_1 = arith.constant 0 : index
    %0 = vector.load %arg1[%c0, %c0_0, %c0_1] : memref<4x8x24xf32, #tpu.memory_space<vmem>>, vector<4x8x24xf32>
    %1 = vector.shape_cast %0 : vector<4x8x24xf32> to vector<32x24xf32>
    %c0_2 = arith.constant 0 : index
    %c0_3 = arith.constant 0 : index
    %2 = vector.load %arg2[%c0_2, %c0_3] : memref<1x24xf32, #tpu.memory_space<vmem>>, vector<1x24xf32>
    %3 = vector.broadcast %2 : vector<1x24xf32> to vector<32x24xf32>
    %4 = arith.subf %1, %3 : vector<32x24xf32>
    %c0_4 = arith.constant 0 : index
    %c0_5 = arith.constant 0 : index
    %c0_6 = arith.constant 0 : index
    %5 = vector.load %arg3[%c0_4, %c0_5, %c0_6] : memref<3x24x64xbf16, #tpu.memory_space<vmem>>, vector<3x24x64xbf16>
    %c0_7 = arith.constant 0 : index
    %c0_8 = arith.constant 0 : index
    %6 = vector.load %arg4[%c0_7, %c0_8] : memref<1x64xf32, #tpu.memory_space<vmem>>, vector<1x64xf32>
    %7 = tpu.iota {dimensions = array<i32: 0>} : vector<32x1xi32>
    %c8_i32 = arith.constant 8 : i32
    %c0_i32 = arith.constant 0 : i32
    %8 = arith.cmpi eq, %c8_i32, %c0_i32 : i32
    %c1_i32 = arith.constant 1 : i32
    %9 = arith.select %8, %c1_i32, %c8_i32 : i32
    %10 = vector.broadcast %9 : i32 to vector<32x1xi32>
    %11 = arith.remsi %7, %10 : vector<32x1xi32>
    %c0_i32_9 = arith.constant 0 : i32
    %12 = vector.broadcast %c0_i32_9 : i32 to vector<32x1xi32>
    %13 = arith.cmpi ne, %11, %12 : vector<32x1xi32>
    %c0_i32_10 = arith.constant 0 : i32
    %14 = vector.broadcast %c0_i32_10 : i32 to vector<32x1xi32>
    %15 = arith.cmpi slt, %11, %14 : vector<32x1xi32>
    %c0_i32_11 = arith.constant 0 : i32
    %16 = arith.cmpi slt, %9, %c0_i32_11 : i32
    %17 = vector.broadcast %16 : i1 to vector<32x1xi1>
    %18 = vector.broadcast %17 : vector<32x1xi1> to vector<32x1xi1>
    %19 = arith.xori %15, %18 : vector<32x1xi1>
    %20 = arith.andi %19, %13 : vector<32x1xi1>
    %21 = vector.broadcast %9 : i32 to vector<32x1xi32>
    %22 = arith.addi %11, %21 : vector<32x1xi32>
    %23 = arith.select %20, %22, %11 : vector<32x1xi1>, vector<32x1xi32>
    %c0_i32_12 = arith.constant 0 : i32
    %24 = vector.broadcast %c0_i32_12 : i32 to vector<32x1xi32>
    %25 = arith.cmpi eq, %23, %24 : vector<32x1xi32>
    %c1_i32_13 = arith.constant 1 : i32
    %26 = tpu.dynamic_rotate %4 by %c1_i32_13 dim 0 : vector<32x24xf32>, i32 -> vector<32x24xf32>
    %cst = arith.constant 0.000000e+00 : f32
    %27 = vector.shape_cast %25 : vector<32x1xi1> to vector<32x1xi1>
    %28 = vector.broadcast %27 : vector<32x1xi1> to vector<32x24xi1>
    %29 = vector.broadcast %cst : f32 to vector<32x24xf32>
    %30 = arith.select %28, %29, %26 : vector<32x24xi1>, vector<32x24xf32>
    %c7_i32 = arith.constant 7 : i32
    %31 = vector.broadcast %c7_i32 : i32 to vector<32x1xi32>
    %32 = arith.cmpi eq, %23, %31 : vector<32x1xi32>
    %c31_i32 = arith.constant 31 : i32
    %33 = tpu.dynamic_rotate %4 by %c31_i32 dim 0 : vector<32x24xf32>, i32 -> vector<32x24xf32>
    %cst_14 = arith.constant 0.000000e+00 : f32
    %34 = vector.shape_cast %32 : vector<32x1xi1> to vector<32x1xi1>
    %35 = vector.broadcast %34 : vector<32x1xi1> to vector<32x24xi1>
    %36 = vector.broadcast %cst_14 : f32 to vector<32x24xf32>
    %37 = arith.select %35, %36, %33 : vector<32x24xi1>, vector<32x24xf32>
    %38 = arith.truncf %30 : vector<32x24xf32> to vector<32x24xbf16>
    %39 = vector.extract_strided_slice %5 {offsets = [0, 0, 0], sizes = [1, 24, 64], strides = [1, 1, 1]} : vector<3x24x64xbf16> to vector<1x24x64xbf16>
    %40 = vector.shape_cast %39 : vector<1x24x64xbf16> to vector<24x64xbf16>
    %cst_15 = arith.constant dense<0.000000e+00> : vector<32x64xf32>
    %41 = tpu.matmul %38, %40, %cst_15 {dimension_numbers = #tpu.dot_dimension_numbers<[1], [0], [0], [1], [0, 0, 1, 1], [], []>} : vector<32x24xbf16>, vector<24x64xbf16>, vector<32x64xf32> -> vector<32x64xf32>
    %42 = arith.truncf %4 : vector<32x24xf32> to vector<32x24xbf16>
    %43 = vector.extract_strided_slice %5 {offsets = [1, 0, 0], sizes = [1, 24, 64], strides = [1, 1, 1]} : vector<3x24x64xbf16> to vector<1x24x64xbf16>
    %44 = vector.shape_cast %43 : vector<1x24x64xbf16> to vector<24x64xbf16>
    %cst_16 = arith.constant dense<0.000000e+00> : vector<32x64xf32>
    %45 = tpu.matmul %42, %44, %cst_16 {dimension_numbers = #tpu.dot_dimension_numbers<[1], [0], [0], [1], [0, 0, 1, 1], [], []>} : vector<32x24xbf16>, vector<24x64xbf16>, vector<32x64xf32> -> vector<32x64xf32>
    %46 = arith.addf %41, %45 : vector<32x64xf32>
    %47 = arith.truncf %37 : vector<32x24xf32> to vector<32x24xbf16>
    %48 = vector.extract_strided_slice %5 {offsets = [2, 0, 0], sizes = [1, 24, 64], strides = [1, 1, 1]} : vector<3x24x64xbf16> to vector<1x24x64xbf16>
    %49 = vector.shape_cast %48 : vector<1x24x64xbf16> to vector<24x64xbf16>
    %cst_17 = arith.constant dense<0.000000e+00> : vector<32x64xf32>
    %50 = tpu.matmul %47, %49, %cst_17 {dimension_numbers = #tpu.dot_dimension_numbers<[1], [0], [0], [1], [0, 0, 1, 1], [], []>} : vector<32x24xbf16>, vector<24x64xbf16>, vector<32x64xf32> -> vector<32x64xf32>
    %51 = arith.addf %46, %50 : vector<32x64xf32>
    %52 = vector.broadcast %6 : vector<1x64xf32> to vector<32x64xf32>
    %53 = arith.addf %51, %52 : vector<32x64xf32>
    %c0_i32_18 = arith.constant 0 : i32
    %c2_i32 = arith.constant 2 : i32
    %54 = arith.addi %c0_i32_18, %c2_i32 : i32
    %c1_i32_19 = arith.constant 1 : i32
    %55 = scf.for %arg24 = %c0_i32_18 to %54 step %c1_i32_19 iter_args(%arg25 = %53) -> (vector<32x64xf32>)  : i32 {
      %326 = arith.index_cast %arg24 : i32 to index
      %c0_136 = arith.constant 0 : index
      %c0_137 = arith.constant 0 : index
      %c0_138 = arith.constant 0 : index
      %327 = vector.load %arg5[%326, %c0_136, %c0_137, %c0_138] : memref<2x3x64x64xbf16, #tpu.memory_space<vmem>>, vector<1x3x64x64xbf16>
      %328 = vector.shape_cast %327 : vector<1x3x64x64xbf16> to vector<3x64x64xbf16>
      %329 = arith.index_cast %arg24 : i32 to index
      %c0_139 = arith.constant 0 : index
      %c0_140 = arith.constant 0 : index
      %330 = vector.load %arg6[%329, %c0_139, %c0_140] : memref<2x1x64xf32, #tpu.memory_space<vmem>>, vector<1x1x64xf32>
      %331 = vector.shape_cast %330 : vector<1x1x64xf32> to vector<1x64xf32>
      %332 = tpu.iota {dimensions = array<i32: 0>} : vector<32x1xi32>
      %c8_i32_141 = arith.constant 8 : i32
      %c0_i32_142 = arith.constant 0 : i32
      %333 = arith.cmpi eq, %c8_i32_141, %c0_i32_142 : i32
      %c1_i32_143 = arith.constant 1 : i32
      %334 = arith.select %333, %c1_i32_143, %c8_i32_141 : i32
      %335 = vector.broadcast %334 : i32 to vector<32x1xi32>
      %336 = arith.remsi %332, %335 : vector<32x1xi32>
      %c0_i32_144 = arith.constant 0 : i32
      %337 = vector.broadcast %c0_i32_144 : i32 to vector<32x1xi32>
      %338 = arith.cmpi ne, %336, %337 : vector<32x1xi32>
      %c0_i32_145 = arith.constant 0 : i32
      %339 = vector.broadcast %c0_i32_145 : i32 to vector<32x1xi32>
      %340 = arith.cmpi slt, %336, %339 : vector<32x1xi32>
      %c0_i32_146 = arith.constant 0 : i32
      %341 = arith.cmpi slt, %334, %c0_i32_146 : i32
      %342 = vector.broadcast %341 : i1 to vector<32x1xi1>
      %343 = vector.broadcast %342 : vector<32x1xi1> to vector<32x1xi1>
      %344 = arith.xori %340, %343 : vector<32x1xi1>
      %345 = arith.andi %344, %338 : vector<32x1xi1>
      %346 = vector.broadcast %334 : i32 to vector<32x1xi32>
      %347 = arith.addi %336, %346 : vector<32x1xi32>
      %348 = arith.select %345, %347, %336 : vector<32x1xi1>, vector<32x1xi32>
      %c0_i32_147 = arith.constant 0 : i32
      %349 = vector.broadcast %c0_i32_147 : i32 to vector<32x1xi32>
      %350 = arith.cmpi eq, %348, %349 : vector<32x1xi32>
      %c1_i32_148 = arith.constant 1 : i32
      %351 = tpu.dynamic_rotate %arg25 by %c1_i32_148 dim 0 : vector<32x64xf32>, i32 -> vector<32x64xf32>
      %cst_149 = arith.constant 0.000000e+00 : f32
      %352 = vector.shape_cast %350 : vector<32x1xi1> to vector<32x1xi1>
      %353 = vector.broadcast %352 : vector<32x1xi1> to vector<32x64xi1>
      %354 = vector.broadcast %cst_149 : f32 to vector<32x64xf32>
      %355 = arith.select %353, %354, %351 : vector<32x64xi1>, vector<32x64xf32>
      %c7_i32_150 = arith.constant 7 : i32
      %356 = vector.broadcast %c7_i32_150 : i32 to vector<32x1xi32>
      %357 = arith.cmpi eq, %348, %356 : vector<32x1xi32>
      %c31_i32_151 = arith.constant 31 : i32
      %358 = tpu.dynamic_rotate %arg25 by %c31_i32_151 dim 0 : vector<32x64xf32>, i32 -> vector<32x64xf32>
      %cst_152 = arith.constant 0.000000e+00 : f32
      %359 = vector.shape_cast %357 : vector<32x1xi1> to vector<32x1xi1>
      %360 = vector.broadcast %359 : vector<32x1xi1> to vector<32x64xi1>
      %361 = vector.broadcast %cst_152 : f32 to vector<32x64xf32>
      %362 = arith.select %360, %361, %358 : vector<32x64xi1>, vector<32x64xf32>
      %363 = arith.truncf %355 : vector<32x64xf32> to vector<32x64xbf16>
      %364 = vector.extract_strided_slice %328 {offsets = [0, 0, 0], sizes = [1, 64, 64], strides = [1, 1, 1]} : vector<3x64x64xbf16> to vector<1x64x64xbf16>
      %365 = vector.shape_cast %364 : vector<1x64x64xbf16> to vector<64x64xbf16>
      %cst_153 = arith.constant dense<0.000000e+00> : vector<32x64xf32>
      %366 = tpu.matmul %363, %365, %cst_153 {dimension_numbers = #tpu.dot_dimension_numbers<[1], [0], [0], [1], [0, 0, 1, 1], [], []>} : vector<32x64xbf16>, vector<64x64xbf16>, vector<32x64xf32> -> vector<32x64xf32>
      %367 = arith.truncf %arg25 : vector<32x64xf32> to vector<32x64xbf16>
      %368 = vector.extract_strided_slice %328 {offsets = [1, 0, 0], sizes = [1, 64, 64], strides = [1, 1, 1]} : vector<3x64x64xbf16> to vector<1x64x64xbf16>
      %369 = vector.shape_cast %368 : vector<1x64x64xbf16> to vector<64x64xbf16>
      %cst_154 = arith.constant dense<0.000000e+00> : vector<32x64xf32>
      %370 = tpu.matmul %367, %369, %cst_154 {dimension_numbers = #tpu.dot_dimension_numbers<[1], [0], [0], [1], [0, 0, 1, 1], [], []>} : vector<32x64xbf16>, vector<64x64xbf16>, vector<32x64xf32> -> vector<32x64xf32>
      %371 = arith.addf %366, %370 : vector<32x64xf32>
      %372 = arith.truncf %362 : vector<32x64xf32> to vector<32x64xbf16>
      %373 = vector.extract_strided_slice %328 {offsets = [2, 0, 0], sizes = [1, 64, 64], strides = [1, 1, 1]} : vector<3x64x64xbf16> to vector<1x64x64xbf16>
      %374 = vector.shape_cast %373 : vector<1x64x64xbf16> to vector<64x64xbf16>
      %cst_155 = arith.constant dense<0.000000e+00> : vector<32x64xf32>
      %375 = tpu.matmul %372, %374, %cst_155 {dimension_numbers = #tpu.dot_dimension_numbers<[1], [0], [0], [1], [0, 0, 1, 1], [], []>} : vector<32x64xbf16>, vector<64x64xbf16>, vector<32x64xf32> -> vector<32x64xf32>
      %376 = arith.addf %371, %375 : vector<32x64xf32>
      %377 = vector.broadcast %331 : vector<1x64xf32> to vector<32x64xf32>
      %378 = arith.addf %376, %377 : vector<32x64xf32>
      %cst_156 = arith.constant 0.000000e+00 : f32
      %379 = vector.broadcast %cst_156 : f32 to vector<32x64xf32>
      %380 = arith.maximumf %378, %379 : vector<32x64xf32>
      %381 = arith.index_cast %arg24 : i32 to index
      %c0_157 = arith.constant 0 : index
      %c0_158 = arith.constant 0 : index
      %c0_159 = arith.constant 0 : index
      %382 = vector.load %arg7[%381, %c0_157, %c0_158, %c0_159] : memref<2x3x64x64xbf16, #tpu.memory_space<vmem>>, vector<1x3x64x64xbf16>
      %383 = vector.shape_cast %382 : vector<1x3x64x64xbf16> to vector<3x64x64xbf16>
      %384 = arith.index_cast %arg24 : i32 to index
      %c0_160 = arith.constant 0 : index
      %c0_161 = arith.constant 0 : index
      %385 = vector.load %arg8[%384, %c0_160, %c0_161] : memref<2x1x64xf32, #tpu.memory_space<vmem>>, vector<1x1x64xf32>
      %386 = vector.shape_cast %385 : vector<1x1x64xf32> to vector<1x64xf32>
      %387 = tpu.iota {dimensions = array<i32: 0>} : vector<32x1xi32>
      %c8_i32_162 = arith.constant 8 : i32
      %c0_i32_163 = arith.constant 0 : i32
      %388 = arith.cmpi eq, %c8_i32_162, %c0_i32_163 : i32
      %c1_i32_164 = arith.constant 1 : i32
      %389 = arith.select %388, %c1_i32_164, %c8_i32_162 : i32
      %390 = vector.broadcast %389 : i32 to vector<32x1xi32>
      %391 = arith.remsi %387, %390 : vector<32x1xi32>
      %c0_i32_165 = arith.constant 0 : i32
      %392 = vector.broadcast %c0_i32_165 : i32 to vector<32x1xi32>
      %393 = arith.cmpi ne, %391, %392 : vector<32x1xi32>
      %c0_i32_166 = arith.constant 0 : i32
      %394 = vector.broadcast %c0_i32_166 : i32 to vector<32x1xi32>
      %395 = arith.cmpi slt, %391, %394 : vector<32x1xi32>
      %c0_i32_167 = arith.constant 0 : i32
      %396 = arith.cmpi slt, %389, %c0_i32_167 : i32
      %397 = vector.broadcast %396 : i1 to vector<32x1xi1>
      %398 = vector.broadcast %397 : vector<32x1xi1> to vector<32x1xi1>
      %399 = arith.xori %395, %398 : vector<32x1xi1>
      %400 = arith.andi %399, %393 : vector<32x1xi1>
      %401 = vector.broadcast %389 : i32 to vector<32x1xi32>
      %402 = arith.addi %391, %401 : vector<32x1xi32>
      %403 = arith.select %400, %402, %391 : vector<32x1xi1>, vector<32x1xi32>
      %c0_i32_168 = arith.constant 0 : i32
      %404 = vector.broadcast %c0_i32_168 : i32 to vector<32x1xi32>
      %405 = arith.cmpi eq, %403, %404 : vector<32x1xi32>
      %c1_i32_169 = arith.constant 1 : i32
      %406 = tpu.dynamic_rotate %380 by %c1_i32_169 dim 0 : vector<32x64xf32>, i32 -> vector<32x64xf32>
      %cst_170 = arith.constant 0.000000e+00 : f32
      %407 = vector.shape_cast %405 : vector<32x1xi1> to vector<32x1xi1>
      %408 = vector.broadcast %407 : vector<32x1xi1> to vector<32x64xi1>
      %409 = vector.broadcast %cst_170 : f32 to vector<32x64xf32>
      %410 = arith.select %408, %409, %406 : vector<32x64xi1>, vector<32x64xf32>
      %c7_i32_171 = arith.constant 7 : i32
      %411 = vector.broadcast %c7_i32_171 : i32 to vector<32x1xi32>
      %412 = arith.cmpi eq, %403, %411 : vector<32x1xi32>
      %c31_i32_172 = arith.constant 31 : i32
      %413 = tpu.dynamic_rotate %380 by %c31_i32_172 dim 0 : vector<32x64xf32>, i32 -> vector<32x64xf32>
      %cst_173 = arith.constant 0.000000e+00 : f32
      %414 = vector.shape_cast %412 : vector<32x1xi1> to vector<32x1xi1>
      %415 = vector.broadcast %414 : vector<32x1xi1> to vector<32x64xi1>
      %416 = vector.broadcast %cst_173 : f32 to vector<32x64xf32>
      %417 = arith.select %415, %416, %413 : vector<32x64xi1>, vector<32x64xf32>
      %418 = arith.truncf %410 : vector<32x64xf32> to vector<32x64xbf16>
      %419 = vector.extract_strided_slice %383 {offsets = [0, 0, 0], sizes = [1, 64, 64], strides = [1, 1, 1]} : vector<3x64x64xbf16> to vector<1x64x64xbf16>
      %420 = vector.shape_cast %419 : vector<1x64x64xbf16> to vector<64x64xbf16>
      %cst_174 = arith.constant dense<0.000000e+00> : vector<32x64xf32>
      %421 = tpu.matmul %418, %420, %cst_174 {dimension_numbers = #tpu.dot_dimension_numbers<[1], [0], [0], [1], [0, 0, 1, 1], [], []>} : vector<32x64xbf16>, vector<64x64xbf16>, vector<32x64xf32> -> vector<32x64xf32>
      %422 = arith.truncf %380 : vector<32x64xf32> to vector<32x64xbf16>
      %423 = vector.extract_strided_slice %383 {offsets = [1, 0, 0], sizes = [1, 64, 64], strides = [1, 1, 1]} : vector<3x64x64xbf16> to vector<1x64x64xbf16>
      %424 = vector.shape_cast %423 : vector<1x64x64xbf16> to vector<64x64xbf16>
      %cst_175 = arith.constant dense<0.000000e+00> : vector<32x64xf32>
      %425 = tpu.matmul %422, %424, %cst_175 {dimension_numbers = #tpu.dot_dimension_numbers<[1], [0], [0], [1], [0, 0, 1, 1], [], []>} : vector<32x64xbf16>, vector<64x64xbf16>, vector<32x64xf32> -> vector<32x64xf32>
      %426 = arith.addf %421, %425 : vector<32x64xf32>
      %427 = arith.truncf %417 : vector<32x64xf32> to vector<32x64xbf16>
      %428 = vector.extract_strided_slice %383 {offsets = [2, 0, 0], sizes = [1, 64, 64], strides = [1, 1, 1]} : vector<3x64x64xbf16> to vector<1x64x64xbf16>
      %429 = vector.shape_cast %428 : vector<1x64x64xbf16> to vector<64x64xbf16>
      %cst_176 = arith.constant dense<0.000000e+00> : vector<32x64xf32>
      %430 = tpu.matmul %427, %429, %cst_176 {dimension_numbers = #tpu.dot_dimension_numbers<[1], [0], [0], [1], [0, 0, 1, 1], [], []>} : vector<32x64xbf16>, vector<64x64xbf16>, vector<32x64xf32> -> vector<32x64xf32>
      %431 = arith.addf %426, %430 : vector<32x64xf32>
      %432 = vector.broadcast %386 : vector<1x64xf32> to vector<32x64xf32>
      %433 = arith.addf %431, %432 : vector<32x64xf32>
      %434 = arith.addf %arg25, %433 : vector<32x64xf32>
      scf.yield %434 : vector<32x64xf32>
    }
    %c2_i32_20 = arith.constant 2 : i32
    %c0_21 = arith.constant 0 : index
    %c0_22 = arith.constant 0 : index
    %c0_23 = arith.constant 0 : index
    %56 = vector.load %arg9[%c0_21, %c0_22, %c0_23] : memref<3x64x64xbf16, #tpu.memory_space<vmem>>, vector<3x64x64xbf16>
    %c0_24 = arith.constant 0 : index
    %c0_25 = arith.constant 0 : index
    %57 = vector.load %arg10[%c0_24, %c0_25] : memref<1x64xf32, #tpu.memory_space<vmem>>, vector<1x64xf32>
    %58 = tpu.iota {dimensions = array<i32: 0>} : vector<32x1xi32>
    %c8_i32_26 = arith.constant 8 : i32
    %c0_i32_27 = arith.constant 0 : i32
    %59 = arith.cmpi eq, %c8_i32_26, %c0_i32_27 : i32
    %c1_i32_28 = arith.constant 1 : i32
    %60 = arith.select %59, %c1_i32_28, %c8_i32_26 : i32
    %61 = vector.broadcast %60 : i32 to vector<32x1xi32>
    %62 = arith.remsi %58, %61 : vector<32x1xi32>
    %c0_i32_29 = arith.constant 0 : i32
    %63 = vector.broadcast %c0_i32_29 : i32 to vector<32x1xi32>
    %64 = arith.cmpi ne, %62, %63 : vector<32x1xi32>
    %c0_i32_30 = arith.constant 0 : i32
    %65 = vector.broadcast %c0_i32_30 : i32 to vector<32x1xi32>
    %66 = arith.cmpi slt, %62, %65 : vector<32x1xi32>
    %c0_i32_31 = arith.constant 0 : i32
    %67 = arith.cmpi slt, %60, %c0_i32_31 : i32
    %68 = vector.broadcast %67 : i1 to vector<32x1xi1>
    %69 = vector.broadcast %68 : vector<32x1xi1> to vector<32x1xi1>
    %70 = arith.xori %66, %69 : vector<32x1xi1>
    %71 = arith.andi %70, %64 : vector<32x1xi1>
    %72 = vector.broadcast %60 : i32 to vector<32x1xi32>
    %73 = arith.addi %62, %72 : vector<32x1xi32>
    %74 = arith.select %71, %73, %62 : vector<32x1xi1>, vector<32x1xi32>
    %c0_i32_32 = arith.constant 0 : i32
    %75 = vector.broadcast %c0_i32_32 : i32 to vector<32x1xi32>
    %76 = arith.cmpi eq, %74, %75 : vector<32x1xi32>
    %c1_i32_33 = arith.constant 1 : i32
    %77 = tpu.dynamic_rotate %55 by %c1_i32_33 dim 0 : vector<32x64xf32>, i32 -> vector<32x64xf32>
    %cst_34 = arith.constant 0.000000e+00 : f32
    %78 = vector.shape_cast %76 : vector<32x1xi1> to vector<32x1xi1>
    %79 = vector.broadcast %78 : vector<32x1xi1> to vector<32x64xi1>
    %80 = vector.broadcast %cst_34 : f32 to vector<32x64xf32>
    %81 = arith.select %79, %80, %77 : vector<32x64xi1>, vector<32x64xf32>
    %c7_i32_35 = arith.constant 7 : i32
    %82 = vector.broadcast %c7_i32_35 : i32 to vector<32x1xi32>
    %83 = arith.cmpi eq, %74, %82 : vector<32x1xi32>
    %c31_i32_36 = arith.constant 31 : i32
    %84 = tpu.dynamic_rotate %55 by %c31_i32_36 dim 0 : vector<32x64xf32>, i32 -> vector<32x64xf32>
    %cst_37 = arith.constant 0.000000e+00 : f32
    %85 = vector.shape_cast %83 : vector<32x1xi1> to vector<32x1xi1>
    %86 = vector.broadcast %85 : vector<32x1xi1> to vector<32x64xi1>
    %87 = vector.broadcast %cst_37 : f32 to vector<32x64xf32>
    %88 = arith.select %86, %87, %84 : vector<32x64xi1>, vector<32x64xf32>
    %89 = arith.truncf %81 : vector<32x64xf32> to vector<32x64xbf16>
    %90 = vector.extract_strided_slice %56 {offsets = [0, 0, 0], sizes = [1, 64, 64], strides = [1, 1, 1]} : vector<3x64x64xbf16> to vector<1x64x64xbf16>
    %91 = vector.shape_cast %90 : vector<1x64x64xbf16> to vector<64x64xbf16>
    %cst_38 = arith.constant dense<0.000000e+00> : vector<32x64xf32>
    %92 = tpu.matmul %89, %91, %cst_38 {dimension_numbers = #tpu.dot_dimension_numbers<[1], [0], [0], [1], [0, 0, 1, 1], [], []>} : vector<32x64xbf16>, vector<64x64xbf16>, vector<32x64xf32> -> vector<32x64xf32>
    %93 = arith.truncf %55 : vector<32x64xf32> to vector<32x64xbf16>
    %94 = vector.extract_strided_slice %56 {offsets = [1, 0, 0], sizes = [1, 64, 64], strides = [1, 1, 1]} : vector<3x64x64xbf16> to vector<1x64x64xbf16>
    %95 = vector.shape_cast %94 : vector<1x64x64xbf16> to vector<64x64xbf16>
    %cst_39 = arith.constant dense<0.000000e+00> : vector<32x64xf32>
    %96 = tpu.matmul %93, %95, %cst_39 {dimension_numbers = #tpu.dot_dimension_numbers<[1], [0], [0], [1], [0, 0, 1, 1], [], []>} : vector<32x64xbf16>, vector<64x64xbf16>, vector<32x64xf32> -> vector<32x64xf32>
    %97 = arith.addf %92, %96 : vector<32x64xf32>
    %98 = arith.truncf %88 : vector<32x64xf32> to vector<32x64xbf16>
    %99 = vector.extract_strided_slice %56 {offsets = [2, 0, 0], sizes = [1, 64, 64], strides = [1, 1, 1]} : vector<3x64x64xbf16> to vector<1x64x64xbf16>
    %100 = vector.shape_cast %99 : vector<1x64x64xbf16> to vector<64x64xbf16>
    %cst_40 = arith.constant dense<0.000000e+00> : vector<32x64xf32>
    %101 = tpu.matmul %98, %100, %cst_40 {dimension_numbers = #tpu.dot_dimension_numbers<[1], [0], [0], [1], [0, 0, 1, 1], [], []>} : vector<32x64xbf16>, vector<64x64xbf16>, vector<32x64xf32> -> vector<32x64xf32>
    %102 = arith.addf %97, %101 : vector<32x64xf32>
    %103 = vector.broadcast %57 : vector<1x64xf32> to vector<32x64xf32>
    %104 = arith.addf %102, %103 : vector<32x64xf32>
    %105 = arith.addf %53, %104 : vector<32x64xf32>
    %c0_41 = arith.constant 0 : index
    %c0_42 = arith.constant 0 : index
    %c0_43 = arith.constant 0 : index
    %106 = vector.load %arg11[%c0_41, %c0_42, %c0_43] : memref<3x64x128xbf16, #tpu.memory_space<vmem>>, vector<3x64x128xbf16>
    %c0_44 = arith.constant 0 : index
    %c0_45 = arith.constant 0 : index
    %107 = vector.load %arg12[%c0_44, %c0_45] : memref<1x128xf32, #tpu.memory_space<vmem>>, vector<1x128xf32>
    %108 = tpu.iota {dimensions = array<i32: 0>} : vector<32x1xi32>
    %c8_i32_46 = arith.constant 8 : i32
    %c0_i32_47 = arith.constant 0 : i32
    %109 = arith.cmpi eq, %c8_i32_46, %c0_i32_47 : i32
    %c1_i32_48 = arith.constant 1 : i32
    %110 = arith.select %109, %c1_i32_48, %c8_i32_46 : i32
    %111 = vector.broadcast %110 : i32 to vector<32x1xi32>
    %112 = arith.remsi %108, %111 : vector<32x1xi32>
    %c0_i32_49 = arith.constant 0 : i32
    %113 = vector.broadcast %c0_i32_49 : i32 to vector<32x1xi32>
    %114 = arith.cmpi ne, %112, %113 : vector<32x1xi32>
    %c0_i32_50 = arith.constant 0 : i32
    %115 = vector.broadcast %c0_i32_50 : i32 to vector<32x1xi32>
    %116 = arith.cmpi slt, %112, %115 : vector<32x1xi32>
    %c0_i32_51 = arith.constant 0 : i32
    %117 = arith.cmpi slt, %110, %c0_i32_51 : i32
    %118 = vector.broadcast %117 : i1 to vector<32x1xi1>
    %119 = vector.broadcast %118 : vector<32x1xi1> to vector<32x1xi1>
    %120 = arith.xori %116, %119 : vector<32x1xi1>
    %121 = arith.andi %120, %114 : vector<32x1xi1>
    %122 = vector.broadcast %110 : i32 to vector<32x1xi32>
    %123 = arith.addi %112, %122 : vector<32x1xi32>
    %124 = arith.select %121, %123, %112 : vector<32x1xi1>, vector<32x1xi32>
    %c0_i32_52 = arith.constant 0 : i32
    %125 = vector.broadcast %c0_i32_52 : i32 to vector<32x1xi32>
    %126 = arith.cmpi eq, %124, %125 : vector<32x1xi32>
    %c1_i32_53 = arith.constant 1 : i32
    %127 = tpu.dynamic_rotate %105 by %c1_i32_53 dim 0 : vector<32x64xf32>, i32 -> vector<32x64xf32>
    %cst_54 = arith.constant 0.000000e+00 : f32
    %128 = vector.shape_cast %126 : vector<32x1xi1> to vector<32x1xi1>
    %129 = vector.broadcast %128 : vector<32x1xi1> to vector<32x64xi1>
    %130 = vector.broadcast %cst_54 : f32 to vector<32x64xf32>
    %131 = arith.select %129, %130, %127 : vector<32x64xi1>, vector<32x64xf32>
    %c7_i32_55 = arith.constant 7 : i32
    %132 = vector.broadcast %c7_i32_55 : i32 to vector<32x1xi32>
    %133 = arith.cmpi eq, %124, %132 : vector<32x1xi32>
    %c31_i32_56 = arith.constant 31 : i32
    %134 = tpu.dynamic_rotate %105 by %c31_i32_56 dim 0 : vector<32x64xf32>, i32 -> vector<32x64xf32>
    %cst_57 = arith.constant 0.000000e+00 : f32
    %135 = vector.shape_cast %133 : vector<32x1xi1> to vector<32x1xi1>
    %136 = vector.broadcast %135 : vector<32x1xi1> to vector<32x64xi1>
    %137 = vector.broadcast %cst_57 : f32 to vector<32x64xf32>
    %138 = arith.select %136, %137, %134 : vector<32x64xi1>, vector<32x64xf32>
    %139 = arith.truncf %131 : vector<32x64xf32> to vector<32x64xbf16>
    %140 = vector.extract_strided_slice %106 {offsets = [0, 0, 0], sizes = [1, 64, 128], strides = [1, 1, 1]} : vector<3x64x128xbf16> to vector<1x64x128xbf16>
    %141 = vector.shape_cast %140 : vector<1x64x128xbf16> to vector<64x128xbf16>
    %cst_58 = arith.constant dense<0.000000e+00> : vector<32x128xf32>
    %142 = tpu.matmul %139, %141, %cst_58 {dimension_numbers = #tpu.dot_dimension_numbers<[1], [0], [0], [1], [0, 0, 1, 1], [], []>} : vector<32x64xbf16>, vector<64x128xbf16>, vector<32x128xf32> -> vector<32x128xf32>
    %143 = arith.truncf %105 : vector<32x64xf32> to vector<32x64xbf16>
    %144 = vector.extract_strided_slice %106 {offsets = [1, 0, 0], sizes = [1, 64, 128], strides = [1, 1, 1]} : vector<3x64x128xbf16> to vector<1x64x128xbf16>
    %145 = vector.shape_cast %144 : vector<1x64x128xbf16> to vector<64x128xbf16>
    %cst_59 = arith.constant dense<0.000000e+00> : vector<32x128xf32>
    %146 = tpu.matmul %143, %145, %cst_59 {dimension_numbers = #tpu.dot_dimension_numbers<[1], [0], [0], [1], [0, 0, 1, 1], [], []>} : vector<32x64xbf16>, vector<64x128xbf16>, vector<32x128xf32> -> vector<32x128xf32>
    %147 = arith.addf %142, %146 : vector<32x128xf32>
    %148 = arith.truncf %138 : vector<32x64xf32> to vector<32x64xbf16>
    %149 = vector.extract_strided_slice %106 {offsets = [2, 0, 0], sizes = [1, 64, 128], strides = [1, 1, 1]} : vector<3x64x128xbf16> to vector<1x64x128xbf16>
    %150 = vector.shape_cast %149 : vector<1x64x128xbf16> to vector<64x128xbf16>
    %cst_60 = arith.constant dense<0.000000e+00> : vector<32x128xf32>
    %151 = tpu.matmul %148, %150, %cst_60 {dimension_numbers = #tpu.dot_dimension_numbers<[1], [0], [0], [1], [0, 0, 1, 1], [], []>} : vector<32x64xbf16>, vector<64x128xbf16>, vector<32x128xf32> -> vector<32x128xf32>
    %152 = arith.addf %147, %151 : vector<32x128xf32>
    %153 = vector.broadcast %107 : vector<1x128xf32> to vector<32x128xf32>
    %154 = arith.addf %152, %153 : vector<32x128xf32>
    %c0_61 = arith.constant 0 : index
    %c0_62 = arith.constant 0 : index
    %c0_63 = arith.constant 0 : index
    %155 = vector.load %arg13[%c0_61, %c0_62, %c0_63] : memref<3x64x128xbf16, #tpu.memory_space<vmem>>, vector<3x64x128xbf16>
    %c0_64 = arith.constant 0 : index
    %c0_65 = arith.constant 0 : index
    %156 = vector.load %arg14[%c0_64, %c0_65] : memref<1x128xf32, #tpu.memory_space<vmem>>, vector<1x128xf32>
    %157 = tpu.iota {dimensions = array<i32: 0>} : vector<32x1xi32>
    %c8_i32_66 = arith.constant 8 : i32
    %c0_i32_67 = arith.constant 0 : i32
    %158 = arith.cmpi eq, %c8_i32_66, %c0_i32_67 : i32
    %c1_i32_68 = arith.constant 1 : i32
    %159 = arith.select %158, %c1_i32_68, %c8_i32_66 : i32
    %160 = vector.broadcast %159 : i32 to vector<32x1xi32>
    %161 = arith.remsi %157, %160 : vector<32x1xi32>
    %c0_i32_69 = arith.constant 0 : i32
    %162 = vector.broadcast %c0_i32_69 : i32 to vector<32x1xi32>
    %163 = arith.cmpi ne, %161, %162 : vector<32x1xi32>
    %c0_i32_70 = arith.constant 0 : i32
    %164 = vector.broadcast %c0_i32_70 : i32 to vector<32x1xi32>
    %165 = arith.cmpi slt, %161, %164 : vector<32x1xi32>
    %c0_i32_71 = arith.constant 0 : i32
    %166 = arith.cmpi slt, %159, %c0_i32_71 : i32
    %167 = vector.broadcast %166 : i1 to vector<32x1xi1>
    %168 = vector.broadcast %167 : vector<32x1xi1> to vector<32x1xi1>
    %169 = arith.xori %165, %168 : vector<32x1xi1>
    %170 = arith.andi %169, %163 : vector<32x1xi1>
    %171 = vector.broadcast %159 : i32 to vector<32x1xi32>
    %172 = arith.addi %161, %171 : vector<32x1xi32>
    %173 = arith.select %170, %172, %161 : vector<32x1xi1>, vector<32x1xi32>
    %c0_i32_72 = arith.constant 0 : i32
    %174 = vector.broadcast %c0_i32_72 : i32 to vector<32x1xi32>
    %175 = arith.cmpi eq, %173, %174 : vector<32x1xi32>
    %c1_i32_73 = arith.constant 1 : i32
    %176 = tpu.dynamic_rotate %105 by %c1_i32_73 dim 0 : vector<32x64xf32>, i32 -> vector<32x64xf32>
    %cst_74 = arith.constant 0.000000e+00 : f32
    %177 = vector.shape_cast %175 : vector<32x1xi1> to vector<32x1xi1>
    %178 = vector.broadcast %177 : vector<32x1xi1> to vector<32x64xi1>
    %179 = vector.broadcast %cst_74 : f32 to vector<32x64xf32>
    %180 = arith.select %178, %179, %176 : vector<32x64xi1>, vector<32x64xf32>
    %c7_i32_75 = arith.constant 7 : i32
    %181 = vector.broadcast %c7_i32_75 : i32 to vector<32x1xi32>
    %182 = arith.cmpi eq, %173, %181 : vector<32x1xi32>
    %c31_i32_76 = arith.constant 31 : i32
    %183 = tpu.dynamic_rotate %105 by %c31_i32_76 dim 0 : vector<32x64xf32>, i32 -> vector<32x64xf32>
    %cst_77 = arith.constant 0.000000e+00 : f32
    %184 = vector.shape_cast %182 : vector<32x1xi1> to vector<32x1xi1>
    %185 = vector.broadcast %184 : vector<32x1xi1> to vector<32x64xi1>
    %186 = vector.broadcast %cst_77 : f32 to vector<32x64xf32>
    %187 = arith.select %185, %186, %183 : vector<32x64xi1>, vector<32x64xf32>
    %188 = arith.truncf %180 : vector<32x64xf32> to vector<32x64xbf16>
    %189 = vector.extract_strided_slice %155 {offsets = [0, 0, 0], sizes = [1, 64, 128], strides = [1, 1, 1]} : vector<3x64x128xbf16> to vector<1x64x128xbf16>
    %190 = vector.shape_cast %189 : vector<1x64x128xbf16> to vector<64x128xbf16>
    %cst_78 = arith.constant dense<0.000000e+00> : vector<32x128xf32>
    %191 = tpu.matmul %188, %190, %cst_78 {dimension_numbers = #tpu.dot_dimension_numbers<[1], [0], [0], [1], [0, 0, 1, 1], [], []>} : vector<32x64xbf16>, vector<64x128xbf16>, vector<32x128xf32> -> vector<32x128xf32>
    %192 = arith.truncf %105 : vector<32x64xf32> to vector<32x64xbf16>
    %193 = vector.extract_strided_slice %155 {offsets = [1, 0, 0], sizes = [1, 64, 128], strides = [1, 1, 1]} : vector<3x64x128xbf16> to vector<1x64x128xbf16>
    %194 = vector.shape_cast %193 : vector<1x64x128xbf16> to vector<64x128xbf16>
    %cst_79 = arith.constant dense<0.000000e+00> : vector<32x128xf32>
    %195 = tpu.matmul %192, %194, %cst_79 {dimension_numbers = #tpu.dot_dimension_numbers<[1], [0], [0], [1], [0, 0, 1, 1], [], []>} : vector<32x64xbf16>, vector<64x128xbf16>, vector<32x128xf32> -> vector<32x128xf32>
    %196 = arith.addf %191, %195 : vector<32x128xf32>
    %197 = arith.truncf %187 : vector<32x64xf32> to vector<32x64xbf16>
    %198 = vector.extract_strided_slice %155 {offsets = [2, 0, 0], sizes = [1, 64, 128], strides = [1, 1, 1]} : vector<3x64x128xbf16> to vector<1x64x128xbf16>
    %199 = vector.shape_cast %198 : vector<1x64x128xbf16> to vector<64x128xbf16>
    %cst_80 = arith.constant dense<0.000000e+00> : vector<32x128xf32>
    %200 = tpu.matmul %197, %199, %cst_80 {dimension_numbers = #tpu.dot_dimension_numbers<[1], [0], [0], [1], [0, 0, 1, 1], [], []>} : vector<32x64xbf16>, vector<64x128xbf16>, vector<32x128xf32> -> vector<32x128xf32>
    %201 = arith.addf %196, %200 : vector<32x128xf32>
    %202 = vector.broadcast %156 : vector<1x128xf32> to vector<32x128xf32>
    %203 = arith.addf %201, %202 : vector<32x128xf32>
    %c0_81 = arith.constant 0 : index
    %c0_82 = arith.constant 0 : index
    %204 = vector.load %arg15[%c0_81, %c0_82] : memref<64x64xf32, #tpu.memory_space<vmem>>, vector<64x64xf32>
    %205 = tpu.concatenate %154, %203 in 0 : vector<32x128xf32>, vector<32x128xf32> -> vector<64x128xf32>
    %cst_83 = arith.constant dense<0.000000e+00> : vector<64x128xf32>
    %206 = tpu.matmul %204, %205, %cst_83 {dimension_numbers = #tpu.dot_dimension_numbers<[1], [0], [0], [1], [0, 0, 1, 1], [], []>} : vector<64x64xf32>, vector<64x128xf32>, vector<64x128xf32> -> vector<64x128xf32>
    %c0_84 = arith.constant 0 : index
    %c0_85 = arith.constant 0 : index
    %207 = vector.load %arg16[%c0_84, %c0_85] : memref<384x256xbf16, #tpu.memory_space<vmem>>, vector<384x256xbf16>
    %c0_86 = arith.constant 0 : index
    %c0_87 = arith.constant 0 : index
    %208 = vector.load %arg17[%c0_86, %c0_87] : memref<1x256xf32, #tpu.memory_space<vmem>>, vector<1x256xf32>
    %209 = tpu.iota {dimensions = array<i32: 0>} : vector<64x1xi32>
    %c16_i32 = arith.constant 16 : i32
    %c0_i32_88 = arith.constant 0 : i32
    %210 = arith.cmpi eq, %c16_i32, %c0_i32_88 : i32
    %c1_i32_89 = arith.constant 1 : i32
    %211 = arith.select %210, %c1_i32_89, %c16_i32 : i32
    %212 = vector.broadcast %211 : i32 to vector<64x1xi32>
    %213 = arith.remsi %209, %212 : vector<64x1xi32>
    %c0_i32_90 = arith.constant 0 : i32
    %214 = vector.broadcast %c0_i32_90 : i32 to vector<64x1xi32>
    %215 = arith.cmpi ne, %213, %214 : vector<64x1xi32>
    %c0_i32_91 = arith.constant 0 : i32
    %216 = vector.broadcast %c0_i32_91 : i32 to vector<64x1xi32>
    %217 = arith.cmpi slt, %213, %216 : vector<64x1xi32>
    %c0_i32_92 = arith.constant 0 : i32
    %218 = arith.cmpi slt, %211, %c0_i32_92 : i32
    %219 = vector.broadcast %218 : i1 to vector<64x1xi1>
    %220 = vector.broadcast %219 : vector<64x1xi1> to vector<64x1xi1>
    %221 = arith.xori %217, %220 : vector<64x1xi1>
    %222 = arith.andi %221, %215 : vector<64x1xi1>
    %223 = vector.broadcast %211 : i32 to vector<64x1xi32>
    %224 = arith.addi %213, %223 : vector<64x1xi32>
    %225 = arith.select %222, %224, %213 : vector<64x1xi1>, vector<64x1xi32>
    %c0_i32_93 = arith.constant 0 : i32
    %226 = vector.broadcast %c0_i32_93 : i32 to vector<64x1xi32>
    %227 = arith.cmpi eq, %225, %226 : vector<64x1xi32>
    %c1_i32_94 = arith.constant 1 : i32
    %228 = tpu.dynamic_rotate %206 by %c1_i32_94 dim 0 : vector<64x128xf32>, i32 -> vector<64x128xf32>
    %cst_95 = arith.constant 0.000000e+00 : f32
    %229 = vector.shape_cast %227 : vector<64x1xi1> to vector<64x1xi1>
    %230 = vector.broadcast %229 : vector<64x1xi1> to vector<64x128xi1>
    %231 = vector.broadcast %cst_95 : f32 to vector<64x128xf32>
    %232 = arith.select %230, %231, %228 : vector<64x128xi1>, vector<64x128xf32>
    %c15_i32 = arith.constant 15 : i32
    %233 = vector.broadcast %c15_i32 : i32 to vector<64x1xi32>
    %234 = arith.cmpi eq, %225, %233 : vector<64x1xi32>
    %c63_i32 = arith.constant 63 : i32
    %235 = tpu.dynamic_rotate %206 by %c63_i32 dim 0 : vector<64x128xf32>, i32 -> vector<64x128xf32>
    %cst_96 = arith.constant 0.000000e+00 : f32
    %236 = vector.shape_cast %234 : vector<64x1xi1> to vector<64x1xi1>
    %237 = vector.broadcast %236 : vector<64x1xi1> to vector<64x128xi1>
    %238 = vector.broadcast %cst_96 : f32 to vector<64x128xf32>
    %239 = arith.select %237, %238, %235 : vector<64x128xi1>, vector<64x128xf32>
    %240 = tpu.concatenate %232, %206, %239 in 1 : vector<64x128xf32>, vector<64x128xf32>, vector<64x128xf32> -> vector<64x384xf32>
    %241 = arith.truncf %240 : vector<64x384xf32> to vector<64x384xbf16>
    %cst_97 = arith.constant dense<0.000000e+00> : vector<64x256xf32>
    %242 = tpu.matmul %241, %207, %cst_97 {dimension_numbers = #tpu.dot_dimension_numbers<[1], [0], [0], [1], [0, 0, 1, 1], [], []>} : vector<64x384xbf16>, vector<384x256xbf16>, vector<64x256xf32> -> vector<64x256xf32>
    %243 = vector.broadcast %208 : vector<1x256xf32> to vector<64x256xf32>
    %244 = arith.addf %242, %243 : vector<64x256xf32>
    %c0_98 = arith.constant 0 : index
    %c0_99 = arith.constant 0 : index
    %245 = vector.load %arg18[%c0_98, %c0_99] : memref<384x256xbf16, #tpu.memory_space<vmem>>, vector<384x256xbf16>
    %c0_100 = arith.constant 0 : index
    %c0_101 = arith.constant 0 : index
    %246 = vector.load %arg19[%c0_100, %c0_101] : memref<1x256xf32, #tpu.memory_space<vmem>>, vector<1x256xf32>
    %247 = tpu.iota {dimensions = array<i32: 0>} : vector<64x1xi32>
    %c16_i32_102 = arith.constant 16 : i32
    %c0_i32_103 = arith.constant 0 : i32
    %248 = arith.cmpi eq, %c16_i32_102, %c0_i32_103 : i32
    %c1_i32_104 = arith.constant 1 : i32
    %249 = arith.select %248, %c1_i32_104, %c16_i32_102 : i32
    %250 = vector.broadcast %249 : i32 to vector<64x1xi32>
    %251 = arith.remsi %247, %250 : vector<64x1xi32>
    %c0_i32_105 = arith.constant 0 : i32
    %252 = vector.broadcast %c0_i32_105 : i32 to vector<64x1xi32>
    %253 = arith.cmpi ne, %251, %252 : vector<64x1xi32>
    %c0_i32_106 = arith.constant 0 : i32
    %254 = vector.broadcast %c0_i32_106 : i32 to vector<64x1xi32>
    %255 = arith.cmpi slt, %251, %254 : vector<64x1xi32>
    %c0_i32_107 = arith.constant 0 : i32
    %256 = arith.cmpi slt, %249, %c0_i32_107 : i32
    %257 = vector.broadcast %256 : i1 to vector<64x1xi1>
    %258 = vector.broadcast %257 : vector<64x1xi1> to vector<64x1xi1>
    %259 = arith.xori %255, %258 : vector<64x1xi1>
    %260 = arith.andi %259, %253 : vector<64x1xi1>
    %261 = vector.broadcast %249 : i32 to vector<64x1xi32>
    %262 = arith.addi %251, %261 : vector<64x1xi32>
    %263 = arith.select %260, %262, %251 : vector<64x1xi1>, vector<64x1xi32>
    %c0_i32_108 = arith.constant 0 : i32
    %264 = vector.broadcast %c0_i32_108 : i32 to vector<64x1xi32>
    %265 = arith.cmpi eq, %263, %264 : vector<64x1xi32>
    %c1_i32_109 = arith.constant 1 : i32
    %266 = tpu.dynamic_rotate %206 by %c1_i32_109 dim 0 : vector<64x128xf32>, i32 -> vector<64x128xf32>
    %cst_110 = arith.constant 0.000000e+00 : f32
    %267 = vector.shape_cast %265 : vector<64x1xi1> to vector<64x1xi1>
    %268 = vector.broadcast %267 : vector<64x1xi1> to vector<64x128xi1>
    %269 = vector.broadcast %cst_110 : f32 to vector<64x128xf32>
    %270 = arith.select %268, %269, %266 : vector<64x128xi1>, vector<64x128xf32>
    %c15_i32_111 = arith.constant 15 : i32
    %271 = vector.broadcast %c15_i32_111 : i32 to vector<64x1xi32>
    %272 = arith.cmpi eq, %263, %271 : vector<64x1xi32>
    %c63_i32_112 = arith.constant 63 : i32
    %273 = tpu.dynamic_rotate %206 by %c63_i32_112 dim 0 : vector<64x128xf32>, i32 -> vector<64x128xf32>
    %cst_113 = arith.constant 0.000000e+00 : f32
    %274 = vector.shape_cast %272 : vector<64x1xi1> to vector<64x1xi1>
    %275 = vector.broadcast %274 : vector<64x1xi1> to vector<64x128xi1>
    %276 = vector.broadcast %cst_113 : f32 to vector<64x128xf32>
    %277 = arith.select %275, %276, %273 : vector<64x128xi1>, vector<64x128xf32>
    %278 = tpu.concatenate %270, %206, %277 in 1 : vector<64x128xf32>, vector<64x128xf32>, vector<64x128xf32> -> vector<64x384xf32>
    %279 = arith.truncf %278 : vector<64x384xf32> to vector<64x384xbf16>
    %cst_114 = arith.constant dense<0.000000e+00> : vector<64x256xf32>
    %280 = tpu.matmul %279, %245, %cst_114 {dimension_numbers = #tpu.dot_dimension_numbers<[1], [0], [0], [1], [0, 0, 1, 1], [], []>} : vector<64x384xbf16>, vector<384x256xbf16>, vector<64x256xf32> -> vector<64x256xf32>
    %281 = vector.broadcast %246 : vector<1x256xf32> to vector<64x256xf32>
    %282 = arith.addf %280, %281 : vector<64x256xf32>
    %c0_115 = arith.constant 0 : index
    %c0_116 = arith.constant 0 : index
    %283 = vector.load %arg20[%c0_115, %c0_116] : memref<128x128xf32, #tpu.memory_space<vmem>>, vector<128x128xf32>
    %284 = tpu.concatenate %244, %282 in 0 : vector<64x256xf32>, vector<64x256xf32> -> vector<128x256xf32>
    %cst_117 = arith.constant dense<0.000000e+00> : vector<128x256xf32>
    %285 = tpu.matmul %283, %284, %cst_117 {dimension_numbers = #tpu.dot_dimension_numbers<[1], [0], [0], [1], [0, 0, 1, 1], [], []>} : vector<128x128xf32>, vector<128x256xf32>, vector<128x256xf32> -> vector<128x256xf32>
    %c0_118 = arith.constant 0 : index
    %c0_119 = arith.constant 0 : index
    %286 = vector.load %arg21[%c0_118, %c0_119] : memref<768x96xbf16, #tpu.memory_space<vmem>>, vector<768x96xbf16>
    %c0_120 = arith.constant 0 : index
    %c0_121 = arith.constant 0 : index
    %287 = vector.load %arg22[%c0_120, %c0_121] : memref<1x96xf32, #tpu.memory_space<vmem>>, vector<1x96xf32>
    %288 = tpu.iota {dimensions = array<i32: 0>} : vector<128x1xi32>
    %c32_i32 = arith.constant 32 : i32
    %c0_i32_122 = arith.constant 0 : i32
    %289 = arith.cmpi eq, %c32_i32, %c0_i32_122 : i32
    %c1_i32_123 = arith.constant 1 : i32
    %290 = arith.select %289, %c1_i32_123, %c32_i32 : i32
    %291 = vector.broadcast %290 : i32 to vector<128x1xi32>
    %292 = arith.remsi %288, %291 : vector<128x1xi32>
    %c0_i32_124 = arith.constant 0 : i32
    %293 = vector.broadcast %c0_i32_124 : i32 to vector<128x1xi32>
    %294 = arith.cmpi ne, %292, %293 : vector<128x1xi32>
    %c0_i32_125 = arith.constant 0 : i32
    %295 = vector.broadcast %c0_i32_125 : i32 to vector<128x1xi32>
    %296 = arith.cmpi slt, %292, %295 : vector<128x1xi32>
    %c0_i32_126 = arith.constant 0 : i32
    %297 = arith.cmpi slt, %290, %c0_i32_126 : i32
    %298 = vector.broadcast %297 : i1 to vector<128x1xi1>
    %299 = vector.broadcast %298 : vector<128x1xi1> to vector<128x1xi1>
    %300 = arith.xori %296, %299 : vector<128x1xi1>
    %301 = arith.andi %300, %294 : vector<128x1xi1>
    %302 = vector.broadcast %290 : i32 to vector<128x1xi32>
    %303 = arith.addi %292, %302 : vector<128x1xi32>
    %304 = arith.select %301, %303, %292 : vector<128x1xi1>, vector<128x1xi32>
    %c0_i32_127 = arith.constant 0 : i32
    %305 = vector.broadcast %c0_i32_127 : i32 to vector<128x1xi32>
    %306 = arith.cmpi eq, %304, %305 : vector<128x1xi32>
    %c1_i32_128 = arith.constant 1 : i32
    %307 = tpu.dynamic_rotate %285 by %c1_i32_128 dim 0 : vector<128x256xf32>, i32 -> vector<128x256xf32>
    %cst_129 = arith.constant 0.000000e+00 : f32
    %308 = vector.shape_cast %306 : vector<128x1xi1> to vector<128x1xi1>
    %309 = vector.broadcast %308 : vector<128x1xi1> to vector<128x256xi1>
    %310 = vector.broadcast %cst_129 : f32 to vector<128x256xf32>
    %311 = arith.select %309, %310, %307 : vector<128x256xi1>, vector<128x256xf32>
    %c31_i32_130 = arith.constant 31 : i32
    %312 = vector.broadcast %c31_i32_130 : i32 to vector<128x1xi32>
    %313 = arith.cmpi eq, %304, %312 : vector<128x1xi32>
    %c127_i32 = arith.constant 127 : i32
    %314 = tpu.dynamic_rotate %285 by %c127_i32 dim 0 : vector<128x256xf32>, i32 -> vector<128x256xf32>
    %cst_131 = arith.constant 0.000000e+00 : f32
    %315 = vector.shape_cast %313 : vector<128x1xi1> to vector<128x1xi1>
    %316 = vector.broadcast %315 : vector<128x1xi1> to vector<128x256xi1>
    %317 = vector.broadcast %cst_131 : f32 to vector<128x256xf32>
    %318 = arith.select %316, %317, %314 : vector<128x256xi1>, vector<128x256xf32>
    %319 = tpu.concatenate %311, %285, %318 in 1 : vector<128x256xf32>, vector<128x256xf32>, vector<128x256xf32> -> vector<128x768xf32>
    %320 = arith.truncf %319 : vector<128x768xf32> to vector<128x768xbf16>
    %cst_132 = arith.constant dense<0.000000e+00> : vector<128x96xf32>
    %321 = tpu.matmul %320, %286, %cst_132 {dimension_numbers = #tpu.dot_dimension_numbers<[1], [0], [0], [1], [0, 0, 1, 1], [], []>} : vector<128x768xbf16>, vector<768x96xbf16>, vector<128x96xf32> -> vector<128x96xf32>
    %322 = vector.broadcast %287 : vector<1x96xf32> to vector<128x96xf32>
    %323 = arith.addf %321, %322 : vector<128x96xf32>
    %324 = vector.shape_cast %323 : vector<128x96xf32> to vector<4x32x96xf32>
    %c0_133 = arith.constant 0 : index
    %c0_134 = arith.constant 0 : index
    %c0_135 = arith.constant 0 : index
    %325 = vector.load %arg23[%c0_133, %c0_134, %c0_135] : memref<4x32x96xf32, #tpu.memory_space<vmem>>, vector<4x32x96xf32>
    tpu.vector_store %arg23[%c0_133, %c0_134, %c0_135], %324 {strides = array<i32>} : memref<4x32x96xf32, #tpu.memory_space<vmem>>, vector<4x32x96xf32>,
    return
  }
  func.func @transform_0(%arg0: i32) -> (i32, i32, i32) {
    %c0_i32 = arith.constant 0 : i32
    %c0_i32_0 = arith.constant 0 : i32
    %c0_i32_1 = arith.constant 0 : i32
    return %arg0, %c0_i32, %c0_i32_0 : i32, i32, i32
  }
  func.func @transform_1(%arg0: i32) -> (i32, i32) {
    %c0_i32 = arith.constant 0 : i32
    %c0_i32_0 = arith.constant 0 : i32
    %c0_i32_1 = arith.constant 0 : i32
    return %c0_i32, %c0_i32_0 : i32, i32
  }
  func.func @transform_2(%arg0: i32) -> (i32, i32, i32) {
    %c0_i32 = arith.constant 0 : i32
    %c0_i32_0 = arith.constant 0 : i32
    %c0_i32_1 = arith.constant 0 : i32
    %c0_i32_2 = arith.constant 0 : i32
    return %c0_i32, %c0_i32_0, %c0_i32_1 : i32, i32, i32
  }
  func.func @transform_3(%arg0: i32) -> (i32, i32) {
    %c0_i32 = arith.constant 0 : i32
    %c0_i32_0 = arith.constant 0 : i32
    %c0_i32_1 = arith.constant 0 : i32
    return %c0_i32, %c0_i32_0 : i32, i32
  }
  func.func @transform_4(%arg0: i32) -> (i32, i32, i32, i32) {
    %c0_i32 = arith.constant 0 : i32
    %c0_i32_0 = arith.constant 0 : i32
    %c0_i32_1 = arith.constant 0 : i32
    %c0_i32_2 = arith.constant 0 : i32
    %c0_i32_3 = arith.constant 0 : i32
    return %c0_i32, %c0_i32_0, %c0_i32_1, %c0_i32_2 : i32, i32, i32, i32
  }
  func.func @transform_5(%arg0: i32) -> (i32, i32, i32) {
    %c0_i32 = arith.constant 0 : i32
    %c0_i32_0 = arith.constant 0 : i32
    %c0_i32_1 = arith.constant 0 : i32
    %c0_i32_2 = arith.constant 0 : i32
    return %c0_i32, %c0_i32_0, %c0_i32_1 : i32, i32, i32
  }
  func.func @transform_6(%arg0: i32) -> (i32, i32, i32, i32) {
    %c0_i32 = arith.constant 0 : i32
    %c0_i32_0 = arith.constant 0 : i32
    %c0_i32_1 = arith.constant 0 : i32
    %c0_i32_2 = arith.constant 0 : i32
    %c0_i32_3 = arith.constant 0 : i32
    return %c0_i32, %c0_i32_0, %c0_i32_1, %c0_i32_2 : i32, i32, i32, i32
  }
  func.func @transform_7(%arg0: i32) -> (i32, i32, i32) {
    %c0_i32 = arith.constant 0 : i32
    %c0_i32_0 = arith.constant 0 : i32
    %c0_i32_1 = arith.constant 0 : i32
    %c0_i32_2 = arith.constant 0 : i32
    return %c0_i32, %c0_i32_0, %c0_i32_1 : i32, i32, i32
  }
  func.func @transform_8(%arg0: i32) -> (i32, i32, i32) {
    %c0_i32 = arith.constant 0 : i32
    %c0_i32_0 = arith.constant 0 : i32
    %c0_i32_1 = arith.constant 0 : i32
    %c0_i32_2 = arith.constant 0 : i32
    return %c0_i32, %c0_i32_0, %c0_i32_1 : i32, i32, i32
  }
  func.func @transform_9(%arg0: i32) -> (i32, i32) {
    %c0_i32 = arith.constant 0 : i32
    %c0_i32_0 = arith.constant 0 : i32
    %c0_i32_1 = arith.constant 0 : i32
    return %c0_i32, %c0_i32_0 : i32, i32
  }
  func.func @transform_10(%arg0: i32) -> (i32, i32, i32) {
    %c0_i32 = arith.constant 0 : i32
    %c0_i32_0 = arith.constant 0 : i32
    %c0_i32_1 = arith.constant 0 : i32
    %c0_i32_2 = arith.constant 0 : i32
    return %c0_i32, %c0_i32_0, %c0_i32_1 : i32, i32, i32
  }
  func.func @transform_11(%arg0: i32) -> (i32, i32) {
    %c0_i32 = arith.constant 0 : i32
    %c0_i32_0 = arith.constant 0 : i32
    %c0_i32_1 = arith.constant 0 : i32
    return %c0_i32, %c0_i32_0 : i32, i32
  }
  func.func @transform_12(%arg0: i32) -> (i32, i32, i32) {
    %c0_i32 = arith.constant 0 : i32
    %c0_i32_0 = arith.constant 0 : i32
    %c0_i32_1 = arith.constant 0 : i32
    %c0_i32_2 = arith.constant 0 : i32
    return %c0_i32, %c0_i32_0, %c0_i32_1 : i32, i32, i32
  }
  func.func @transform_13(%arg0: i32) -> (i32, i32) {
    %c0_i32 = arith.constant 0 : i32
    %c0_i32_0 = arith.constant 0 : i32
    %c0_i32_1 = arith.constant 0 : i32
    return %c0_i32, %c0_i32_0 : i32, i32
  }
  func.func @transform_14(%arg0: i32) -> (i32, i32) {
    %c0_i32 = arith.constant 0 : i32
    %c0_i32_0 = arith.constant 0 : i32
    %c0_i32_1 = arith.constant 0 : i32
    return %c0_i32, %c0_i32_0 : i32, i32
  }
  func.func @transform_15(%arg0: i32) -> (i32, i32) {
    %c0_i32 = arith.constant 0 : i32
    %c0_i32_0 = arith.constant 0 : i32
    %c0_i32_1 = arith.constant 0 : i32
    return %c0_i32, %c0_i32_0 : i32, i32
  }
  func.func @transform_16(%arg0: i32) -> (i32, i32) {
    %c0_i32 = arith.constant 0 : i32
    %c0_i32_0 = arith.constant 0 : i32
    %c0_i32_1 = arith.constant 0 : i32
    return %c0_i32, %c0_i32_0 : i32, i32
  }
  func.func @transform_17(%arg0: i32) -> (i32, i32) {
    %c0_i32 = arith.constant 0 : i32
    %c0_i32_0 = arith.constant 0 : i32
    %c0_i32_1 = arith.constant 0 : i32
    return %c0_i32, %c0_i32_0 : i32, i32
  }
  func.func @transform_18(%arg0: i32) -> (i32, i32) {
    %c0_i32 = arith.constant 0 : i32
    %c0_i32_0 = arith.constant 0 : i32
    %c0_i32_1 = arith.constant 0 : i32
    return %c0_i32, %c0_i32_0 : i32, i32
  }
  func.func @transform_19(%arg0: i32) -> (i32, i32) {
    %c0_i32 = arith.constant 0 : i32
    %c0_i32_0 = arith.constant 0 : i32
    %c0_i32_1 = arith.constant 0 : i32
    return %c0_i32, %c0_i32_0 : i32, i32
  }
  func.func @transform_20(%arg0: i32) -> (i32, i32) {
    %c0_i32 = arith.constant 0 : i32
    %c0_i32_0 = arith.constant 0 : i32
    %c0_i32_1 = arith.constant 0 : i32
    return %c0_i32, %c0_i32_0 : i32, i32
  }
  func.func @transform_21(%arg0: i32) -> (i32, i32) {
    %c0_i32 = arith.constant 0 : i32
    %c0_i32_0 = arith.constant 0 : i32
    %c0_i32_1 = arith.constant 0 : i32
    return %c0_i32, %c0_i32_0 : i32, i32
  }
  func.func @transform_22(%arg0: i32) -> (i32, i32, i32) {
    %c0_i32 = arith.constant 0 : i32
    %c0_i32_0 = arith.constant 0 : i32
    %c0_i32_1 = arith.constant 0 : i32
    return %arg0, %c0_i32, %c0_i32_0 : i32, i32, i32
  }
}

</mosaic_0001>

<bundles_post_ra>
// kernel: forward.1
= control target key start
LH: loop header
LB: loop body
LE: loop exit
PB: predicated region body
PF: predicated region fallthrough
CT: control target
= control target key end

     0   :  { %s8556_s0 = inlined_call_operand.vmem [shape: f32[8,8,24], index: 0, kind: input, shape index: {}]   ;;  %s8557_s1 = inlined_call_operand.vmem [shape: f32[1,24], index: 1, kind: input, shape index: {}]   ;;  %s8558_s2 = inlined_call_operand.hbm [shape: bf16[3,24,64], index: 2, kind: input, shape index: {}]   ;;  %s8559_s3 = inlined_call_operand.vmem [shape: f32[1,64], index: 3, kind: input, shape index: {}]   ;;  %s8560_s4 = inlined_call_operand.hbm [shape: bf16[2,3,64,64], index: 4, kind: input, shape index: {}]   ;;  %s8561_s5 = inlined_call_operand.vmem [shape: f32[2,1,64], index: 5, kind: input, shape index: {}]   ;;  %s8562_s6 = inlined_call_operand.vmem [shape: bf16[2,3,64,64], index: 6, kind: input, shape index: {}]   ;;  %s8563_s7 = inlined_call_operand.vmem [shape: f32[2,1,64], index: 7, kind: input, shape index: {}]   ;;  %s8564_s8 = inlined_call_operand.hbm [shape: bf16[3,64,64], index: 8, kind: input, shape index: {}]   ;;  %s8565_s9 = inlined_call_operand.vmem [shape: f32[1,64], index: 9, kind: input, shape index: {}]   ;;  %s8566_s10 = inlined_call_operand.hbm [shape: bf16[3,64,128], index: 10, kind: input, shape index: {}]   ;;  %s8567_s11 = inlined_call_operand.vmem [shape: f32[1,128], index: 11, kind: input, shape index: {}]   ;;  %s8568_s12 = inlined_call_operand.hbm [shape: bf16[3,64,128], index: 12, kind: input, shape index: {}]   ;;  %s8569_s13 = inlined_call_operand.vmem [shape: f32[1,128], index: 13, kind: input, shape index: {}]   ;;  %s8570_s14 = inlined_call_operand.vmem [shape: f32[64,64], index: 14, kind: input, shape index: {}]   ;;  %s8571_s15 = inlined_call_operand.hbm [shape: bf16[384,256], index: 15, kind: input, shape index: {}]   ;;  %s8572_s16 = inlined_call_operand.vmem [shape: f32[1,256], index: 16, kind: input, shape index: {}]   ;;  %s8573_s17 = inlined_call_operand.hbm [shape: bf16[384,256], index: 17, kind: input, shape index: {}]   ;;  %s8574_s18 = inlined_call_operand.vmem [shape: f32[1,256], index: 18, kind: input, shape index: {}]   ;;  %s8575_s19 = inlined_call_operand.hbm [shape: f32[128,128], index: 19, kind: input, shape index: {}]   ;;  %s8576_s20 = inlined_call_operand.vmem [shape: bf16[768,96], index: 20, kind: input, shape index: {}]   ;;  %s8577_s21 = inlined_call_operand.vmem [shape: f32[1,96], index: 21, kind: input, shape index: {}]   ;;  %s8578_s22 = inlined_call_operand.vmem [shape: f32[8,32,96], index: 22, kind: output, shape index: {}]  }
   0x1   :  { %8605 = sst [smem:[#allocation61_spill]] %s8556_s0 }
   0x2   :  { %8606 = sst [smem:[#allocation62_spill]] %s8557_s1 }
   0x3   :  { %8607 = sst [smem:[#allocation63_spill]] %s8558_s2 }
   0x4   :  { %8608 = sst [smem:[#allocation64_spill]] %s8559_s3 }
   0x5   :  { %8609 = sst [smem:[#allocation65_spill]] %s8560_s4 }
   0x6   :  { %8610 = sst [smem:[#allocation66_spill]] %s8561_s5 }
   0x7   :  { %8611 = sst [smem:[#allocation67_spill]] %s8562_s6 }
   0x8   :  { %8612 = sst [smem:[#allocation68_spill]] %s8566_s10 }
   0x9   :  { %8613 = sst [smem:[#allocation69_spill]] %s8571_s15 }
   0xa   :  { %8614 = sst [smem:[#allocation70_spill]] %s8576_s20 }
   0xb   :  { %8615 = sst [smem:[#allocation71_spill]] %s8577_s21 }
   0xc   :  { %27 = vsyncpa [#allocation3], 0 }
   0xd   :  { %28 = vsyncpa [#allocation5], 0 }
   0xe   :  { %29 = vsyncpa [#allocation8], 0 }
   0xf   :  { %30 = vsyncpa [#allocation11], 0 }
  0x10   :  { %31 = vsyncpa [#allocation14], 0  ;;  %s6796_s3 = smov 0  }
  0x11 LB: > { %s8580_s28 = sadd.s32 4294967295, %s6646_s3   ;;  %p4886_p0 = scmp.ge.s32.totalorder %s6646_s3, 1  ;;  %s6646_s3 = sphi %s6796_s3, %s37_s3  }
  0x12   : > { %p535_p1 = scmp.lt.s32.totalorder %s6646_s3, 3  ;;  %p6806_p2 = scmp.eq.s32.totalorder %s8580_s28, 0 }
  0x13   : > { %s8617_s0 = sld [smem:[#allocation65_spill]]  ;;  %s6668_s25 = smov [#allocation4]  }
  0x14   : > { %p6813_p3 = pnand %p4886_p0, %p535_p1  ;;  %s8619_s10 = sld [smem:[#allocation68_spill]] }
  0x15   : > { %s568_s26 = sshll.u32 %s6668_s25, 4  ;;  %s6669_s27 = smov [#allocation7]   ;;  %s569_s26 = int_to_ptr.vmem [resolvable:$true] %s568_s26 }
  0x16   : > { %p6250_p4 = pneg %p6813_p3  ;;  %s608_s30 = sshll.u32 %s6669_s27, 4  ;;  %s609_s30 = int_to_ptr.vmem [resolvable:$true] %s608_s30 }
  0x17   : > { %s8621_s15 = sld [smem:[#allocation69_spill]]  ;;  %s6670_s24 = smov 64  }
  0x18   : > { %p6824_p5 = pnand %p6806_p2, %p6250_p4  ;;  %s6671_s28 = smov 4  }
  0x19   : > { %s566_s23 = sshll.u32 %s8617_s0, 4  ;;  %s6672_s25 = smov [#allocation10]   ;;  %s567_s23 = int_to_ptr.hbm [resolvable:$true] %s566_s23 }
  0x1a   : > { %s606_s6 = sshll.u32 %s8619_s10, 4  ;;  %s645_s27 = sshll.u32 %s6672_s25, 4  ;;  %s607_s6 = int_to_ptr.hbm [resolvable:$true] %s606_s6  ;;  %s646_s27 = int_to_ptr.vmem [resolvable:$true] %s645_s27 }
  0x1b   : > { %6256 = dma.hbm_to_vmem [thread:$0]  (!%p6824_p5), %s567_s23, 3072, %s569_s26, [#allocation5], %s6670_s24, %s6670_s24, %s6671_s28  }
  0x1c   : > { %6262 = dma.hbm_to_vmem [thread:$0]  (!%p6824_p5), %s607_s6, 1536, %s609_s30, [#allocation8], %s6670_s24, %s6670_s24, %s6671_s28  }
  0x1d   : > { %s643_s5 = sshll.u32 %s8621_s15, 4  ;;  %s8582_s4 = smov 128   ;;  %s644_s5 = int_to_ptr.hbm [resolvable:$true] %s643_s5 }
  0x1e   : > { %s6674_s0 = smov 8   ;;  %s8622_s23 = sld [smem:[#allocation63_spill]] }
  0x1f   : > { %6268 = dma.hbm_to_vmem [thread:$0]  (!%p6824_p5), %s644_s5, 6144, %s646_s27, [#allocation11], %s8582_s4, %s8582_s4, %s6674_s0  }
  0x20   : > { %s6675_s21 = smov [#allocation2]   ;;  %s589_s25 = sshll.u32 %s8564_s8, 4  ;;  %s590_s25 = int_to_ptr.hbm [resolvable:$true] %s589_s25 }
  0x21   : > { %s551_s20 = sshll.u32 %s6675_s21, 4  ;;  %s6676_s5 = smov [#allocation6]   ;;  %s552_s20 = int_to_ptr.vmem [resolvable:$true] %s551_s20 }
  0x22   : > { %s591_s27 = sshll.u32 %s6676_s5, 4  ;;  %s6678_s5 = smov [#allocation12]   ;;  %s592_s27 = int_to_ptr.vmem [resolvable:$true] %s591_s27 }
  0x23   : > { %6259 = dma.hbm_to_vmem [thread:$0]  (!%p6824_p5), %s590_s25, 1536, %s592_s27, [#allocation5], %s6670_s24, %s6670_s24, %s6671_s28  }
  0x24   : > { %s549_s26 = sshll.u32 %s8622_s23, 4  ;;  %s623_s23 = sshll.u32 %s8568_s12, 4  ;;  %s550_s26 = int_to_ptr.hbm [resolvable:$true] %s549_s26  ;;  %s624_s23 = int_to_ptr.hbm [resolvable:$true] %s623_s23 }
  0x25   : > { %6253 = dma.hbm_to_vmem [thread:$0]  (!%p6824_p5), %s550_s26, 576, %s552_s20, [#allocation3], %s6670_s24, %s6670_s24, %s6671_s28  }
  0x26   : > { %s660_s20 = sshll.u32 %s8573_s17, 4  ;;  %s6677_s26 = smov [#allocation9]   ;;  %s661_s20 = int_to_ptr.hbm [resolvable:$true] %s660_s20 }
  0x27   : > { %s625_s30 = sshll.u32 %s6677_s26, 4  ;;  %s662_s10 = sshll.u32 %s6678_s5, 4  ;;  %s626_s30 = int_to_ptr.vmem [resolvable:$true] %s625_s30  ;;  %s663_s10 = int_to_ptr.vmem [resolvable:$true] %s662_s10 }
  0x28   : > { %6265 = dma.hbm_to_vmem [thread:$0]  (!%p6824_p5), %s624_s23, 1536, %s626_s30, [#allocation8], %s6670_s24, %s6670_s24, %s6671_s28  }
  0x29   : > { %s677_s25 = sshll.u32 %s8575_s19, 4  ;;  %s8623_s27 = smov 128   ;;  %s678_s25 = int_to_ptr.hbm [resolvable:$true] %s677_s25 }
  0x2a   : > { %6271 = dma.hbm_to_vmem [thread:$0]  (!%p6824_p5), %s661_s20, 6144, %s663_s10, [#allocation11], %s8623_s27, %s8623_s27, %s6674_s0  }
  0x2b   : > { %s6679_s21 = smov [#allocation13]   ;;  %710 = sbr.rel (%p6813_p3) target bundleno = 2177 (0x881), region = 108 }
  0x2c   : > { %s679_s6 = sshll.u32 %s6679_s21, 4  ;;  %s680_s6 = int_to_ptr.vmem [resolvable:$true] %s679_s6 }
  0x2d   : > { %6274 = dma.hbm_to_vmem [thread:$0]  (!%p6824_p5), %s678_s25, 2048, %s680_s6, [#allocation14], %s8623_s27, %s8623_s27, %s6674_s0  }
  0x30   : > { %6625 = dma.done.wait (%p6806_p2), [#allocation3], 576  }
  0x31   : > { %6627 = vsyncadd (%p6806_p2), [#allocation3], 4294966720 }
  0x32   : > { %6629 = dma.done.wait (%p6806_p2), [#allocation5], 4608  }
  0x33   : > { %6631 = vsyncadd (%p6806_p2), [#allocation5], 4294962688 }
  0x34   : > { %6633 = dma.done.wait (%p6806_p2), [#allocation8], 3072  }
  0x35   : > { %6635 = vsyncadd (%p6806_p2), [#allocation8], 4294964224 }
  0x36   : > { %6637 = dma.done.wait (%p6806_p2), [#allocation11], 12288  }
  0x37   : > { %6639 = vsyncadd (%p6806_p2), [#allocation11], 4294955008 }
  0x38   : > { %6641 = dma.done.wait (%p6806_p2), [#allocation14], 2048  }
  0x39   : > { %6643 = vsyncadd (%p6806_p2), [#allocation14], 4294965248  ;;  %s8624_s28 = sadd.s32 4294967295, %s6646_s3   ;;  %v845_v0 = vlaneseq  ;;  %s8626_s23 = sld [smem:[#allocation61_spill]]  ;;  %v840_v3 = vld [vmem:[#allocation2 + $0x14] sm:$0xf] }
  0x3a   : > { %s4905_s1 = sshll.u32 %s8624_s28, 2  ;;  %v837_v4 = vld [vmem:[#allocation2 + $0x8] sm:$0xf]  ;;  %v843_v5 = vld [vmem:[#allocation2 + $0x20] sm:$0xf]  ;;  %v957_v6 = vunpack.c.l.b16 %v840_v3  ;;  %vm968_vm0 = vcmask 1043456  }
  0x3b   : > { %p810_p6 = scmp.lt.s32.totalorder %s4905_s1, 7  ;;  %v6910_v1 = vshrl.u32 %v845_v0, 7  ;;  %v996_v7 = vunpack.c.l.b16 %v837_v4  ;;  %v1035_v8 = vunpack.c.l.b16 %v843_v5  ;;  %s8627_s15 = sld [smem:[#allocation62_spill]]  ;;  %v5980_v23 = vld [vmem:[#allocation2 + $0xc] sm:$0xff]  ;;  %v5979_v24 = vld [vmem:[#allocation2] sm:$0xff]  ;;  %v5981_v28 = vld [vmem:[#allocation2 + $0x18] sm:$0xff] }
  0x3c   : > { %v959_v11 = vpack.c.b16 %v957_v6, %v957_v6  ;;  %vm961_vm7 = vcmask 195584   ;;  %s8645_s21 = sld [smem:[#allocation64_spill]]  ;;  %s7031_s6 = smov 0  }
  0x3d   : > { %8625 = vst [vmem:[#allocation20_spill] sm:$0xff] %v6910_v1  ;;  %s8815_s1 = smov (!%p810_p6, %s4905_s1), 7  ;;  %v6921_v2 = vadd.s32 8, %v6910_v1  ;;  %v998_v12 = vpack.c.b16 %v996_v7, %v996_v7  ;;  %v1037_v13 = vpack.c.b16 %v1035_v8, %v1035_v8  ;;  %v854_v16 = vand.u32 7, %v6910_v1 }
  0x3e   : > { %s4906_s2 = sshll.u32 %s8815_s1, 3  ;;  %s5978_s24 = sshll.u32 %s8815_s1, 5  ;;  %vm906_vm1 = vcmp.lt.s32.totalorder %v6910_v1, 1  ;;  %v970_v19 = vsel %vm968_vm0, %v959_v11, 0  ;;  %vm931_vm2 = vcmp.lt.s32.totalorder %v6910_v1, 7  ;;  %v6963_v50 = vadd.s32 16, %v6910_v1 }
  0x3f   : > { %s813_s20 = scalar_lea.vmem %s8626_s23, %s4906_s2  ;;  %s6918_s5 = scalar_lea.vmem %s8578_s22, %s5978_s24  ;;  %v861_v18 = vand.u32 7, %v6921_v2  ;;  %v1007_v20 = vsel %vm968_vm0, %v998_v12, 0  ;;  %v1046_v21 = vsel %vm968_vm0, %v1037_v13, 0  ;;  %978 = vmatpush.bf16.msra.mxu0 %v970_v19  ;;  %6204 = vmatpush.bf16.msra.mxu3 %v970_v19  ;;  %vm6930_vm3 = vcmp.eq.s32.totalorder %v854_v16, 0 }
  0x40   : > { %v823_v9 = vld [vmem:[%s813_s20] sm:$0xff]  ;;  %v824_v10 = vld [vmem:[%s813_s20 + $0x8] sm:$0xff]  ;;  %v826_v15 = vld [vmem:[%s813_s20 + $0x18] sm:$0xff]  ;;  %1015 = vmatpush.bf16.msra.mxu1 %v1007_v20  ;;  %1054 = vmatpush.bf16.msra.mxu2 %v1046_v21  ;;  %vm6934_vm4 = vcmp.eq.s32.totalorder %v854_v16, 7  ;;  %v6966_v51 = vadd.s32 24, %v6910_v1  ;;  %v868_v53 = vand.u32 7, %v6963_v50 }
  0x41   : > { %v6352_v14 = vld [vmem:[%s8627_s15] ss:$0 sm:$0xff]  ;;  %v825_v17 = vld [vmem:[%s813_s20 + $0x10] sm:$0xff]  ;;  %vm6938_vm5 = vcmp.eq.s32.totalorder %v861_v18, 0  ;;  %vm6942_vm6 = vcmp.eq.s32.totalorder %v861_v18, 7 }
  0x42   : > { %v831_v22 = vsub.f32 %v823_v9, %v6352_v14  ;;  %v832_v25 = vsub.f32 %v824_v10, %v6352_v14  ;;  %v834_v26 = vsub.f32 %v826_v15, %v6352_v14  ;;  %v833_v27 = vsub.f32 %v825_v17, %v6352_v14  ;;  %8636 = vst [vmem:[#allocation21_spill] sm:$0xff] %v6966_v51  ;;  %v6353_v12 = vld [vmem:[%s8645_s21] ss:$0 sm:$0xff] }
  0x43   : > { %979 = vmatpush.bf16.msra.mxu0 %v5980_v23  ;;  %6205 = vmatpush.bf16.msra.mxu3 %v5980_v23  ;;  %v875_v54 = vand.u32 7, %v6966_v51  ;;  %vm6974_vm8 = vcmp.eq.s32.totalorder %v868_v53, 0  ;;  %vm6986_vm10 = vcmp.eq.s32.totalorder %v868_v53, 7 }
  0x44   : > { %v902_v30 = vrot.slane %v831_v22, 7  ;;  %v927_v32 = vrot.slane %v831_v22, 1  ;;  %v903_v34 = vrot.slane %v832_v25, 7  ;;  %v905_v35 = vrot.slane %v834_v26, 7  ;;  %1016 = vmatpush.bf16.msra.mxu1 %v5979_v24  ;;  %1055 = vmatpush.bf16.msra.mxu2 %v5981_v28 }
  0x45   : > { %v928_v36 = vrot.slane %v832_v25, 1  ;;  %v950_v37 = vpack.c.bf16 %v832_v25, %v831_v22  ;;  %v929_v39 = vrot.slane %v833_v27, 1  ;;  %v951_v40 = vpack.c.bf16 %v834_v26, %v833_v27 }
  0x46   : > { %v909_v41 = vsel %vm906_vm1, %v902_v30, %v903_v34  ;;  %v910_v42 = vsel %vm906_vm1, %v905_v35, %v902_v30  ;;  %v904_v55 = vrot.slane %v833_v27, 7  ;;  %v930_v56 = vrot.slane %v834_v26, 1 }
  0x47   : > { %v934_v43 = vsel %vm931_vm2, %v927_v32, %v928_v36  ;;  %v919_v44 = vsel %vm6930_vm3, 0.0, %v910_v42  ;;  %v920_v45 = vsel %vm6938_vm5, 0.0, %v909_v41  ;;  %v933_v46 = vsel %vm931_vm2, %v928_v36, %v929_v39  ;;  %4914 = vmatmul.msk.bf16.vlgmr.msra.gmra.mxu0 %vm961_vm7, %v950_v37  ;;  %4915 = vmatmul.msk.bf16.vlgmr.msra.gmra.mxu3 %vm961_vm7, %v951_v40 }
  0x48   : > { %v944_v47 = vsel %vm6934_vm4, 0.0, %v934_v43  ;;  %v948_v48 = vpack.c.bf16 %v920_v45, %v919_v44  ;;  %v945_v49 = vsel %vm6942_vm6, 0.0, %v933_v46  ;;  %vm6978_vm9 = vcmp.eq.s32.totalorder %v875_v54, 0 }
  0x49   : > { %v1028_v52 = vpack.c.bf16 %v945_v49, %v944_v47  ;;  %v907_v59 = vsel %vm906_vm1, %v904_v55, %v905_v35  ;;  %v908_v60 = vsel %vm906_vm1, %v903_v34, %v904_v55  ;;  %vm6990_vm11 = vcmp.eq.s32.totalorder %v875_v54, 7 }
  0x4a   : > { %4920 = vmatmul.msk.bf16.vlgmr.msra.gmra.mxu1 %vm961_vm7, %v948_v48  ;;  %v932_v63 = vsel %vm931_vm2, %v929_v39, %v930_v56  ;;  %v935_v0 = vsel %vm931_vm2, %v930_v56, %v927_v32  ;;  %v921_v3 = vsel %vm6974_vm8, 0.0, %v908_v60  ;;  %v922_v4 = vsel %vm6978_vm9, 0.0, %v907_v59 }
  0x4b   : > { %4926 = vmatmul.msk.bf16.vlgmr.msra.gmra.mxu2 %vm961_vm7, %v1028_v52  ;;  %v946_v5 = vsel %vm6986_vm10, 0.0, %v932_v63  ;;  %v947_v6 = vsel %vm6990_vm11, 0.0, %v935_v0  ;;  %v949_v7 = vpack.c.bf16 %v922_v4, %v921_v3 }
  0x4c   : > { %v1029_v8 = vpack.c.bf16 %v947_v6, %v946_v5 }
  0x5a   : > { %4921 = vmatmul.msk.bf16.gmra.mxu1 %vm961_vm7, %v949_v7 }
  0x5b   : > { %4927 = vmatmul.msk.bf16.gmra.mxu2 %vm961_vm7, %v1029_v8 }
  0xc4   : > { %v981_v10 = vpop.f32.mrf.mxu0 }
  0xc7   : > { %v1018_v9 = vpop.f32.mrf.mxu1 }
  0xc8   : > { %v1019_v11 = vadd.f32 %v1018_v9, %v981_v10 }
  0xca   : > { %v986_v23 = vpop.f32.mrf.mxu3 }
  0xcc   : > { %v983_v17 = vpop.f32.mrf.mxu0 }
  0xce   : > { %v1057_v13 = vpop.f32.mrf.mxu2 }
  0xcf   : > { %v1067_v14 = vadd.f32 %v1057_v13, %v1019_v11  ;;  %v1020_v15 = vpop.f32.mrf.mxu1 }
  0xd0   : > { %v1021_v18 = vadd.f32 %v1020_v15, %v983_v17 }
  0xd1   : > { %v7011_v16 = vadd.f32 %v6353_v12, %v1067_v14  }
  0xd2   : > { %v988_v30 = vpop.f32.mrf.mxu3 }
  0xd3   : > { %v8649_v41 = vmov %v7011_v16 }
  0xd6   : > { %v1059_v19 = vpop.f32.mrf.mxu2 }
  0xd7   : > { %v1068_v20 = vadd.f32 %v1059_v19, %v1021_v18  ;;  %v1023_v21 = vpop.f32.mrf.mxu1 }
  0xd8   : > { %v1024_v24 = vadd.f32 %v1023_v21, %v986_v23 }
  0xd9   : > { %v7013_v22 = vadd.f32 %v6353_v12, %v1068_v20  }
  0xdb   : > { %v8648_v40 = vmov %v7013_v22 }
  0xde   : > { %v1062_v25 = vpop.f32.mrf.mxu2 }
  0xdf   : > { %v1069_v26 = vadd.f32 %v1062_v25, %v1024_v24  ;;  %v1025_v28 = vpop.f32.mrf.mxu1 }
  0xe0   : > { %v1026_v32 = vadd.f32 %v1025_v28, %v988_v30 }
  0xe1   : > { %v7015_v27 = vadd.f32 %v6353_v12, %v1069_v26  }
  0xe3   : > { %v8647_v39 = vmov %v7015_v27 }
  0xe6   : > { %v1064_v34 = vpop.f32.mrf.mxu2 }
  0xe7   : > { %v1070_v35 = vadd.f32 %v1064_v34, %v1026_v32 }
  0xe9   : > { %v7017_v36 = vadd.f32 %v6353_v12, %v1070_v35  }
  0xeb   : > { %v8646_v37 = vmov %v7017_v36 }
  0xec LB: >> { %s5982_s28 = smul.u32 96, %s6666_s6  ;;  %v1118_v46 = vrot.slane %v6658_v40, 7  ;;  %v1119_v47 = vrot.slane %v6654_v39, 7  ;;  %v1120_v48 = vrot.slane %v6650_v37, 7  ;;  %v1117_v49 = vrot.slane %v6662_v41, 7  ;;  %s8650_s4 = sld [smem:[#allocation66_spill]]  ;;  %s6666_s6 = sphi %s7031_s6, %s1083_s6   ;;  %v6662_v41 = vphi %v8649_v41, %v8659_v41   ;;  %v6658_v40 = vphi %v8648_v40, %v8658_v40   ;;  %v6654_v39 = vphi %v8647_v39, %v8657_v39   ;;  %v6650_v37 = vphi %v8646_v37, %v8656_v37  }
  0xed   : >> { %v1144_v7 = vpack.c.bf16 %v6650_v37, %v6654_v39  ;;  %vm1169_vm12 = vcmask 523264   ;;  %v1143_v9 = vpack.c.bf16 %v6658_v40, %v6662_v41  ;;  %v1129_v13 = vrot.slane %v6662_v41, 1  ;;  %s8651_s26 = sld [smem:[#allocation67_spill]]  ;;  %s1336_s27 = scalar_lea.vmem %s8563_s7, %s6666_s6 }
  0xee   : >> { %s7051_s1 = scalar_lea.vmem [#allocation4], %s5982_s28  ;;  %v1121_v54 = vsel %vm906_vm1, %v1119_v47, %v1120_v48  ;;  %v1122_v55 = vsel %vm906_vm1, %v1118_v46, %v1119_v47  ;;  %v1123_v56 = vsel %vm906_vm1, %v1117_v49, %v1118_v46  ;;  %v1124_v59 = vsel %vm906_vm1, %v1120_v48, %v1117_v49 }
  0xef   : >> { %v5990_v42 = vld [vmem:[%s7051_s1 + $0x38] sm:$0xff]  ;;  %v5989_v44 = vld [vmem:[%s7051_s1 + $0x30] sm:$0xff]  ;;  %v5988_v52 = vld [vmem:[%s7051_s1 + $0x28] sm:$0xff]  ;;  %v1127_v0 = vsel %vm6974_vm8, 0.0, %v1122_v55  ;;  %v1128_v3 = vsel %vm6978_vm9, 0.0, %v1121_v54  ;;  %v1125_v5 = vsel %vm6930_vm3, 0.0, %v1124_v59 }
  0xf0   : >> { %v5986_v43 = vld [vmem:[%s7051_s1 + $0x18] sm:$0xff]  ;;  %6206 = vmatpush.bf16.msra.mxu2 %v5990_v42  ;;  %v5985_v45 = vld [vmem:[%s7051_s1 + $0x10] sm:$0xff]  ;;  %1180 = vmatpush.bf16.msra.mxu0 %v5990_v42  ;;  %v5984_v53 = vld [vmem:[%s7051_s1 + $0x8] sm:$0xff]  ;;  %v1126_v6 = vsel %vm6938_vm5, 0.0, %v1123_v56  ;;  %v1142_v8 = vpack.c.bf16 %v1128_v3, %v1127_v0  ;;  %v1130_v14 = vrot.slane %v6658_v40, 1  ;;  %v1131_v15 = vrot.slane %v6654_v39, 1 }
  0xf1   : >> { %6210 = vmatpush.bf16.msra.mxu3 %v5986_v43  ;;  %1229 = vmatpush.bf16.msra.mxu1 %v5986_v43  ;;  %v5987_v60 = vld [vmem:[%s7051_s1 + $0x20] sm:$0xff]  ;;  %v5994_v4 = vld [vmem:[%s7051_s1 + $0x58] sm:$0xff]  ;;  %v5993_v10 = vld [vmem:[%s7051_s1 + $0x50] sm:$0xff]  ;;  %v1141_v11 = vpack.c.bf16 %v1126_v6, %v1125_v5  ;;  %v1132_v24 = vrot.slane %v6650_v37, 1 }
  0xf2   : >> { %v5983_v63 = vld [vmem:[%s7051_s1] sm:$0xff]  ;;  %v5992_v12 = vld [vmem:[%s7051_s1 + $0x48] sm:$0xff]  ;;  %v1134_v18 = vsel %vm931_vm2, %v1130_v14, %v1131_v15  ;;  %v1135_v19 = vsel %vm931_vm2, %v1129_v13, %v1130_v14  ;;  %s1115_s0 = scalar_lea.vmem %s8650_s4, %s6666_s6  ;;  %s1083_s6 = sadd.s32 1, %s6666_s6  }
  0xf3   : >> { %v5991_v17 = vld [vmem:[%s7051_s1 + $0x40] sm:$0xff]  ;;  %v1137_v20 = vsel %vm6934_vm4, 0.0, %v1135_v19  ;;  %v1138_v21 = vsel %vm6942_vm6, 0.0, %v1134_v18  ;;  %v1133_v25 = vsel %vm931_vm2, %v1131_v15, %v1132_v24  ;;  %v1136_v26 = vsel %vm931_vm2, %v1132_v24, %v1129_v13  ;;  %s1311_s30 = scalar_lea.vmem %s8651_s26, %s5982_s28  ;;  %p1080_p7 = scmp.ge.s32.totalorder %s1083_s6, 2  }
  0xf4   : >> { %6207 = vmatpush.bf16.msra.mxu2 %v5989_v44  ;;  %1181 = vmatpush.bf16.msra.mxu0 %v5989_v44  ;;  %v1244_v23 = vpack.c.bf16 %v1138_v21, %v1137_v20  ;;  %v1139_v28 = vsel %vm6986_vm10, 0.0, %v1133_v25  ;;  %v1140_v30 = vsel %vm6990_vm11, 0.0, %v1136_v26  ;;  %v6003_v34 = vld [vmem:[%s1311_s30 + $0x38] sm:$0xff]  ;;  %v6002_v35 = vld [vmem:[%s1311_s30 + $0x30] sm:$0xff]  ;;  %v6001_v42 = vld [vmem:[%s1311_s30 + $0x28] sm:$0xff]  ;;  %vm6680_vm14 = vmmov (%p1080_p7), 1  }
  0xf5   : >> { %6211 = vmatpush.bf16.msra.mxu3 %v5985_v45  ;;  %1230 = vmatpush.bf16.msra.mxu1 %v5985_v45  ;;  %v1245_v32 = vpack.c.bf16 %v1140_v30, %v1139_v28  ;;  %v6000_v43 = vld [vmem:[%s1311_s30 + $0x20] sm:$0xff]  ;;  %v6007_v44 = vld [vmem:[%s1311_s30 + $0x58] sm:$0xff]  ;;  %v6006_v46 = vld [vmem:[%s1311_s30 + $0x50] sm:$0xff]  ;;  %s8756_s25 = sld [smem:[#allocation70_spill]] (%p1080_p7) }
  0xf6   : >> { %v5999_v47 = vld [vmem:[%s1311_s30 + $0x18] sm:$0xff]  ;;  %v6005_v48 = vld [vmem:[%s1311_s30 + $0x48] sm:$0xff]  ;;  %v5998_v54 = vld [vmem:[%s1311_s30 + $0x10] sm:$0xff]  ;;  %s8784_s24 = sld [smem:[#allocation71_spill]] (%p1080_p7) }
  0xf7   : >> { %v6004_v55 = vld [vmem:[%s1311_s30 + $0x40] sm:$0xff]  ;;  %v5997_v56 = vld [vmem:[%s1311_s30 + $0x8] sm:$0xff] }
  0xf8   : >> { %6208 = vmatpush.bf16.msra.mxu2 %v5988_v52  ;;  %1182 = vmatpush.bf16.msra.mxu0 %v5988_v52  ;;  %v6354_v5 = vld [vmem:[%s1115_s0] ss:$0 sm:$0xff] }
  0xf9   : >> { %6212 = vmatpush.bf16.msra.mxu3 %v5984_v53  ;;  %1231 = vmatpush.bf16.msra.mxu1 %v5984_v53 }
  0xfc   : >> { %6209 = vmatpush.bf16.msra.mxu2 %v5987_v60  ;;  %1183 = vmatpush.bf16.msra.mxu0 %v5987_v60  ;;  %v5996_v60 = vld [vmem:[%s1311_s30] sm:$0xff] }
  0xfd   : >> { %6213 = vmatpush.bf16.msra.mxu3 %v5983_v63  ;;  %1232 = vmatpush.bf16.msra.mxu1 %v5983_v63 }
  0xff   : >> { %4946 = vmatmul.msk.bf16.vlgmr.msra.gmra.mxu2 %vm1169_vm12, %v1144_v7  ;;  %4945 = vmatmul.msk.bf16.vlgmr.msra.gmra.mxu0 %vm1169_vm12, %v1143_v9 }
 0x100   : >> { %1280 = vmatpush.bf16.msrb.mxu2 %v5994_v4  ;;  %4964 = vmatmul.msk.bf16.vlgmr.msra.gmra.mxu3 %vm1169_vm12, %v1142_v8 }
 0x101   : >> { %4963 = vmatmul.msk.bf16.vlgmr.msra.gmra.mxu1 %vm1169_vm12, %v1141_v11  ;;  %1400 = vmatpush.bf16.msrb.mxu3 %v6003_v34 }
 0x102   : >> { %1500 = vmatpush.bf16.msrb.mxu1 %v6007_v44  ;;  %1449 = vmatpush.bf16.msrb.mxu0 %v5999_v47 }
 0x104   : >> { %1281 = vmatpush.bf16.msrb.mxu2 %v5993_v10 }
 0x105   : >> { %1401 = vmatpush.bf16.msrb.mxu3 %v6002_v35 }
 0x106   : >> { %1501 = vmatpush.bf16.msrb.mxu1 %v6006_v46  ;;  %1450 = vmatpush.bf16.msrb.mxu0 %v5998_v54 }
 0x108   : >> { %1282 = vmatpush.bf16.msrb.mxu2 %v5992_v12 }
 0x109   : >> { %1402 = vmatpush.bf16.msrb.mxu3 %v6001_v42 }
 0x10a   : >> { %1502 = vmatpush.bf16.msrb.mxu1 %v6005_v48  ;;  %1451 = vmatpush.bf16.msrb.mxu0 %v5997_v56 }
 0x10c   : >> { %1283 = vmatpush.bf16.msrb.mxu2 %v5991_v17 }
 0x10d   : >> { %1403 = vmatpush.bf16.msrb.mxu3 %v6000_v43 }
 0x10e   : >> { %1503 = vmatpush.bf16.msrb.mxu1 %v6004_v55  ;;  %1452 = vmatpush.bf16.msrb.mxu0 %v5996_v60 }
 0x10f   : >> { %4981 = vmatmul.msk.bf16.vlgmr.msrb.gmra.mxu2 %vm1169_vm12, %v1244_v23 }
 0x11f   : >> { %4982 = vmatmul.msk.bf16.gmra.mxu2 %vm1169_vm12, %v1245_v32 }
 0x17c   : >> { %v1185_v49 = vpop.f32.mrf.mxu0 }
 0x17e   : >> { %v1234_v53 = vpop.f32.mrf.mxu1 }
 0x17f   : >> { %v1235_v63 = vadd.f32 %v1234_v53, %v1185_v49 }
 0x182   : >> { %v1190_v45 = vpop.f32.mrf.mxu2 }
 0x183   : >> { %v1239_v10 = vpop.f32.mrf.mxu3 }
 0x184   : >> { %v1187_v0 = vpop.f32.mrf.mxu0  ;;  %v1240_v14 = vadd.f32 %v1239_v10, %v1190_v45 }
 0x186   : >> { %v1236_v3 = vpop.f32.mrf.mxu1 }
 0x187   : >> { %v1237_v6 = vadd.f32 %v1236_v3, %v1187_v0 }
 0x18a   : >> { %v1192_v52 = vpop.f32.mrf.mxu2 }
 0x18b   : >> { %v1241_v21 = vpop.f32.mrf.mxu3 }
 0x18c   : >> { %v1242_v25 = vadd.f32 %v1241_v21, %v1192_v52 }
 0x192   : >> { %v1285_v59 = vpop.f32.mrf.mxu2 }
 0x193   : >> { %v1295_v4 = vadd.f32 %v1285_v59, %v1235_v63 }
 0x195   : >> { %v1302_v8 = vadd.f32 %v6354_v5, %v1295_v4 }
 0x197   : >> { %v1306_v12 = vmax.f32 %v1302_v8, 0.0 }
 0x199   : >> { %v1350_v23 = vrot.slane %v1306_v12, 1  ;;  %v1338_v46 = vrot.slane %v1306_v12, 7 }
 0x19a   : >> { %v1287_v7 = vpop.f32.mrf.mxu2 }
 0x19b   : >> { %v1296_v9 = vadd.f32 %v1287_v7, %v1237_v6 }
 0x19d   : >> { %v1303_v11 = vadd.f32 %v6354_v5, %v1296_v9 }
 0x19f   : >> { %v1307_v13 = vmax.f32 %v1303_v11, 0.0 }
 0x1a1   : >> { %v1364_v15 = vpack.c.bf16 %v1307_v13, %v1306_v12  ;;  %v1351_v19 = vrot.slane %v1307_v13, 1  ;;  %v1339_v43 = vrot.slane %v1307_v13, 7 }
 0x1a2   : >> { %v1290_v17 = vpop.f32.mrf.mxu2 }
 0x1a3   : >> { %v1297_v18 = vadd.f32 %v1290_v17, %v1240_v14  ;;  %5000 = vmatmul.msk.bf16.vlgmr.msrb.gmra.mxu3 %vm1169_vm12, %v1364_v15  ;;  %v1356_v28 = vsel %vm931_vm2, %v1350_v23, %v1351_v19  ;;  %v1344_v52 = vsel %vm906_vm1, %v1338_v46, %v1339_v43  ;;  %v6355_v15 = vld [vmem:[%s1336_s27] ss:$0 sm:$0xff] }
 0x1a4   : >> { %v1358_v35 = vsel %vm6934_vm4, 0.0, %v1356_v28  ;;  %v1347_v56 = vsel %vm6938_vm5, 0.0, %v1344_v52 }
 0x1a5   : >> { %v1304_v20 = vadd.f32 %v6354_v5, %v1297_v18 }
 0x1a7   : >> { %v1308_v24 = vmax.f32 %v1304_v20, 0.0 }
 0x1a9   : >> { %v1352_v26 = vrot.slane %v1308_v24, 1 }
 0x1aa   : >> { %v1292_v30 = vpop.f32.mrf.mxu2 }
 0x1ab   : >> { %v1298_v32 = vadd.f32 %v1292_v30, %v1242_v25  ;;  %v1355_v34 = vsel %vm931_vm2, %v1351_v19, %v1352_v26 }
 0x1ac   : >> { %v1359_v42 = vsel %vm6942_vm6, 0.0, %v1355_v34 }
 0x1ad   : >> { %v1305_v44 = vadd.f32 %v6354_v5, %v1298_v32  ;;  %v1464_v45 = vpack.c.bf16 %v1359_v42, %v1358_v35  ;;  %v1340_v5 = vrot.slane %v1308_v24, 7 }
 0x1af   : >> { %v1309_v47 = vmax.f32 %v1305_v44, 0.0  ;;  %5036 = vmatmul.msk.bf16.vlgmr.msrb.gmra.mxu1 %vm1169_vm12, %v1464_v45  ;;  %v1343_v7 = vsel %vm906_vm1, %v1339_v43, %v1340_v5 }
 0x1b0   : >> { %v1348_v9 = vsel %vm6974_vm8, 0.0, %v1343_v7  ;;  %v6019_v7 = vld [vmem:[#allocation6 + $0x58] sm:$0xff] (%p1080_p7) }
 0x1b1   : >> { %v1341_v48 = vrot.slane %v1309_v47, 7  ;;  %v1365_v49 = vpack.c.bf16 %v1309_v47, %v1308_v24  ;;  %v1353_v54 = vrot.slane %v1309_v47, 1 }
 0x1b3   : >> { %5001 = vmatmul.msk.bf16.gmra.mxu3 %vm1169_vm12, %v1365_v49  ;;  %v1345_v53 = vsel %vm906_vm1, %v1341_v48, %v1338_v46  ;;  %v1354_v60 = vsel %vm931_vm2, %v1352_v26, %v1353_v54  ;;  %v1357_v63 = vsel %vm931_vm2, %v1353_v54, %v1350_v23  ;;  %v1342_v6 = vsel %vm906_vm1, %v1340_v5, %v1341_v48  ;;  %v6015_v54 = vld [vmem:[#allocation6 + $0x38] sm:$0xff] (%p1080_p7) }
 0x1b4   : >> { %v1346_v55 = vsel %vm6930_vm3, 0.0, %v1345_v53  ;;  %v1360_v0 = vsel %vm6986_vm10, 0.0, %v1354_v60  ;;  %v1361_v3 = vsel %vm6990_vm11, 0.0, %v1357_v63  ;;  %v1349_v8 = vsel %vm6978_vm9, 0.0, %v1342_v6  ;;  %v6011_v53 = vld [vmem:[#allocation6 + $0x18] sm:$0xff] (%p1080_p7)  ;;  %1618 = vmatpush.bf16.msra.mxu0 (%p1080_p7), %v6015_v54  ;;  %6214 = vmatpush.bf16.msra.mxu3 (%p1080_p7), %v6015_v54  ;;  %v6012_v6 = vld [vmem:[#allocation6 + $0x20] sm:$0xff] (%p1080_p7) }
 0x1b5   : >> { %v1362_v59 = vpack.c.bf16 %v1347_v56, %v1346_v55  ;;  %v1465_v4 = vpack.c.bf16 %v1361_v3, %v1360_v0  ;;  %v1363_v10 = vpack.c.bf16 %v1349_v8, %v1348_v9  ;;  %1667 = vmatpush.bf16.msra.mxu2 (%p1080_p7), %v6011_v53  ;;  %v6010_v55 = vld [vmem:[#allocation6 + $0x10] sm:$0xff] (%p1080_p7)  ;;  %v6009_v0 = vld [vmem:[#allocation6 + $0x8] sm:$0xff] (%p1080_p7) }
 0x1b6   : > { %v6014_v56 = vld [vmem:[#allocation6 + $0x30] sm:$0xff] (%p1080_p7)  ;;  %v6013_v3 = vld [vmem:[#allocation6 + $0x28] sm:$0xff] (%p1080_p7) }
 0x1b7   : >> { %5018 = vmatmul.msk.bf16.vlgmr.msrb.gmra.mxu0 %vm1169_vm12, %v1362_v59  ;;  %v6025_v53 = vld [vmem:[#allocation7 + $0x28] sm:$0xff] (%p1080_p7) }
 0x1b8   : > { %1619 = vmatpush.bf16.msra.mxu0 (%p1080_p7), %v6014_v56  ;;  %6215 = vmatpush.bf16.msra.mxu3 (%p1080_p7), %v6014_v56  ;;  %v6037_v54 = vld [vmem:[#allocation9 + $0x28] sm:$0xff] (%p1080_p7)  ;;  %v6031_v56 = vld [vmem:[#allocation7 + $0x58] sm:$0xff] (%p1080_p7) }
 0x1b9   : > { %1668 = vmatpush.bf16.msra.mxu2 (%p1080_p7), %v6010_v55  ;;  %v6024_v55 = vld [vmem:[#allocation7 + $0x20] sm:$0xff] (%p1080_p7)  ;;  %1935 = vmatpush.bf16.msra.mxu1 (%p1080_p7), %v6031_v56  ;;  %v6041_v56 = vld [vmem:[#allocation9 + $0x48] sm:$0xff] (%p1080_p7) }
 0x1bc   : > { %1620 = vmatpush.bf16.msra.mxu0 (%p1080_p7), %v6013_v3  ;;  %6216 = vmatpush.bf16.msra.mxu3 (%p1080_p7), %v6013_v3  ;;  %v6029_v3 = vld [vmem:[#allocation7 + $0x48] sm:$0xff] (%p1080_p7) }
 0x1bd   : > { %1669 = vmatpush.bf16.msra.mxu2 (%p1080_p7), %v6009_v0  ;;  %v6023_v0 = vld [vmem:[#allocation7 + $0x18] sm:$0xff] (%p1080_p7) }
 0x1bf   : >> { %5037 = vmatmul.msk.bf16.gmra.mxu1 %vm1169_vm12, %v1465_v4 }
 0x1c0   : > { %1621 = vmatpush.bf16.msra.mxu0 (%p1080_p7), %v6012_v6  ;;  %6217 = vmatpush.bf16.msra.mxu3 (%p1080_p7), %v6012_v6 }
 0x1c4   : > { %1884 = vmatpush.bf16.msrb.mxu0 (%p1080_p7), %v6023_v0 }
 0x1c7   : >> { %5019 = vmatmul.msk.bf16.gmra.mxu0 %vm1169_vm12, %v1363_v10 }
 0x226   : >> { %v1405_v11 = vpop.f32.mrf.mxu3 }
 0x22c   : >> { %v1505_v12 = vpop.f32.mrf.mxu1 }
 0x22e   : >> { %v1407_v18 = vpop.f32.mrf.mxu3 }
 0x234   : >> { %v1454_v13 = vpop.f32.mrf.mxu0  ;;  %v1507_v20 = vpop.f32.mrf.mxu1 }
 0x235   : >> { %v1455_v14 = vadd.f32 %v1454_v13, %v1405_v11  ;;  %v6018_v11 = vld [vmem:[#allocation6 + $0x50] sm:$0xff] (%p1080_p7)  ;;  %v6017_v13 = vld [vmem:[#allocation6 + $0x48] sm:$0xff] (%p1080_p7) }
 0x236   : >> { %v1410_v28 = vpop.f32.mrf.mxu3 }
 0x237   : >> { %v1515_v17 = vadd.f32 %v1505_v12, %v1455_v14 }
 0x239   : >> { %v1522_v19 = vadd.f32 %v6355_v15, %v1515_v17  ;;  %v6016_v17 = vld [vmem:[#allocation6 + $0x40] sm:$0xff] (%p1080_p7) }
 0x23b   : >> { %v7177_v41 = vadd.f32 %v6662_v41, %v1522_v19  }
 0x23c   : >> { %v1456_v23 = vpop.f32.mrf.mxu0  ;;  %v1510_v32 = vpop.f32.mrf.mxu1 }
 0x23d   : >> { %v8652_v21 = vmov %v7177_v41  ;;  %v1457_v24 = vadd.f32 %v1456_v23, %v1407_v18 }
 0x23e   : >> { %v1412_v45 = vpop.f32.mrf.mxu3  ;;  %v1555_v59 = vrot.slane (%p1080_p7), %v8652_v21, 7  ;;  %v1567_v23 = vrot.slane (%p1080_p7), %v8652_v21, 1 }
 0x23f   : >> { %v1516_v25 = vadd.f32 %v1507_v20, %v1457_v24 }
 0x241   : >> { %v1523_v26 = vadd.f32 %v6355_v15, %v1516_v25 }
 0x243   : >> { %v7180_v40 = vadd.f32 %v6658_v40, %v1523_v26  }
 0x244   : >> { %v1459_v34 = vpop.f32.mrf.mxu0  ;;  %v1512_v41 = vpop.f32.mrf.mxu1 }
 0x245   : >> { %v8653_v30 = vmov %v7180_v40  ;;  %v1460_v35 = vadd.f32 %v1459_v34, %v1410_v28 }
 0x246   : >> { %v8658_v40 = vmov %v8653_v30  ;;  %v1556_v60 = vrot.slane (%p1080_p7), %v8653_v30, 7  ;;  %v1581_v9 = vpack.c.bf16 (%p1080_p7), %v8653_v30, %v8652_v21  ;;  %v1568_v24 = vrot.slane (%p1080_p7), %v8653_v30, 1 }
 0x247   : >> { %v1517_v42 = vadd.f32 %v1510_v32, %v1460_v35 }
 0x248   : > { %v1561_v4 = vsel (%p1080_p7), %vm906_vm1, %v1555_v59, %v1556_v60  ;;  %5054 = vmatmul.msk.bf16.vlgmr.msra.gmra.mxu0 (%p1080_p7), %vm1169_vm12, %v1581_v9  ;;  %v1573_v28 = vsel (%p1080_p7), %vm931_vm2, %v1567_v23, %v1568_v24 }
 0x249   : >> { %v1524_v43 = vadd.f32 %v6355_v15, %v1517_v42  ;;  %v1564_v5 = vsel (%p1080_p7), %vm6938_vm5, 0.0, %v1561_v4  ;;  %v1575_v32 = vsel (%p1080_p7), %vm6934_vm4, 0.0, %v1573_v28 }
 0x24b   : >> { %v7183_v39 = vadd.f32 %v6654_v39, %v1524_v43  }
 0x24c   : >> { %v1461_v46 = vpop.f32.mrf.mxu0 }
 0x24d   : >> { %v8654_v44 = vmov %v7183_v39  ;;  %v1462_v47 = vadd.f32 %v1461_v46, %v1412_v45 }
 0x24e   : >> { %v8657_v39 = vmov %v8654_v44  ;;  %v1557_v12 = vrot.slane (%p1080_p7), %v8654_v44, 7  ;;  %v1569_v25 = vrot.slane (%p1080_p7), %v8654_v44, 1 }
 0x24f   : >> { %v1518_v48 = vadd.f32 %v1512_v41, %v1462_v47  ;;  %v8659_v41 = vmov %v8652_v21  ;;  %v6008_v39 = vld [vmem:[#allocation6] sm:$0xff] (%p1080_p7)  ;;  %v6027_v47 = vld [vmem:[#allocation7 + $0x38] sm:$0xff] (%p1080_p7) }
 0x250   : > { %1670 = vmatpush.bf16.msra.mxu2 (%p1080_p7), %v6008_v39  ;;  %v1572_v26 = vsel (%p1080_p7), %vm931_vm2, %v1568_v24, %v1569_v25  ;;  %v6039_v41 = vld [vmem:[#allocation9 + $0x38] sm:$0xff] (%p1080_p7)  ;;  %1835 = vmatpush.bf16.msrb.mxu3 (%p1080_p7), %v6027_v47  ;;  %v6028_v39 = vld [vmem:[#allocation7 + $0x40] sm:$0xff] (%p1080_p7)  ;;  %v6042_v47 = vld [vmem:[#allocation9 + $0x50] sm:$0xff] (%p1080_p7) }
 0x251   : >> { %v1525_v49 = vadd.f32 %v6355_v15, %v1518_v48  ;;  %v1560_v15 = vsel (%p1080_p7), %vm906_vm1, %v1556_v60, %v1557_v12  ;;  %v1576_v34 = vsel (%p1080_p7), %vm6942_vm6, 0.0, %v1572_v26  ;;  %v6026_v48 = vld [vmem:[#allocation7 + $0x30] sm:$0xff] (%p1080_p7)  ;;  %v6032_v24 = vld [vmem:[#allocation9] sm:$0xff] (%p1080_p7) }
 0x252   : > { %1082 = sbr.rel (!%p1080_p7) target bundleno = 236 (0xec), region = 182  ;;  %v1565_v18 = vsel (%p1080_p7), %vm6974_vm8, 0.0, %v1560_v15  ;;  %v1682_v35 = vpack.c.bf16 (%p1080_p7), %v1576_v34, %v1575_v32 }
 0x253   : >> { %v7186_v37 = vadd.f32 %v6650_v37, %v1525_v49   ;;  %v6038_v49 = vld [vmem:[#allocation9 + $0x30] sm:$0xff] (%p1080_p7) }
 0x254   : > { %1718 = vmatpush.bf16.msrb.mxu2 (%p1080_p7), %v6019_v7  ;;  %1836 = vmatpush.bf16.msrb.mxu3 (%p1080_p7), %v6026_v48  ;;  %v6020_v7 = vld [vmem:[#allocation7] sm:$0xff] (%p1080_p7) }
 0x255   : >> { %v8655_v52 = vmov %v7186_v37 }
 0x256   : >> { %v8656_v37 = vmov %v8655_v52  ;;  %v1558_v63 = vrot.slane (%p1080_p7), %v8655_v52, 7  ;;  %v1582_v10 = vpack.c.bf16 (%p1080_p7), %v8655_v52, %v8654_v44  ;;  %v1570_v21 = vrot.slane (%p1080_p7), %v8655_v52, 1 }
 0x258   : > { %v1562_v37 = vsel %vm906_vm1, %v1558_v63, %v1555_v59  ;;  %5055 = vmatmul.msk.bf16.vlgmr.msra.gmra.mxu3 %vm1169_vm12, %v1582_v10  ;;  %1719 = vmatpush.bf16.msrb.mxu2 %v6018_v11  ;;  %v1559_v14 = vsel %vm906_vm1, %v1557_v12, %v1558_v63  ;;  %v1571_v30 = vsel %vm931_vm2, %v1569_v25, %v1570_v21  ;;  %v6036_v59 = vld [vmem:[#allocation9 + $0x20] sm:$0xff]  ;;  %v6030_v63 = vld [vmem:[#allocation7 + $0x50] sm:$0xff] }
 0x259   : > { %v1563_v40 = vsel %vm6930_vm3, 0.0, %v1562_v37  ;;  %v1566_v19 = vsel %vm6978_vm9, 0.0, %v1559_v14  ;;  %v1574_v42 = vsel %vm931_vm2, %v1570_v21, %v1567_v23  ;;  %v1577_v43 = vsel %vm6986_vm10, 0.0, %v1571_v30  ;;  %1837 = vmatpush.bf16.msrb.mxu3 %v6025_v53  ;;  %1936 = vmatpush.bf16.msra.mxu1 %v6030_v63  ;;  %v6022_v37 = vld [vmem:[#allocation7 + $0x10] sm:$0xff]  ;;  %v6033_v14 = vld [vmem:[#allocation9 + $0x8] sm:$0xff] }
 0x25a   : > { %v1579_v8 = vpack.c.bf16 %v1564_v5, %v1563_v40  ;;  %v1580_v20 = vpack.c.bf16 %v1566_v19, %v1565_v18  ;;  %v1578_v44 = vsel %vm6990_vm11, 0.0, %v1574_v42  ;;  %1885 = vmatpush.bf16.msrb.mxu0 %v6022_v37  ;;  %v6021_v5 = vld [vmem:[#allocation7 + $0x8] sm:$0xff]  ;;  %v6034_v11 = vld [vmem:[#allocation9 + $0x10] sm:$0xff] }
 0x25b   : > { %v1683_v45 = vpack.c.bf16 %v1578_v44, %v1577_v43 }
 0x25c   : > { %5072 = vmatmul.msk.bf16.vlgmr.msra.gmra.mxu2 %vm1169_vm12, %v1579_v8  ;;  %v6035_v8 = vld [vmem:[#allocation9 + $0x18] sm:$0xff] }
 0x25d   : > { %1720 = vmatpush.bf16.msrb.mxu2 %v6017_v13  ;;  %1838 = vmatpush.bf16.msrb.mxu3 %v6024_v55  ;;  %v6356_v13 = vld [vmem:[%s8565_s9] ss:$0 sm:$0xff] }
 0x25e   : > { %1937 = vmatpush.bf16.msra.mxu1 %v6029_v3  ;;  %1886 = vmatpush.bf16.msrb.mxu0 %v6021_v5 }
 0x261   : > { %1721 = vmatpush.bf16.msrb.mxu2 %v6016_v17  ;;  %2057 = vmatpush.bf16.msra.mxu3 %v6035_v8 }
 0x262   : > { %1938 = vmatpush.bf16.msra.mxu1 %v6028_v39  ;;  %1887 = vmatpush.bf16.msrb.mxu0 %v6020_v7 }
 0x265   : > { %2014 = vmatpush.bf16.msra.mxu2 %v6039_v41  ;;  %2058 = vmatpush.bf16.msra.mxu3 %v6034_v11 }
 0x269   : > { %2015 = vmatpush.bf16.msra.mxu2 %v6038_v49  ;;  %2059 = vmatpush.bf16.msra.mxu3 %v6033_v14 }
 0x26c   : > { %5073 = vmatmul.msk.bf16.gmra.mxu2 %vm1169_vm12, %v1580_v20 }
 0x26d   : > { %2016 = vmatpush.bf16.msra.mxu2 %v6037_v54  ;;  %2060 = vmatpush.bf16.msra.mxu3 %v6032_v24 }
 0x271   : > { %2017 = vmatpush.bf16.msra.mxu2 %v6036_v59 }
 0x27c   : > { %5090 = vmatmul.msk.bf16.vlgmr.msrb.gmra.mxu2 %vm1169_vm12, %v1682_v35 }
 0x28c   : > { %5091 = vmatmul.msk.bf16.gmra.mxu2 %vm1169_vm12, %v1683_v45  ;;  %v6043_v45 = vld [vmem:[#allocation9 + $0x58] sm:$0xff] }
 0x28d   : > { %2100 = vmatpush.bf16.msra.mxu0 %v6043_v45 }
 0x291   : > { %2101 = vmatpush.bf16.msra.mxu0 %v6042_v47 }
 0x295   : > { %2102 = vmatpush.bf16.msra.mxu0 %v6041_v56 }
 0x2c5   : > { %v1623_v40 = vpop.f32.mrf.mxu0 }
 0x2cd   : > { %v1625_v10 = vpop.f32.mrf.mxu0 }
 0x2db   : > { %v1628_v20 = vpop.f32.mrf.mxu3 }
 0x2df   : > { %v1672_v46 = vpop.f32.mrf.mxu2 }
 0x2e0   : > { %v1673_v9 = vadd.f32 %v1672_v46, %v1623_v40 }
 0x2e3   : > { %v1630_v42 = vpop.f32.mrf.mxu3 }
 0x2e7   : > { %v1674_v52 = vpop.f32.mrf.mxu2 }
 0x2e8   : > { %v1675_v15 = vadd.f32 %v1674_v52, %v1625_v10 }
 0x2ef   : > { %v1677_v60 = vpop.f32.mrf.mxu2 }
 0x2f0   : > { %v1678_v28 = vadd.f32 %v1677_v60, %v1628_v20 }
 0x2f7   : > { %v1679_v4 = vpop.f32.mrf.mxu2 }
 0x2f8   : > { %v1680_v46 = vadd.f32 %v1679_v4, %v1630_v42  ;;  %v6040_v4 = vld [vmem:[#allocation9 + $0x40] sm:$0xff] }
 0x2f9   : > { %2103 = vmatpush.bf16.msra.mxu0 %v6040_v4 }
 0x2ff   : > { %v1723_v6 = vpop.f32.mrf.mxu2 }
 0x300   : > { %v1733_v12 = vadd.f32 %v1723_v6, %v1673_v9 }
 0x302   : > { %v1740_v18 = vadd.f32 %v6356_v13, %v1733_v12 }
 0x304   : > { %v1744_v25 = vadd.f32 %v1740_v18, %v7011_v16 }
 0x306   : > { %v1785_v44 = vrot.slane %v1744_v25, 1  ;;  %v1773_v60 = vrot.slane %v1744_v25, 7 }
 0x307   : > { %v1725_v17 = vpop.f32.mrf.mxu2 }
 0x308   : > { %v1734_v19 = vadd.f32 %v1725_v17, %v1675_v15 }
 0x30a   : > { %v1741_v23 = vadd.f32 %v6356_v13, %v1734_v19 }
 0x30c   : > { %v1745_v26 = vadd.f32 %v1741_v23, %v7013_v22 }
 0x30e   : > { %v1799_v32 = vpack.c.bf16 %v1745_v26, %v1744_v25  ;;  %v1786_v30 = vrot.slane %v1745_v26, 1  ;;  %v1774_v55 = vrot.slane %v1745_v26, 7 }
 0x30f   : > { %v1728_v34 = vpop.f32.mrf.mxu2 }
 0x310   : > { %v1735_v35 = vadd.f32 %v1728_v34, %v1678_v28  ;;  %5108 = vmatmul.msk.bf16.vlgmr.msrb.gmra.mxu3 %vm1169_vm12, %v1799_v32  ;;  %5162 = vmatmul.msk.bf16.vlgmr.msra.gmra.mxu2 %vm1169_vm12, %v1799_v32  ;;  %v1791_v22 = vsel %vm931_vm2, %v1785_v44, %v1786_v30  ;;  %v1779_v3 = vsel %vm906_vm1, %v1773_v60, %v1774_v55 }
 0x311   : > { %v1793_v52 = vsel %vm6934_vm4, 0.0, %v1791_v22  ;;  %v1782_v37 = vsel %vm6938_vm5, 0.0, %v1779_v3 }
 0x312   : > { %v1742_v21 = vadd.f32 %v6356_v13, %v1735_v35 }
 0x314   : > { %v1746_v43 = vadd.f32 %v1742_v21, %v7015_v27 }
 0x316   : > { %v1787_v16 = vrot.slane %v1746_v43, 1  ;;  %v1775_v8 = vrot.slane %v1746_v43, 7 }
 0x317   : > { %v1730_v41 = vpop.f32.mrf.mxu2 }
 0x318   : > { %v1736_v48 = vadd.f32 %v1730_v41, %v1680_v46  ;;  %v1790_v49 = vsel %vm931_vm2, %v1786_v30, %v1787_v16  ;;  %v1778_v9 = vsel %vm906_vm1, %v1774_v55, %v1775_v8  ;;  %v6357_v41 = vld [vmem:[%s8569_s13] ss:$0 sm:$0xff] }
 0x319   : > { %v1794_v27 = vsel %vm6942_vm6, 0.0, %v1790_v49  ;;  %v1783_v61 = vsel %vm6974_vm8, 0.0, %v1778_v9  ;;  %v5322_v9 = vld [vmem:[#allocation10 + $0xe0] sm:$0xf] }
 0x31a   : > { %v1743_v53 = vadd.f32 %v6356_v13, %v1736_v48  ;;  %v1899_v54 = vpack.c.bf16 %v1794_v27, %v1793_v52 }
 0x31c   : > { %v1747_v59 = vadd.f32 %v1743_v53, %v7017_v36  ;;  %5144 = vmatmul.msk.bf16.vlgmr.msra.gmra.mxu1 %vm1169_vm12, %v1899_v54 }
 0x31e   : > { %v1800_v63 = vpack.c.bf16 %v1747_v59, %v1746_v43  ;;  %v1776_v0 = vrot.slane %v1747_v59, 7  ;;  %v1788_v38 = vrot.slane %v1747_v59, 1 }
 0x320   : > { %5109 = vmatmul.msk.bf16.gmra.mxu3 %vm1169_vm12, %v1800_v63  ;;  %5163 = vmatmul.msk.bf16.gmra.mxu2 %vm1169_vm12, %v1800_v63  ;;  %v1780_v31 = vsel %vm906_vm1, %v1776_v0, %v1773_v60  ;;  %v1789_v40 = vsel %vm931_vm2, %v1787_v16, %v1788_v38  ;;  %v1792_v5 = vsel %vm931_vm2, %v1788_v38, %v1785_v44 }
 0x321   : > { %v1781_v36 = vsel %vm6930_vm3, 0.0, %v1780_v31  ;;  %v1795_v6 = vsel %vm6986_vm10, 0.0, %v1789_v40  ;;  %v1796_v29 = vsel %vm6990_vm11, 0.0, %v1792_v5  ;;  %v1777_v33 = vsel %vm906_vm1, %v1775_v8, %v1776_v0  ;;  %v6358_v31 = vld [vmem:[%s8567_s11] ss:$0 sm:$0xff] }
 0x322   : > { %v1797_v39 = vpack.c.bf16 %v1782_v37, %v1781_v36  ;;  %v1900_v7 = vpack.c.bf16 %v1796_v29, %v1795_v6  ;;  %v1784_v10 = vsel %vm6978_vm9, 0.0, %v1777_v33  ;;  %v2126_v5 = vld [vmem:[%s8570_s14] sm:$0xff]  ;;  %v2127_v6 = vld [vmem:[%s8570_s14 + $0x8] sm:$0xff]  ;;  %v2128_v29 = vld [vmem:[%s8570_s14 + $0x10] sm:$0xff] }
 0x323   : > { %v1798_v62 = vpack.c.bf16 %v1784_v10, %v1783_v61  ;;  %v5330_v8 = vld [vmem:[#allocation10 + $0xf0] sm:$0xf]  ;;  %v6075_v33 = vld [vmem:[#allocation10 + $0xf4] sm:$0xf0]  ;;  %v6073_v61 = vld [vmem:[#allocation10 + $0xe4] sm:$0xf0] }
 0x324   : > { %5126 = vmatmul.msk.bf16.vlgmr.msrb.gmra.mxu0 %vm1169_vm12, %v1797_v39  ;;  %v5331_v10 = vor.u32 %v6075_v33, %v5330_v8  ;;  %v6057_v8 = vld [vmem:[#allocation10 + $0x64] sm:$0xf0] }
 0x326   : > { %2730 = vmatpush.bf16.msrb.mxu3 %v5331_v10  ;;  %v5260_v10 = vld [vmem:[#allocation10 + $0x68] sm:$0xf0] }
 0x32c   : > { %5145 = vmatmul.msk.bf16.gmra.mxu1 %vm1169_vm12, %v1900_v7 }
 0x330   : > { %5180 = vmatmul.msk.bf16.vlgmr.msra.gmra.mxu3 %vm1169_vm12, %v1797_v39 }
 0x334   : > { %5127 = vmatmul.msk.bf16.gmra.mxu0 %vm1169_vm12, %v1798_v62 }
 0x340   : > { %5181 = vmatmul.msk.bf16.gmra.mxu3 %vm1169_vm12, %v1798_v62  ;;  %v5394_v62 = vld [vmem:[#allocation10 + $0x170] sm:$0xf] }
 0x344   : > { %5198 = vmatmul.msk.bf16.vlgmr.msra.gmra.mxu0 %vm1169_vm12, %v1899_v54 }
 0x354   : > { %5199 = vmatmul.msk.bf16.gmra.mxu0 %vm1169_vm12, %v1900_v7  ;;  %v2129_v7 = vld [vmem:[%s8570_s14 + $0x18] sm:$0xff] }
 0x393   : > { %v1840_v11 = vpop.f32.mrf.mxu3  ;;  %v2019_v57 = vpop.f32.mrf.mxu2 }
 0x399   : > { %v1940_v23 = vpop.f32.mrf.mxu1 }
 0x39b   : > { %v1842_v12 = vpop.f32.mrf.mxu3  ;;  %v2021_v26 = vpop.f32.mrf.mxu2 }
 0x3a1   : > { %v1889_v13 = vpop.f32.mrf.mxu0  ;;  %v1942_v32 = vpop.f32.mrf.mxu1 }
 0x3a2   : > { %v1890_v14 = vadd.f32 %v1889_v13, %v1840_v11  ;;  %v6091_v11 = vld [vmem:[#allocation10 + $0x174] sm:$0xf0] }
 0x3a3   : > { %v1845_v58 = vpop.f32.mrf.mxu3  ;;  %v2024_v35 = vpop.f32.mrf.mxu2  ;;  %v5395_v13 = vor.u32 %v6091_v11, %v5394_v62  ;;  %v5250_v62 = vld [vmem:[#allocation10 + $0x50] sm:$0xf]  ;;  %v6055_v11 = vld [vmem:[#allocation10 + $0x54] sm:$0xf0] }
 0x3a4   : > { %v1950_v36 = vadd.f32 %v1940_v23, %v1890_v14  ;;  %v5386_v14 = vld [vmem:[#allocation10 + $0x160] sm:$0xf] }
 0x3a5   : > { %2759 = vmatpush.bf16.msrb.mxu0 %v5395_v13  ;;  %v6054_v13 = vld [vmem:[#allocation10 + $0x54] sm:$0xf] }
 0x3a6   : > { %v1957_v40 = vadd.f32 %v6358_v31, %v1950_v36  ;;  %v5266_v36 = vld [vmem:[#allocation10 + $0x70] sm:$0xf] }
 0x3a9   : > { %v1891_v15 = vpop.f32.mrf.mxu0  ;;  %v1945_v30 = vpop.f32.mrf.mxu1 }
 0x3aa   : > { %v1892_v59 = vadd.f32 %v1891_v15, %v1842_v12  ;;  %v5323_v12 = vor.u32 %v6073_v61, %v5322_v9  ;;  %v5314_v15 = vld [vmem:[#allocation10 + $0xd0] sm:$0xf]  ;;  %v6056_v9 = vld [vmem:[#allocation10 + $0x64] sm:$0xf] }
 0x3ab   : > { %v1847_v17 = vpop.f32.mrf.mxu3  ;;  %v2026_v43 = vpop.f32.mrf.mxu2  ;;  %v5263_v61 = vor.u32 %v6056_v9, %v5260_v10 }
 0x3ac   : > { %v1951_v4 = vadd.f32 %v1942_v32, %v1892_v59  ;;  %2731 = vmatpush.bf16.msrb.mxu3 %v5323_v12  ;;  %v5298_v32 = vld [vmem:[#allocation10 + $0xb0] sm:$0xf]  ;;  %v6081_v59 = vld [vmem:[#allocation10 + $0x124] sm:$0xf0]  ;;  %v5251_v12 = vor.u32 %v6055_v11, %v5250_v62 }
 0x3ad   : > { %v6045_v62 = vld [vmem:[#allocation10 + $0x4] sm:$0xf0] }
 0x3ae   : > { %v1958_v39 = vadd.f32 %v6358_v31, %v1951_v4 }
 0x3b1   : > { %v1894_v18 = vpop.f32.mrf.mxu0  ;;  %v1947_v56 = vpop.f32.mrf.mxu1 }
 0x3b2   : > { %v1895_v53 = vadd.f32 %v1894_v18, %v1845_v58  ;;  %v6089_v58 = vld [vmem:[#allocation10 + $0x164] sm:$0xf0]  ;;  %v2130_v18 = vld [vmem:[%s8570_s14 + $0x20] sm:$0xff] }
 0x3b3   : > { %v2062_v19 = vpop.f32.mrf.mxu3 }
 0x3b4   : > { %v2063_v48 = vadd.f32 %v2062_v19, %v2019_v57  ;;  %v1952_v0 = vadd.f32 %v1945_v30, %v1895_v53  ;;  %v5387_v19 = vor.u32 %v6089_v58, %v5386_v14  ;;  %v5378_v57 = vld [vmem:[#allocation10 + $0x150] sm:$0xf]  ;;  %v5274_v53 = vld [vmem:[#allocation10 + $0x80] sm:$0xf]  ;;  %v5252_v14 = vld [vmem:[#allocation10 + $0x58] sm:$0xf0] }
 0x3b5   : > { %v2132_v30 = vld [vmem:[%s8570_s14 + $0x30] sm:$0xff]  ;;  %v5255_v58 = vor.u32 %v6054_v13, %v5252_v14  ;;  %v5514_v14 = vld [vmem:[#allocation12 + $0x60] sm:$0xf] }
 0x3b6   : > { %v1959_v37 = vadd.f32 %v6358_v31, %v1952_v0  ;;  %2760 = vmatpush.bf16.msrb.mxu0 %v5387_v19  ;;  %v6079_v0 = vld [vmem:[#allocation10 + $0x114] sm:$0xf0]  ;;  %v6053_v19 = vld [vmem:[#allocation10 + $0x44] sm:$0xf0]  ;;  %v5212_v13 = vld [vmem:[#allocation10 + $0x8] sm:$0xf0] }
 0x3b9   : > { %v1896_v20 = vpop.f32.mrf.mxu0 }
 0x3ba   : > { %v1897_v49 = vadd.f32 %v1896_v20, %v1847_v17  ;;  %v6071_v17 = vld [vmem:[#allocation10 + $0xd4] sm:$0xf0] }
 0x3bb   : > { %v2064_v24 = vpop.f32.mrf.mxu3  ;;  %v6087_v20 = vld [vmem:[#allocation10 + $0x154] sm:$0xf0]  ;;  %v5315_v23 = vor.u32 %v6071_v17, %v5314_v15 }
 0x3bc   : > { %v2065_v16 = vadd.f32 %v2064_v24, %v2021_v26  ;;  %v1953_v63 = vadd.f32 %v1947_v56, %v1897_v49  ;;  %v5306_v24 = vld [vmem:[#allocation10 + $0xc0] sm:$0xf]  ;;  %v5379_v26 = vor.u32 %v6087_v20, %v5378_v57  ;;  %v6083_v49 = vld [vmem:[#allocation10 + $0x134] sm:$0xf0]  ;;  %v6052_v20 = vld [vmem:[#allocation10 + $0x44] sm:$0xf] }
 0x3bd   : > { %2732 = vmatpush.bf16.msrb.mxu3 %v5315_v23  ;;  %v5354_v56 = vld [vmem:[#allocation10 + $0x120] sm:$0xf]  ;;  %v5244_v23 = vld [vmem:[#allocation10 + $0x48] sm:$0xf0] }
 0x3be   : > { %v1960_v38 = vadd.f32 %v6358_v31, %v1953_v63  ;;  %2761 = vmatpush.bf16.msrb.mxu0 %v5379_v26  ;;  %v5346_v63 = vld [vmem:[#allocation10 + $0x110] sm:$0xf]  ;;  %v5338_v31 = vld [vmem:[#allocation10 + $0x100] sm:$0xf]  ;;  %v5396_v26 = vld [vmem:[#allocation10 + $0x178] sm:$0xf0] }
 0x3c1   : > { %v2105_v25 = vpop.f32.mrf.mxu0 }
 0x3c2   : > { %v2115_v54 = vadd.f32 %v2105_v25, %v2063_v48  ;;  %v6069_v25 = vld [vmem:[#allocation10 + $0xc4] sm:$0xf0]  ;;  %v5362_v48 = vld [vmem:[#allocation10 + $0x130] sm:$0xf] }
 0x3c3   : > { %v2067_v34 = vpop.f32.mrf.mxu3 }
 0x3c4   : > { %v2068_v44 = vadd.f32 %v2067_v34, %v2024_v35  ;;  %v2122_v3 = vadd.f32 %v6357_v41, %v2115_v54  ;;  %v6067_v34 = vld [vmem:[#allocation10 + $0xb4] sm:$0xf0]  ;;  %v2131_v35 = vld [vmem:[%s8570_s14 + $0x28] sm:$0xff] }
 0x3c5   : > { %v6061_v54 = vld [vmem:[#allocation10 + $0x84] sm:$0xf0] }
 0x3c9   : > { %v2107_v28 = vpop.f32.mrf.mxu0 }
 0x3ca   : > { %v2116_v52 = vadd.f32 %v2107_v28, %v2065_v16  ;;  %v5307_v28 = vor.u32 %v6069_v25, %v5306_v24  ;;  %v6085_v16 = vld [vmem:[#allocation10 + $0x144] sm:$0xf0]  ;;  %v6090_v24 = vld [vmem:[#allocation10 + $0x174] sm:$0xf]  ;;  %v5247_v25 = vor.u32 %v6052_v20, %v5244_v23  ;;  %v2277_v20 = vand.u32 15, %v6966_v51 }
 0x3cb   : > { %v2069_v42 = vpop.f32.mrf.mxu3 }
 0x3cc   : > { %v2070_v45 = vadd.f32 %v2069_v42, %v2026_v43  ;;  %v2123_v60 = vadd.f32 %v6357_v41, %v2116_v52  ;;  %2733 = vmatpush.bf16.msrb.mxu3 %v5307_v28  ;;  %v2133_v42 = vld [vmem:[%s8570_s14 + $0x38] sm:$0xff]  ;;  %v5290_v43 = vld [vmem:[#allocation10 + $0xa0] sm:$0xf]  ;;  %v5234_v28 = vld [vmem:[#allocation10 + $0x30] sm:$0xf]  ;;  %vm6193_vm0 = vcmp.ne.s32.totalorder %v2277_v20, 15 }
 0x3cd   : > { %vm7400_vm3 = vmpackc.low %vm6193_vm0, %vm6680_vm14 }
 0x3d1   : > { %v2110_v21 = vpop.f32.mrf.mxu0 }
 0x3d2   : > { %v2117_v22 = vadd.f32 %v2110_v21, %v2068_v44  ;;  %v5299_v21 = vor.u32 %v6067_v34, %v5298_v32  ;;  %v6065_v44 = vld [vmem:[#allocation10 + $0xa4] sm:$0xf0]  ;;  %v6051_v32 = vld [vmem:[#allocation10 + $0x34] sm:$0xf0]  ;;  %v2263_v34 = vand.u32 15, %v6921_v2 }
 0x3d4   : > { %v2124_v55 = vadd.f32 %v6357_v41, %v2117_v22  ;;  %2734 = vmatpush.bf16.msrb.mxu3 %v5299_v21  ;;  %v5282_v22 = vld [vmem:[#allocation10 + $0x90] sm:$0xf]  ;;  %v5235_v21 = vor.u32 %v6051_v32, %v5234_v28  ;;  %vm7355_vm13 = vcmp.ne.s32.totalorder %v2263_v34, 15  ;;  %v6080_v32 = vld [vmem:[#allocation10 + $0x124] sm:$0xf] }
 0x3d5   : > { %vm7372_vm15 = vmpackc.low %vm7355_vm13, %vm6680_vm14  ;;  %v5356_v34 = vld [vmem:[#allocation10 + $0x128] sm:$0xf0] }
 0x3d9   : > { %v2112_v46 = vpop.f32.mrf.mxu0 }
 0x3da   : > { %v2118_v47 = vadd.f32 %v2112_v46, %v2070_v45  ;;  %v5291_v45 = vor.u32 %v6065_v44, %v5290_v43  ;;  %v5370_v46 = vld [vmem:[#allocation10 + $0x140] sm:$0xf]  ;;  %v6088_v44 = vld [vmem:[#allocation10 + $0x164] sm:$0xf] }
 0x3dc   : > { %v2125_v27 = vadd.f32 %v6357_v41, %v2118_v47  ;;  %2735 = vmatpush.bf16.msrb.mxu3 %v5291_v45  ;;  %v5371_v47 = vor.u32 %v6085_v16, %v5370_v46  ;;  %v6063_v41 = vld [vmem:[#allocation10 + $0x94] sm:$0xf0]  ;;  %v5388_v45 = vld [vmem:[#allocation10 + $0x168] sm:$0xf0] }
 0x3dd   : > { %v5283_v52 = vor.u32 %v6063_v41, %v5282_v22  ;;  %v5391_v16 = vor.u32 %v6088_v44, %v5388_v45  ;;  %v6078_v45 = vld [vmem:[#allocation10 + $0x114] sm:$0xf] }
 0x3de   : > { %2166 = vmatpush.msrb.mxu1 %v2125_v27  ;;  %2762 = vmatpush.bf16.msrb.mxu0 %v5371_v47  ;;  %v5363_v27 = vor.u32 %v6083_v49, %v5362_v48  ;;  %v5226_v48 = vld [vmem:[#allocation10 + $0x20] sm:$0xf]  ;;  %v6049_v49 = vld [vmem:[#allocation10 + $0x24] sm:$0xf0] }
 0x3e0   : > { %2167 = vmatpush.msrb.mxu1 %v2124_v55  ;;  %2736 = vmatpush.bf16.msrb.mxu3 %v5283_v52  ;;  %v5275_v55 = vor.u32 %v6061_v54, %v5274_v53  ;;  %v5227_v52 = vor.u32 %v6049_v49, %v5226_v48  ;;  %v5228_v53 = vld [vmem:[#allocation10 + $0x28] sm:$0xf0]  ;;  %v6086_v54 = vld [vmem:[#allocation10 + $0x154] sm:$0xf] }
 0x3e2   : > { %2168 = vmatpush.msrb.mxu1 %v2123_v60  ;;  %2763 = vmatpush.bf16.msrb.mxu0 %v5363_v27  ;;  %v5355_v60 = vor.u32 %v6081_v59, %v5354_v56  ;;  %v6048_v27 = vld [vmem:[#allocation10 + $0x24] sm:$0xf] }
 0x3e4   : > { %2169 = vmatpush.msrb.mxu1 %v2122_v3  ;;  %2737 = vmatpush.bf16.msrb.mxu3 %v5275_v55  ;;  %v5347_v3 = vor.u32 %v6079_v0, %v5346_v63  ;;  %v5380_v63 = vld [vmem:[#allocation10 + $0x158] sm:$0xf0] }
 0x3e6   : > { %2170 = vmatpush.msrb.mxu1 %v1960_v38  ;;  %2764 = vmatpush.bf16.msrb.mxu0 %v5355_v60  ;;  %v6077_v38 = vld [vmem:[#allocation10 + $0x104] sm:$0xf0]  ;;  %v5231_v60 = vor.u32 %v6048_v27, %v5228_v53  ;;  %v5490_v53 = vld [vmem:[#allocation12 + $0x30] sm:$0xf] }
 0x3e7   : > { %v5339_v4 = vor.u32 %v6077_v38, %v5338_v31  ;;  %v5218_v31 = vld [vmem:[#allocation10 + $0x10] sm:$0xf]  ;;  %v6047_v38 = vld [vmem:[#allocation10 + $0x14] sm:$0xf0] }
 0x3e8   : > { %2171 = vmatpush.msrb.mxu1 %v1959_v37  ;;  %v6059_v37 = vld [vmem:[#allocation10 + $0x74] sm:$0xf0] }
 0x3ea   : > { %2172 = vmatpush.msrb.mxu1 %v1958_v39  ;;  %2765 = vmatpush.bf16.msrb.mxu0 %v5347_v3  ;;  %v6058_v39 = vld [vmem:[#allocation10 + $0x74] sm:$0xf]  ;;  %v5383_v3 = vor.u32 %v6086_v54, %v5380_v63  ;;  %v6099_v54 = vld [vmem:[#allocation12 + $0x34] sm:$0xf0]  ;;  %v2249_v63 = vadd.s32 40, %v6910_v1 }
 0x3ec   : > { %2173 = vmatpush.msrb.mxu1 %v1957_v40  ;;  %v5267_v40 = vor.u32 %v6059_v37, %v5266_v36  ;;  %v6046_v36 = vld [vmem:[#allocation10 + $0x14] sm:$0xf]  ;;  %v5220_v37 = vld [vmem:[#allocation10 + $0x18] sm:$0xf0] }
 0x3ed   : > { %5200 = vmatmul.msk.f32.vlgmr.msrb.gmra.mxu1 %vm1169_vm12, %v2126_v5  ;;  %v5268_v5 = vld [vmem:[#allocation10 + $0x78] sm:$0xf0] }
 0x3ee   : > { %2766 = vmatpush.bf16.msrb.mxu0 %v5339_v4  ;;  %2701 = vmatpush.bf16.msrb.mxu2 %v5267_v40  ;;  %v5219_v4 = vor.u32 %v6047_v38, %v5218_v31  ;;  %v5223_v40 = vor.u32 %v6046_v36, %v5220_v37  ;;  %v5482_v38 = vld [vmem:[#allocation12 + $0x20] sm:$0xf]  ;;  %v2291_v37 = vand.u32 15, %v2249_v63 }
 0x3f0   : > { %vm6194_vm4 = vcmp.ne.s32.totalorder %v2291_v37, 15  ;;  %v6068_v37 = vld [vmem:[#allocation10 + $0xc4] sm:$0xf] }
 0x3f1   : > { %vm7426_vm5 = vmpackc.low %vm6194_vm4, %vm6680_vm14 }
 0x3f5   : > { %5201 = vmatmul.msk.f32.gmra.mxu1 %vm1169_vm12, %v2127_v6  ;;  %v5271_v6 = vor.u32 %v6058_v39, %v5268_v5  ;;  %v5522_v39 = vld [vmem:[#allocation12 + $0x70] sm:$0xf]  ;;  %v6107_v5 = vld [vmem:[#allocation12 + $0x74] sm:$0xf0] }
 0x3f7   : > { %2788 = vmatpush.bf16.msra.mxu1 %v5271_v6  ;;  %v6084_v6 = vld [vmem:[#allocation10 + $0x144] sm:$0xf] }
 0x3fb   : > { %2789 = vmatpush.bf16.msra.mxu1 %v5263_v61  ;;  %v5210_v61 = vld [vmem:[#allocation10] sm:$0xf] }
 0x3fc   : > { %v5211_v11 = vor.u32 %v6045_v62, %v5210_v61 }
 0x3fd   : > { %5202 = vmatmul.msk.f32.gmra.mxu1 %vm1169_vm12, %v2128_v29 }
 0x3ff   : > { %2790 = vmatpush.bf16.msra.mxu1 %v5255_v58 }
 0x403   : > { %2791 = vmatpush.bf16.msra.mxu1 %v5247_v25  ;;  %v5506_v25 = vld [vmem:[#allocation12 + $0x50] sm:$0xf] }
 0x405   : > { %5203 = vmatmul.msk.f32.gmra.mxu1 %vm1169_vm12, %v2129_v7  ;;  %v5258_v7 = vld [vmem:[#allocation10 + $0x60] sm:$0xf] }
 0x406   : > { %v5259_v33 = vor.u32 %v6057_v8, %v5258_v7  ;;  %v5523_v8 = vor.u32 %v6107_v5, %v5522_v39  ;;  %v5474_v39 = vld [vmem:[#allocation12 + $0x10] sm:$0xf] }
 0x408   : > { %2702 = vmatpush.bf16.msrb.mxu2 %v5259_v33  ;;  %v5372_v33 = vld [vmem:[#allocation10 + $0x148] sm:$0xf0]  ;;  %3169 = vmatpush.bf16.msra.mxu0 %v5523_v8 }
 0x409   : > { %v5375_v10 = vor.u32 %v6084_v6, %v5372_v33  ;;  %v5466_v33 = vld [vmem:[#allocation12] sm:$0xf] }
 0x40c   : > { %2703 = vmatpush.bf16.msrb.mxu2 %v5251_v12  ;;  %v6044_v12 = vld [vmem:[#allocation10 + $0x4] sm:$0xf] }
 0x40d   : > { %5204 = vmatmul.msk.f32.gmra.mxu1 %vm1169_vm12, %v2130_v18  ;;  %v5242_v18 = vld [vmem:[#allocation10 + $0x40] sm:$0xf]  ;;  %v5215_v58 = vor.u32 %v6044_v12, %v5212_v13 }
 0x40e   : > { %v5243_v57 = vor.u32 %v6053_v19, %v5242_v18  ;;  %v6105_v18 = vld [vmem:[#allocation12 + $0x64] sm:$0xf0]  ;;  %v6082_v19 = vld [vmem:[#allocation10 + $0x134] sm:$0xf] }
 0x40f   : > { %v5515_v23 = vor.u32 %v6105_v18, %v5514_v14 }
 0x410   : > { %2704 = vmatpush.bf16.msrb.mxu2 %v5243_v57  ;;  %v5364_v57 = vld [vmem:[#allocation10 + $0x138] sm:$0xf0] }
 0x411   : > { %3170 = vmatpush.bf16.msra.mxu0 %v5515_v23 }
 0x414   : > { %2705 = vmatpush.bf16.msrb.mxu2 %v5235_v21 }
 0x415   : > { %5205 = vmatmul.msk.f32.gmra.mxu1 %vm1169_vm12, %v2131_v35  ;;  %v5399_v35 = vor.u32 %v6090_v24, %v5396_v26  ;;  %v5367_v24 = vor.u32 %v6082_v19, %v5364_v57  ;;  %v6103_v26 = vld [vmem:[#allocation12 + $0x54] sm:$0xf0]  ;;  %v7440_v57 = vadd.s32 56, %v6910_v1 }
 0x416   : > { %v5507_v28 = vor.u32 %v6103_v26, %v5506_v25  ;;  %v6129_v26 = vld [vmem:[#allocation12 + $0x124] sm:$0xf0] }
 0x417   : > { %2846 = vmatpush.bf16.msra.mxu3 %v5399_v35  ;;  %8668 = vst [vmem:[#allocation22_spill] sm:$0xff] %v7440_v57 }
 0x418   : > { %2706 = vmatpush.bf16.msrb.mxu2 %v5227_v52  ;;  %3171 = vmatpush.bf16.msra.mxu0 %v5507_v28 }
 0x41b   : > { %2847 = vmatpush.bf16.msra.mxu3 %v5391_v16 }
 0x41c   : > { %2707 = vmatpush.bf16.msrb.mxu2 %v5219_v4  ;;  %v6097_v4 = vld [vmem:[#allocation12 + $0x24] sm:$0xf0] }
 0x41d   : > { %5206 = vmatmul.msk.f32.gmra.mxu1 %vm1169_vm12, %v2132_v30  ;;  %v6050_v30 = vld [vmem:[#allocation10 + $0x34] sm:$0xf]  ;;  %v5483_v36 = vor.u32 %v6097_v4, %v5482_v38  ;;  %v5570_v4 = vld [vmem:[#allocation12 + $0xd0] sm:$0xf] }
 0x41e   : > { %v6070_v38 = vld [vmem:[#allocation10 + $0xd4] sm:$0xf] }
 0x41f   : > { %2848 = vmatpush.bf16.msra.mxu3 %v5383_v3 }
 0x420   : > { %2708 = vmatpush.bf16.msrb.mxu2 %v5211_v11 }
 0x423   : > { %2849 = vmatpush.bf16.msra.mxu3 %v5375_v10  ;;  %v6093_v10 = vld [vmem:[#allocation12 + $0x4] sm:$0xf0] }
 0x424   : > { %v5467_v13 = vor.u32 %v6093_v10, %v5466_v33  ;;  %v5562_v33 = vld [vmem:[#allocation12 + $0xc0] sm:$0xf]  ;;  %v6117_v10 = vld [vmem:[#allocation12 + $0xc4] sm:$0xf0] }
 0x425   : > { %5207 = vmatmul.msk.f32.gmra.mxu1 %vm1169_vm12, %v2133_v42  ;;  %v5236_v42 = vld [vmem:[#allocation10 + $0x38] sm:$0xf0] }
 0x426   : > { %v5239_v43 = vor.u32 %v6050_v30, %v5236_v42  ;;  %v5359_v30 = vor.u32 %v6080_v32, %v5356_v34  ;;  %v5498_v42 = vld [vmem:[#allocation12 + $0x40] sm:$0xf]  ;;  %v2305_v34 = vand.u32 15, %v7440_v57 }
 0x427   : > { %2850 = vmatpush.bf16.msra.mxu3 %v5367_v24 }
 0x428   : > { %2792 = vmatpush.bf16.msra.mxu1 %v5239_v43  ;;  %v6101_v43 = vld [vmem:[#allocation12 + $0x44] sm:$0xf0]  ;;  %vm6195_vm8 = vcmp.ne.s32.totalorder %v2305_v34, 15  ;;  %v5554_v34 = vld [vmem:[#allocation12 + $0xb0] sm:$0xf] }
 0x429   : > { %v5499_v49 = vor.u32 %v6101_v43, %v5498_v42  ;;  %v5586_v42 = vld [vmem:[#allocation12 + $0xf0] sm:$0xf]  ;;  %vm7477_vm9 = vmpackc.low %vm6195_vm8, %vm6680_vm14 }
 0x42b   : > { %2851 = vmatpush.bf16.msra.mxu3 %v5359_v30  ;;  %3172 = vmatpush.bf16.msra.mxu0 %v5499_v49  ;;  %v5332_v30 = vld [vmem:[#allocation10 + $0xf8] sm:$0xf0] }
 0x42c   : > { %2793 = vmatpush.bf16.msra.mxu1 %v5231_v60 }
 0x430   : > { %2794 = vmatpush.bf16.msra.mxu1 %v5223_v40  ;;  %v6095_v40 = vld [vmem:[#allocation12 + $0x14] sm:$0xf0] }
 0x431   : > { %v5475_v6 = vor.u32 %v6095_v40, %v5474_v39  ;;  %v5308_v39 = vld [vmem:[#allocation10 + $0xc8] sm:$0xf0] }
 0x434   : > { %2795 = vmatpush.bf16.msra.mxu1 %v5215_v58  ;;  %v2256_v58 = vand.u32 15, %v6910_v1 }
 0x436   : > { %vm6188_vm6 = vcmp.ne.s32.totalorder %v2256_v58, 0 }
 0x437   : > { %vm7456_vm7 = vmpackc.low %vm6680_vm14, %vm6188_vm6 }
 0x46a   : > { %v7342_v29 = vpop.f32.mrf.mxu1 }
 0x46b   : > { %v2404_v2 = vrot.slane %v7342_v29, 1  ;;  %v2356_v20 = vrot.slane %v7342_v29, 7 }
 0x472   : > { %v7344_v15 = vpop.f32.mrf.mxu1 }
 0x473   : > { %v7348_v17 = vpack.c.bf16 %v7344_v15, %v7342_v29  ;;  %v2405_v46 = vrot.slane %v7344_v15, 1  ;;  %v2357_v18 = vrot.slane %v7344_v15, 7  ;;  %v5316_v29 = vld [vmem:[#allocation10 + $0xd8] sm:$0xf0] }
 0x475   : > { %2738 = vmatmul.bf16.vlgmr.msrb.gmra.mxu3 %v7348_v17  ;;  %v2418_v56 = vsel %vm931_vm2, %v2404_v2, %v2405_v46  ;;  %v2370_v25 = vsel %vm906_vm1, %v2356_v20, %v2357_v18 }
 0x47a   : > { %v7353_v22 = vpop.f32.mrf.mxu1 }
 0x47b   : > { %v2406_v41 = vrot.slane %v7353_v22, 1  ;;  %v2358_v40 = vrot.slane %v7353_v22, 7 }
 0x47d   : > { %v2417_v55 = vsel %vm931_vm2, %v2405_v46, %v2406_v41  ;;  %v5348_v46 = vld [vmem:[#allocation10 + $0x118] sm:$0xf0] }
 0x47e   : > { %v7376_v0 = vpack.c.bf16 %v2417_v55, %v2418_v56  ;;  %v5351_v27 = vor.u32 %v6078_v45, %v5348_v46  ;;  %v6076_v55 = vld [vmem:[#allocation10 + $0x104] sm:$0xf]  ;;  %v5340_v56 = vld [vmem:[#allocation10 + $0x108] sm:$0xf0] }
 0x47f   : > { %v5343_v3 = vor.u32 %v6076_v55, %v5340_v56  ;;  %v6072_v45 = vld [vmem:[#allocation10 + $0xe4] sm:$0xf] }
 0x480   : > { %5419 = vmatmul.msk.bf16.vlgmr.msrb.gmra.mxu0 %vm7372_vm15, %v7376_v0  ;;  %2852 = vmatpush.bf16.msra.mxu3 %v5351_v27  ;;  %v6121_v27 = vld [vmem:[#allocation12 + $0xe4] sm:$0xf0] }
 0x482   : > { %v7381_v7 = vpop.f32.mrf.mxu1 }
 0x483   : > { %v7385_v9 = vpack.c.bf16 %v7381_v7, %v7353_v22  ;;  %v2407_v35 = vrot.slane %v7381_v7, 1 }
 0x484   : > { %2853 = vmatpush.bf16.msra.mxu3 %v5343_v3  ;;  %v2270_v3 = vand.u32 15, %v6963_v50 }
 0x485   : > { %2743 = vmatmul.bf16.gmra.mxu3 %v7385_v9  ;;  %v2416_v47 = vsel %vm931_vm2, %v2406_v41, %v2407_v35  ;;  %v5491_v41 = vor.u32 %v6099_v54, %v5490_v53 }
 0x486   : > { %vm6189_vm10 = vcmp.ne.s32.totalorder %v2270_v3, 0 }
 0x487   : > { %3173 = vmatpush.bf16.msra.mxu0 %v5491_v41  ;;  %v2359_v41 = vrot.slane %v7381_v7, 7  ;;  %vm7499_vm11 = vmpackc.low %vm6680_vm14, %vm6189_vm10  ;;  %v6118_v7 = vld [vmem:[#allocation12 + $0xd4] sm:$0xf] }
 0x489   : > { %v2368_v50 = vsel %vm906_vm1, %v2358_v40, %v2359_v41 }
 0x48a   : > { %v7390_v21 = vpop.f32.mrf.mxu1 }
 0x48b   : > { %v2408_v44 = vrot.slane %v7390_v21, 1  ;;  %3174 = vmatpush.bf16.msra.mxu0 %v5483_v36  ;;  %v6119_v36 = vld [vmem:[#allocation12 + $0xd4] sm:$0xf0]  ;;  %v2360_v3 = vrot.slane %v7390_v21, 7 }
 0x48d   : > { %v2415_v16 = vsel %vm931_vm2, %v2407_v35, %v2408_v44  ;;  %v6074_v35 = vld [vmem:[#allocation10 + $0xf4] sm:$0xf] }
 0x48e   : > { %v7404_v52 = vpack.c.bf16 %v2415_v16, %v2416_v47  ;;  %v5335_v43 = vor.u32 %v6074_v35, %v5332_v30  ;;  %v5324_v16 = vld [vmem:[#allocation10 + $0xe8] sm:$0xf0]  ;;  %v5578_v47 = vld [vmem:[#allocation12 + $0xe0] sm:$0xf]  ;;  %v6115_v35 = vld [vmem:[#allocation12 + $0xb4] sm:$0xf0] }
 0x48f   : > { %3175 = vmatpush.bf16.msra.mxu0 %v5475_v6  ;;  %v5327_v49 = vor.u32 %v6072_v45, %v5324_v16  ;;  %v5579_v55 = vor.u32 %v6121_v27, %v5578_v47  ;;  %v5311_v6 = vor.u32 %v6068_v37, %v5308_v39  ;;  %v5555_v30 = vor.u32 %v6115_v35, %v5554_v34  ;;  %v5546_v16 = vld [vmem:[#allocation12 + $0xa0] sm:$0xf]  ;;  %v6113_v47 = vld [vmem:[#allocation12 + $0xa4] sm:$0xf0]  ;;  %v6111_v39 = vld [vmem:[#allocation12 + $0x94] sm:$0xf0] }
 0x490   : > { %5423 = vmatmul.msk.bf16.gmra.mxu0 %vm7400_vm3, %v7404_v52  ;;  %2817 = vmatpush.bf16.msra.mxu2 %v5335_v43  ;;  %v5516_v43 = vld [vmem:[#allocation12 + $0x68] sm:$0xf0]  ;;  %v5547_v27 = vor.u32 %v6113_v47, %v5546_v16 }
 0x491   : > { %v5580_v35 = vld [vmem:[#allocation12 + $0xe8] sm:$0xf0] }
 0x492   : > { %v7409_v60 = vpop.f32.mrf.mxu1 }
 0x493   : > { %v7414_v31 = vpack.c.bf16 %v7409_v60, %v7390_v21  ;;  %v2409_v5 = vrot.slane %v7409_v60, 1  ;;  %3176 = vmatpush.bf16.msra.mxu0 %v5467_v13  ;;  %v2369_v13 = vsel %vm906_vm1, %v2357_v18, %v2358_v40  ;;  %v7512_v18 = vadd.s32 32, %v6910_v1  ;;  %v6122_v40 = vld [vmem:[#allocation12 + $0xf4] sm:$0xf] }
 0x494   : > { %2818 = vmatpush.bf16.msra.mxu2 %v5327_v49 }
 0x495   : > { %2748 = vmatmul.bf16.gmra.mxu3 %v7414_v31  ;;  %v2414_v11 = vsel %vm931_vm2, %v2408_v44, %v2409_v5  ;;  %v6123_v44 = vld [vmem:[#allocation12 + $0xf4] sm:$0xf0]  ;;  %8675 = vst [vmem:[#allocation23_spill] sm:$0xff] %v7512_v18 }
 0x496   : > { %v5587_v46 = vor.u32 %v6123_v44, %v5586_v42  ;;  %v6104_v42 = vld [vmem:[#allocation12 + $0x64] sm:$0xf] }
 0x497   : > { %v6064_v44 = vld [vmem:[#allocation10 + $0xa4] sm:$0xf]  ;;  %v5519_v45 = vor.u32 %v6104_v42, %v5516_v43  ;;  %v5492_v42 = vld [vmem:[#allocation12 + $0x38] sm:$0xf0]  ;;  %v2367_v43 = vsel %vm906_vm1, %v2359_v41, %v2360_v3 }
 0x498   : > { %3198 = vmatpush.bf16.msrb.mxu1 %v5587_v46  ;;  %v5292_v46 = vld [vmem:[#allocation10 + $0xa8] sm:$0xf0]  ;;  %v5572_v41 = vld [vmem:[#allocation12 + $0xd8] sm:$0xf0] }
 0x499   : > { %v5295_v49 = vor.u32 %v6064_v44, %v5292_v46  ;;  %v5575_v47 = vor.u32 %v6118_v7, %v5572_v41  ;;  %v6136_v7 = vld [vmem:[#allocation12 + $0x164] sm:$0xf] }
 0x49a   : > { %v7418_v8 = vpop.f32.mrf.mxu1 }
 0x49b   : > { %v2410_v61 = vrot.slane %v7418_v8, 1 }
 0x49c   : > { %3199 = vmatpush.bf16.msrb.mxu1 %v5579_v55 }
 0x49d   : > { %v2413_v62 = vsel %vm931_vm2, %v2409_v5, %v2410_v61  ;;  %v5571_v5 = vor.u32 %v6119_v36, %v5570_v4  ;;  %v6062_v4 = vld [vmem:[#allocation10 + $0x94] sm:$0xf]  ;;  %v5538_v36 = vld [vmem:[#allocation12 + $0x90] sm:$0xf] }
 0x49e   : > { %v7430_v14 = vpack.c.bf16 %v2413_v62, %v2414_v11  ;;  %v6106_v62 = vld [vmem:[#allocation12 + $0x74] sm:$0xf]  ;;  %v5524_v11 = vld [vmem:[#allocation12 + $0x78] sm:$0xf0] }
 0x49f   : > { %v5527_v58 = vor.u32 %v6106_v62, %v5524_v11  ;;  %v5276_v11 = vld [vmem:[#allocation10 + $0x88] sm:$0xf0] }
 0x4a0   : > { %5427 = vmatmul.msk.bf16.gmra.mxu0 %vm7426_vm5, %v7430_v14  ;;  %3200 = vmatpush.bf16.msrb.mxu1 %v5571_v5  ;;  %v5588_v5 = vld [vmem:[#allocation12 + $0xf8] sm:$0xf0] }
 0x4a1   : > { %3256 = vmatpush.bf16.msrb.mxu3 %v5527_v58  ;;  %v5591_v21 = vor.u32 %v6122_v40, %v5588_v5  ;;  %v5556_v40 = vld [vmem:[#allocation12 + $0xb8] sm:$0xf0] }
 0x4a2   : > { %v7437_v19 = vpop.f32.mrf.mxu1 }
 0x4a3   : > { %v2363_v23 = vrot.slane %v7437_v19, 7  ;;  %v7446_v24 = vpack.c.bf16 %v7437_v19, %v7418_v8  ;;  %v2411_v28 = vrot.slane %v7437_v19, 1  ;;  %3285 = vmatpush.bf16.msrb.mxu0 %v5591_v21  ;;  %v5468_v21 = vld [vmem:[#allocation12 + $0x8] sm:$0xf0] }
 0x4a5   : > { %v2371_v15 = vsel %vm906_vm1, %v2363_v23, %v2356_v20  ;;  %2753 = vmatmul.bf16.gmra.mxu3 %v7446_v24  ;;  %v2412_v53 = vsel %vm931_vm2, %v2410_v61, %v2411_v28  ;;  %v2419_v54 = vsel %vm931_vm2, %v2411_v28, %v2404_v2  ;;  %v5319_v2 = vor.u32 %v6070_v38, %v5316_v29 }
 0x4a6   : > { %v7461_v32 = vpack.c.bf16 %v2370_v25, %v2371_v15  ;;  %v7482_v63 = vpack.c.bf16 %v2419_v54, %v2412_v53  ;;  %v5563_v61 = vor.u32 %v6117_v10, %v5562_v33  ;;  %v7503_v20 = vpack.c.bf16 %v2368_v50, %v2369_v13  ;;  %v6066_v25 = vld [vmem:[#allocation10 + $0xb4] sm:$0xf]  ;;  %v5300_v15 = vld [vmem:[#allocation10 + $0xb8] sm:$0xf0]  ;;  %3257 = vmatpush.bf16.msrb.mxu3 %v5519_v45  ;;  %v6100_v50 = vld [vmem:[#allocation12 + $0x44] sm:$0xf] }
 0x4a7   : > { %2819 = vmatpush.bf16.msra.mxu2 %v5319_v2  ;;  %v5303_v28 = vor.u32 %v6066_v25, %v5300_v15  ;;  %v6102_v53 = vld [vmem:[#allocation12 + $0x54] sm:$0xf]  ;;  %v5508_v54 = vld [vmem:[#allocation12 + $0x58] sm:$0xf0]  ;;  %v2361_v38 = vrot.slane %v7409_v60, 7  ;;  %v2284_v29 = vand.u32 15, %v7512_v18 }
 0x4a8   : > { %5403 = vmatmul.msk.bf16.vlgmr.msrb.gmra.mxu2 %vm7456_vm7, %v7461_v32  ;;  %5435 = vmatmul.msk.bf16.vlgmr.msra.gmra.mxu1 %vm7456_vm7, %v7461_v32  ;;  %v5511_v55 = vor.u32 %v6102_v53, %v5508_v54  ;;  %v5284_v2 = vld [vmem:[#allocation10 + $0x98] sm:$0xf0]  ;;  %v5500_v33 = vld [vmem:[#allocation12 + $0x48] sm:$0xf0]  ;;  %v6060_v10 = vld [vmem:[#allocation10 + $0x84] sm:$0xf] }
 0x4a9   : > { %3201 = vmatpush.bf16.msrb.mxu1 %v5563_v61  ;;  %v5287_v37 = vor.u32 %v6062_v4, %v5284_v2  ;;  %vm7520_vm12 = vcmp.ne.s32.totalorder %v2284_v29, 0  ;;  %v5503_v62 = vor.u32 %v6100_v50, %v5500_v33  ;;  %v2366_v13 = vsel %vm906_vm1, %v2360_v3, %v2361_v38  ;;  %v5530_v25 = vld [vmem:[#allocation12 + $0x80] sm:$0xf]  ;;  %v6109_v15 = vld [vmem:[#allocation12 + $0x84] sm:$0xf0] }
 0x4aa   : > { %3258 = vmatpush.bf16.msrb.mxu3 %v5511_v55  ;;  %v5279_v58 = vor.u32 %v6060_v10, %v5276_v11  ;;  %v5531_v34 = vor.u32 %v6109_v15, %v5530_v25  ;;  %vm7538_vm13 = vmpackc.low %vm6680_vm14, %vm7520_vm12  ;;  %v7542_v16 = vpack.c.bf16 %v2366_v13, %v2367_v43  ;;  %v6116_v53 = vld [vmem:[#allocation12 + $0xc4] sm:$0xf]  ;;  %v5564_v55 = vld [vmem:[#allocation12 + $0xc8] sm:$0xf0]  ;;  %v2250_v3 = vadd.s32 48, %v6910_v1 }
 0x4ab   : > { %2820 = vmatpush.bf16.msra.mxu2 %v5311_v6  ;;  %v5539_v6 = vor.u32 %v6111_v39, %v5538_v36  ;;  %v6094_v29 = vld [vmem:[#allocation12 + $0x14] sm:$0xf]  ;;  %v5476_v4 = vld [vmem:[#allocation12 + $0x18] sm:$0xf0]  ;;  %v5567_v2 = vor.u32 %v6116_v53, %v5564_v55  ;;  %v2362_v50 = vrot.slane %v7418_v8, 7 }
 0x4ac   : > { %v5479_v36 = vor.u32 %v6094_v29, %v5476_v4  ;;  %v6114_v39 = vld [vmem:[#allocation12 + $0xb4] sm:$0xf]  ;;  %v6112_v61 = vld [vmem:[#allocation12 + $0xa4] sm:$0xf]  ;;  %v5532_v25 = vld [vmem:[#allocation12 + $0x88] sm:$0xf0] }
 0x4ad   : > { %3202 = vmatpush.bf16.msrb.mxu1 %v5555_v30  ;;  %v6098_v30 = vld [vmem:[#allocation12 + $0x34] sm:$0xf]  ;;  %v5559_v5 = vor.u32 %v6114_v39, %v5556_v40  ;;  %v2364_v10 = vsel %vm906_vm1, %v2362_v50, %v2363_v23  ;;  %v2365_v13 = vsel %vm906_vm1, %v2361_v38, %v2362_v50  ;;  %v6108_v38 = vld [vmem:[#allocation12 + $0x84] sm:$0xf]  ;;  %v6135_v53 = vld [vmem:[#allocation12 + $0x154] sm:$0xf0] }
 0x4ae   : > { %3259 = vmatpush.bf16.msrb.mxu3 %v5503_v62  ;;  %v5495_v46 = vor.u32 %v6098_v30, %v5492_v42  ;;  %v5548_v62 = vld [vmem:[#allocation12 + $0xa8] sm:$0xf0]  ;;  %v7571_v19 = vpack.c.bf16 %v2364_v10, %v2365_v13  ;;  %v6110_v23 = vld [vmem:[#allocation12 + $0x94] sm:$0xf]  ;;  %v5535_v15 = vor.u32 %v6108_v38, %v5532_v25  ;;  %v5652_v42 = vld [vmem:[#allocation12 + $0x178] sm:$0xf0] }
 0x4af   : > { %2821 = vmatpush.bf16.msra.mxu2 %v5303_v28  ;;  %v6120_v28 = vld [vmem:[#allocation12 + $0xe4] sm:$0xf]  ;;  %v5551_v11 = vor.u32 %v6112_v61, %v5548_v62  ;;  %v5626_v4 = vld [vmem:[#allocation12 + $0x140] sm:$0xf]  ;;  %v5628_v39 = vld [vmem:[#allocation12 + $0x148] sm:$0xf0] }
 0x4b0   : > { %5431 = vmatmul.msk.bf16.gmra.mxu0 %vm7477_vm9, %v7482_v63  ;;  %v5583_v45 = vor.u32 %v6120_v28, %v5580_v35  ;;  %v5650_v28 = vld [vmem:[#allocation12 + $0x170] sm:$0xf]  ;;  %v6138_v35 = vld [vmem:[#allocation12 + $0x174] sm:$0xf]  ;;  %v5620_v10 = vld [vmem:[#allocation12 + $0x138] sm:$0xf0] }
 0x4b1   : > { %3203 = vmatpush.bf16.msrb.mxu1 %v5547_v27  ;;  %v5484_v27 = vld [vmem:[#allocation12 + $0x28] sm:$0xf0]  ;;  %v5655_v43 = vor.u32 %v6138_v35, %v5652_v42  ;;  %v5610_v62 = vld [vmem:[#allocation12 + $0x120] sm:$0xf]  ;;  %v6127_v38 = vld [vmem:[#allocation12 + $0x114] sm:$0xf0] }
 0x4b2   : > { %3286 = vmatpush.bf16.msrb.mxu0 %v5583_v45  ;;  %3260 = vmatpush.bf16.msrb.mxu3 %v5495_v46  ;;  %v5642_v45 = vld [vmem:[#allocation12 + $0x160] sm:$0xf]  ;;  %v6137_v46 = vld [vmem:[#allocation12 + $0x164] sm:$0xf0]  ;;  %v5612_v13 = vld [vmem:[#allocation12 + $0x128] sm:$0xf0] }
 0x4b3   : > { %2822 = vmatpush.bf16.msra.mxu2 %v5295_v49  ;;  %v6096_v49 = vld [vmem:[#allocation12 + $0x24] sm:$0xf]  ;;  %v5643_v41 = vor.u32 %v6137_v46, %v5642_v45  ;;  %v6126_v25 = vld [vmem:[#allocation12 + $0x114] sm:$0xf]  ;;  %v6125_v42 = vld [vmem:[#allocation12 + $0x104] sm:$0xf0] }
 0x4b4   : > { %v5487_v54 = vor.u32 %v6096_v49, %v5484_v27  ;;  %v5634_v27 = vld [vmem:[#allocation12 + $0x150] sm:$0xf]  ;;  %v5596_v46 = vld [vmem:[#allocation12 + $0x108] sm:$0xf0] }
 0x4b5   : > { %5451 = vmatmul.msk.bf16.vlgmr.msra.gmra.mxu3 %vm7372_vm15, %v7376_v0  ;;  %3204 = vmatpush.bf16.msrb.mxu1 %v5539_v6  ;;  %v6092_v6 = vld [vmem:[#allocation12 + $0x4] sm:$0xf]  ;;  %v5635_v55 = vor.u32 %v6135_v53, %v5634_v27 }
 0x4b6   : > { %3287 = vmatpush.bf16.msrb.mxu0 %v5575_v47  ;;  %3261 = vmatpush.bf16.msrb.mxu3 %v5487_v54  ;;  %v5471_v33 = vor.u32 %v6092_v6, %v5468_v21  ;;  %v5644_v47 = vld [vmem:[#allocation12 + $0x168] sm:$0xf0]  ;;  %v6134_v54 = vld [vmem:[#allocation12 + $0x154] sm:$0xf]  ;;  %v6131_v6 = vld [vmem:[#allocation12 + $0x134] sm:$0xf0] }
 0x4b7   : > { %2823 = vmatpush.bf16.msra.mxu2 %v5287_v37  ;;  %v2298_v37 = vand.u32 15, %v2250_v3  ;;  %v5647_v49 = vor.u32 %v6136_v7, %v5644_v47  ;;  %v5636_v3 = vld [vmem:[#allocation12 + $0x158] sm:$0xf0]  ;;  %v6130_v21 = vld [vmem:[#allocation12 + $0x134] sm:$0xf] }
 0x4b8   : > { %5407 = vmatmul.msk.bf16.gmra.mxu2 %vm7499_vm11, %v7503_v20  ;;  %5439 = vmatmul.msk.bf16.gmra.mxu1 %vm7499_vm11, %v7503_v20  ;;  %v5639_v29 = vor.u32 %v6134_v54, %v5636_v3  ;;  %v5623_v61 = vor.u32 %v6130_v21, %v5620_v10 }
 0x4b9   : > { %3205 = vmatpush.bf16.msrb.mxu1 %v5531_v34  ;;  %vm6191_vm0 = vcmp.ne.s32.totalorder %v2298_v37, 0  ;;  %v6139_v34 = vld [vmem:[#allocation12 + $0x174] sm:$0xf0] }
 0x4ba   : > { %3288 = vmatpush.bf16.msrb.mxu0 %v5567_v2  ;;  %3262 = vmatpush.bf16.msrb.mxu3 %v5479_v36  ;;  %vm7567_vm4 = vmpackc.low %vm6680_vm14, %vm6191_vm0  ;;  %v5651_v30 = vor.u32 %v6139_v34, %v5650_v28  ;;  %v6133_v2 = vld [vmem:[#allocation12 + $0x144] sm:$0xf0]  ;;  %v6132_v36 = vld [vmem:[#allocation12 + $0x144] sm:$0xf] }
 0x4bb   : > { %2824 = vmatpush.bf16.msra.mxu2 %v5279_v58  ;;  %v5540_v58 = vld [vmem:[#allocation12 + $0x98] sm:$0xf0]  ;;  %v5627_v37 = vor.u32 %v6133_v2, %v5626_v4  ;;  %v5631_v40 = vor.u32 %v6132_v36, %v5628_v39 }
 0x4bc   : > { %v5543_v60 = vor.u32 %v6110_v23, %v5540_v58  ;;  %v5604_v34 = vld [vmem:[#allocation12 + $0x118] sm:$0xf0] }
 0x4bd   : > { %3314 = vmatpush.bf16.msra.mxu1 %v5655_v43  ;;  %v5607_v35 = vor.u32 %v6126_v25, %v5604_v34  ;;  %v6124_v43 = vld [vmem:[#allocation12 + $0x104] sm:$0xf] }
 0x4be   : > { %3289 = vmatpush.bf16.msrb.mxu0 %v5559_v5  ;;  %3263 = vmatpush.bf16.msrb.mxu3 %v5471_v33  ;;  %v5618_v5 = vld [vmem:[#allocation12 + $0x130] sm:$0xf] }
 0x4bf   : > { %3227 = vmatpush.bf16.msrb.mxu2 %v5651_v30  ;;  %v5619_v33 = vor.u32 %v6131_v6, %v5618_v5  ;;  %v5594_v30 = vld [vmem:[#allocation12 + $0x100] sm:$0xf] }
 0x4c0   : > { %5659 = vmatmul.msk.bf16.vlgmr.msra.gmra.mxu0 %vm7456_vm7, %v7461_v32  ;;  %v5595_v45 = vor.u32 %v6125_v42, %v5594_v30 }
 0x4c1   : > { %3315 = vmatpush.bf16.msra.mxu1 %v5647_v49 }
 0x4c2   : > { %3290 = vmatpush.bf16.msrb.mxu0 %v5551_v11  ;;  %v5611_v11 = vor.u32 %v6129_v26, %v5610_v62 }
 0x4c3   : > { %3228 = vmatpush.bf16.msrb.mxu2 %v5643_v41  ;;  %v5599_v41 = vor.u32 %v6124_v43, %v5596_v46 }
 0x4c5   : > { %5455 = vmatmul.msk.bf16.gmra.mxu3 %vm7400_vm3, %v7404_v52  ;;  %3316 = vmatpush.bf16.msra.mxu1 %v5639_v29 }
 0x4c6   : > { %3291 = vmatpush.bf16.msrb.mxu0 %v5543_v60  ;;  %v5602_v60 = vld [vmem:[#allocation12 + $0x110] sm:$0xf] }
 0x4c7   : > { %3229 = vmatpush.bf16.msrb.mxu2 %v5635_v55  ;;  %v5603_v28 = vor.u32 %v6127_v38, %v5602_v60 }
 0x4c8   : > { %5411 = vmatmul.msk.bf16.gmra.mxu2 %vm7538_vm13, %v7542_v16  ;;  %5443 = vmatmul.msk.bf16.gmra.mxu1 %vm7538_vm13, %v7542_v16 }
 0x4c9   : > { %3317 = vmatpush.bf16.msra.mxu1 %v5631_v40 }
 0x4ca   : > { %3292 = vmatpush.bf16.msrb.mxu0 %v5535_v15 }
 0x4cb   : > { %3230 = vmatpush.bf16.msrb.mxu2 %v5627_v37 }
 0x4cd   : > { %3318 = vmatpush.bf16.msra.mxu1 %v5623_v61 }
 0x4cf   : > { %3231 = vmatpush.bf16.msrb.mxu2 %v5619_v33 }
 0x4d0   : > { %5663 = vmatmul.msk.bf16.gmra.mxu0 %vm7499_vm11, %v7503_v20 }
 0x4d3   : > { %3232 = vmatpush.bf16.msrb.mxu2 %v5611_v11 }
 0x4d5   : > { %5459 = vmatmul.msk.bf16.gmra.mxu3 %vm7426_vm5, %v7430_v14 }
 0x4d7   : > { %3233 = vmatpush.bf16.msrb.mxu2 %v5603_v28 }
 0x4d8   : > { %5415 = vmatmul.msk.bf16.gmra.mxu2 %vm7567_vm4, %v7571_v19  ;;  %5447 = vmatmul.msk.bf16.gmra.mxu1 %vm7567_vm4, %v7571_v19 }
 0x4db   : > { %3234 = vmatpush.bf16.msrb.mxu2 %v5595_v45 }
 0x4e0   : > { %5667 = vmatmul.msk.bf16.gmra.mxu0 %vm7538_vm13, %v7542_v16 }
 0x4e5   : > { %5463 = vmatmul.msk.bf16.gmra.mxu3 %vm7477_vm9, %v7482_v63 }
 0x4e8   : > { %2825 = vmatmul.bf16.vlgmr.msra.gmra.mxu2 %v7348_v17  ;;  %3206 = vmatmul.bf16.vlgmr.msrb.gmra.mxu1 %v7348_v17 }
 0x4f0   : > { %5671 = vmatmul.msk.bf16.gmra.mxu0 %vm7567_vm4, %v7571_v19 }
 0x4f5   : > { %5691 = vmatmul.msk.bf16.vlgmr.msrb.gmra.mxu3 %vm7456_vm7, %v7461_v32  ;;  %v6128_v32 = vld [vmem:[#allocation12 + $0x124] sm:$0xf] }
 0x4f6   : > { %v5615_v58 = vor.u32 %v6128_v32, %v5612_v13 }
 0x4f8   : > { %v7593_v50 = vpop.f32.mrf.mxu3  ;;  %2830 = vmatmul.bf16.gmra.mxu2 %v7385_v9  ;;  %3211 = vmatmul.bf16.gmra.mxu1 %v7385_v9 }
 0x4f9   : > { %8682 = vst [vmem:[#allocation24_spill] sm:$0xff] %v7593_v50  ;;  %3319 = vmatpush.bf16.msra.mxu1 %v5615_v58 }
 0x4fd   : > { %v7597_v23 = vpop.f32.mrf.mxu0  ;;  %3320 = vmatpush.bf16.msra.mxu1 %v5607_v35 }
 0x4fe   : > { %8683 = vst [vmem:[#allocation25_spill] sm:$0xff] %v7597_v23 }
 0x500   : > { %v7599_v15 = vpop.f32.mrf.mxu3  ;;  %3293 = vmatmul.bf16.vlgmr.msrb.gmra.mxu0 %v7348_v17 }
 0x501   : > { %8684 = vst [vmem:[#allocation26_spill] sm:$0xff] %v7599_v15  ;;  %3321 = vmatpush.bf16.msra.mxu1 %v5599_v41 }
 0x505   : > { %v7602_v7 = vpop.f32.mrf.mxu0  ;;  %5695 = vmatmul.msk.bf16.gmra.mxu3 %vm7499_vm11, %v7503_v20 }
 0x506   : > { %8685 = vst [vmem:[#allocation27_spill] sm:$0xff] %v7602_v7 }
 0x508   : > { %v7607_v17 = vpop.f32.mrf.mxu3  ;;  %2835 = vmatmul.bf16.gmra.mxu2 %v7414_v31  ;;  %3216 = vmatmul.bf16.gmra.mxu1 %v7414_v31 }
 0x509   : > { %8686 = vst [vmem:[#allocation28_spill] sm:$0xff] %v7607_v17 }
 0x50d   : > { %v7611_v47 = vpop.f32.mrf.mxu0 }
 0x50e   : > { %8687 = vst [vmem:[#allocation29_spill] sm:$0xff] %v7611_v47 }
 0x510   : > { %v7613_v49 = vpop.f32.mrf.mxu3  ;;  %3298 = vmatmul.bf16.gmra.mxu0 %v7385_v9 }
 0x511   : > { %8688 = vst [vmem:[#allocation30_spill] sm:$0xff] %v7613_v49 }
 0x515   : > { %v7616_v27 = vpop.f32.mrf.mxu0  ;;  %5699 = vmatmul.msk.bf16.gmra.mxu3 %vm7538_vm13, %v7542_v16 }
 0x516   : > { %8689 = vst [vmem:[#allocation31_spill] sm:$0xff] %v7616_v27 }
 0x518   : > { %v7621_v22 = vpop.f32.mrf.mxu3  ;;  %2840 = vmatmul.bf16.gmra.mxu2 %v7446_v24  ;;  %3221 = vmatmul.bf16.gmra.mxu1 %v7446_v24 }
 0x519   : > { %8690 = vst [vmem:[#allocation32_spill] sm:$0xff] %v7621_v22 }
 0x51d   : > { %v7625_v20 = vpop.f32.mrf.mxu0 }
 0x51e   : > { %8691 = vst [vmem:[#allocation33_spill] sm:$0xff] %v7625_v20 }
 0x520   : > { %v7627_v53 = vpop.f32.mrf.mxu3  ;;  %3303 = vmatmul.bf16.gmra.mxu0 %v7414_v31 }
 0x521   : > { %8692 = vst [vmem:[#allocation34_spill] sm:$0xff] %v7627_v53 }
 0x525   : > { %v7630_v54 = vpop.f32.mrf.mxu0  ;;  %v7632_v9 = vpop.f32.mrf.mxu1  ;;  %5703 = vmatmul.msk.bf16.gmra.mxu3 %vm7567_vm4, %v7571_v19 }
 0x526   : > { %8693 = vst [vmem:[#allocation35_spill] sm:$0xff] %v7630_v54 }
 0x527   : > { %8694 = vst [vmem:[#allocation36_spill] sm:$0xff] %v7632_v9 }
 0x528   : > { %v7637_v44 = vpop.f32.mrf.mxu3  ;;  %5675 = vmatmul.msk.bf16.vlgmr.msrb.gmra.mxu2 %vm7372_vm15, %v7376_v0  ;;  %5707 = vmatmul.msk.bf16.vlgmr.msra.gmra.mxu1 %vm7372_vm15, %v7376_v0 }
 0x529   : > { %8695 = vst [vmem:[#allocation37_spill] sm:$0xff] %v7637_v44 }
 0x52b   : > { %v7645_v16 = vpop.f32.mrf.mxu2 }
 0x52c   : > { %8696 = vst [vmem:[#allocation38_spill] sm:$0xff] %v7645_v16 }
 0x52d   : > { %v7647_v31 = vpop.f32.mrf.mxu0  ;;  %v7649_v55 = vpop.f32.mrf.mxu1 }
 0x52e   : > { %8697 = vst [vmem:[#allocation39_spill] sm:$0xff] %v7647_v31 }
 0x52f   : > { %8698 = vst [vmem:[#allocation40_spill] sm:$0xff] %v7649_v55 }
 0x530   : > { %v7651_v3 = vpop.f32.mrf.mxu3  ;;  %3308 = vmatmul.bf16.gmra.mxu0 %v7446_v24 }
 0x533   : > { %v7654_v8 = vpop.f32.mrf.mxu2 }
 0x534   : > { %8699 = vst [vmem:[#allocation41_spill] sm:$0xff] %v7654_v8 }
 0x535   : > { %v7656_v19 = vpop.f32.mrf.mxu0  ;;  %v7658_v29 = vpop.f32.mrf.mxu1 }
 0x536   : > { %8700 = vst [vmem:[#allocation42_spill] sm:$0xff] %v7656_v19 }
 0x537   : > { %8701 = vst [vmem:[#allocation43_spill] sm:$0xff] %v7658_v29 }
 0x538   : > { %v7660_v4 = vpop.f32.mrf.mxu3  ;;  %5679 = vmatmul.msk.bf16.gmra.mxu2 %vm7400_vm3, %v7404_v52  ;;  %5711 = vmatmul.msk.bf16.gmra.mxu1 %vm7400_vm3, %v7404_v52 }
 0x539   : > { %8702 = vst [vmem:[#allocation44_spill] sm:$0xff] %v7660_v4 }
 0x53b   : > { %v7668_v59 = vpop.f32.mrf.mxu2 }
 0x53c   : > { %8703 = vst [vmem:[#allocation45_spill] sm:$0xff] %v7668_v59 }
 0x53d   : > { %v7670_v0 = vpop.f32.mrf.mxu1  ;;  %v3178_v24 = vpop.f32.mrf.mxu0 }
 0x540   : > { %v7672_v2 = vpop.f32.mrf.mxu3 }
 0x541   : > { %8704 = vst [vmem:[#allocation46_spill] sm:$0xff] %v7672_v2 }
 0x543   : > { %v7674_v36 = vpop.f32.mrf.mxu2 }
 0x544   : > { %8705 = vst [vmem:[#allocation47_spill] sm:$0xff] %v7674_v36 }
 0x545   : > { %v7676_v37 = vpop.f32.mrf.mxu1  ;;  %v7678_v39 = vpop.f32.mrf.mxu0 }
 0x548   : > { %v7680_v40 = vpop.f32.mrf.mxu3  ;;  %5683 = vmatmul.msk.bf16.gmra.mxu2 %vm7426_vm5, %v7430_v14  ;;  %5715 = vmatmul.msk.bf16.gmra.mxu1 %vm7426_vm5, %v7430_v14  ;;  %v2923_v14 = vld [vmem:[%s8574_s18] sm:$0x3] }
 0x549   : > { %8706 = vst [vmem:[#allocation48_spill] sm:$0xff] %v7680_v40  ;;  %v7715_v32 = vperm.slane %v2923_v14, 0  ;;  %v7737_v41 = vperm.slane %v2923_v14, 1 }
 0x54b   : > { %v7688_v48 = vpop.f32.mrf.mxu2  ;;  %v3179_v58 = vadd.f32 %v3178_v24, %v7715_v32 }
 0x54c   : > { %8707 = vst [vmem:[#allocation49_spill] sm:$0xff] %v7688_v48 }
 0x54d   : > { %v7690_v52 = vpop.f32.mrf.mxu1  ;;  %v3183_v5 = vpop.f32.mrf.mxu0 }
 0x54e   : > { %v3184_v42 = vadd.f32 %v3183_v5, %v7715_v32 }
 0x550   : > { %v7692_v6 = vpop.f32.mrf.mxu3 }
 0x551   : > { %8708 = vst [vmem:[#allocation50_spill] sm:$0xff] %v7692_v6 }
 0x553   : > { %v7694_v21 = vpop.f32.mrf.mxu2 }
 0x555   : > { %v7696_v33 = vpop.f32.mrf.mxu1  ;;  %v7698_v10 = vpop.f32.mrf.mxu0 }
 0x558   : > { %v7700_v61 = vpop.f32.mrf.mxu3  ;;  %5687 = vmatmul.msk.bf16.gmra.mxu2 %vm7477_vm9, %v7482_v63  ;;  %5719 = vmatmul.msk.bf16.gmra.mxu1 %vm7477_vm9, %v7482_v63 }
 0x559   : > { %8709 = vst [vmem:[#allocation51_spill] sm:$0xff] %v7700_v61 }
 0x55b   : > { %v7708_v12 = vpop.f32.mrf.mxu2 }
 0x55d   : > { %v7713_v62 = vpop.f32.mrf.mxu1  ;;  %v3188_v26 = vpop.f32.mrf.mxu0 }
 0x55e   : > { %v3189_v23 = vadd.f32 %v3188_v26, %v7715_v32 }
 0x560   : > { %v7717_v11 = vpop.f32.mrf.mxu3 }
 0x561   : > { %8710 = vst [vmem:[#allocation52_spill] sm:$0xff] %v7717_v11 }
 0x563   : > { %v7719_v13 = vpop.f32.mrf.mxu2 }
 0x565   : > { %v7722_v60 = vpop.f32.mrf.mxu0  ;;  %v3207_v56 = vpop.f32.mrf.mxu1 }
 0x566   : > { %v3208_v63 = vadd.f32 %v3207_v56, %v3179_v58 }
 0x568   : > { %v7724_v38 = vpop.f32.mrf.mxu3 }
 0x569   : > { %8711 = vst [vmem:[#allocation53_spill] sm:$0xff] %v7724_v38 }
 0x56b   : > { %v7726_v25 = vpop.f32.mrf.mxu2 }
 0x56c   : > { %8712 = vst [vmem:[#allocation54_spill] sm:$0xff] %v7726_v25 }
 0x56d   : > { %v3193_v28 = vpop.f32.mrf.mxu0  ;;  %v7728_v34 = vpop.f32.mrf.mxu1 }
 0x56e   : > { %v3194_v47 = vadd.f32 %v3193_v28, %v7715_v32 }
 0x570   : > { %v7730_v35 = vpop.f32.mrf.mxu3 }
 0x573   : > { %v7732_v30 = vpop.f32.mrf.mxu2 }
 0x574   : > { %8713 = vst [vmem:[#allocation55_spill] sm:$0xff] %v7732_v30 }
 0x575   : > { %v3195_v43 = vpop.f32.mrf.mxu0  ;;  %v3212_v45 = vpop.f32.mrf.mxu1 }
 0x576   : > { %v7735_v46 = vadd.f32 %v3212_v45, %v3184_v42  ;;  %v3196_v48 = vadd.f32 %v3195_v43, %v7715_v32 }
 0x578   : > { %v3265_v24 = vpop.f32.mrf.mxu3 }
 0x579   : > { %v3266_v56 = vadd.f32 %v3265_v24, %v7737_v41 }
 0x57b   : > { %v7739_v58 = vpop.f32.mrf.mxu2 }
 0x57c   : > { %8714 = vst [vmem:[#allocation56_spill] sm:$0xff] %v7739_v58 }
 0x57d   : > { %v7742_v57 = vpop.f32.mrf.mxu1  ;;  %v3294_v51 = vpop.f32.mrf.mxu0 }
 0x57e   : > { %v3295_v18 = vadd.f32 %v3294_v51, %v3266_v56 }
 0x580   : > { %v3267_v27 = vpop.f32.mrf.mxu3 }
 0x583   : > { %v7744_v1 = vpop.f32.mrf.mxu2 }
 0x584   : > { %8715 = vst [vmem:[#allocation57_spill] sm:$0xff] %v7744_v1 }
 0x585   : > { %v3217_v5 = vpop.f32.mrf.mxu1  ;;  %v7760_v56 = vpop.f32.mrf.mxu0 }
 0x586   : > { %v7747_v7 = vadd.f32 %v3217_v5, %v3189_v23 }
 0x588   : > { %v3270_v23 = vpop.f32.mrf.mxu3 }
 0x58b   : > { %v7749_v42 = vpop.f32.mrf.mxu2 }
 0x58c   : > { %8716 = vst [vmem:[#allocation58_spill] sm:$0xff] %v7749_v42 }
 0x58d   : > { %v7751_v14 = vpop.f32.mrf.mxu1  ;;  %v3299_v20 = vpop.f32.mrf.mxu0 }
 0x593   : > { %v7753_v45 = vpop.f32.mrf.mxu2 }
 0x595   : > { %v3222_v24 = vpop.f32.mrf.mxu1 }
 0x596   : > { %v7756_v50 = vadd.f32 %v3222_v24, %v3194_v47  ;;  %v3272_v47 = vpop.f32.mrf.mxu3  ;;  %v3301_v24 = vpop.f32.mrf.mxu0 }
 0x597   : > { %v3273_v42 = vadd.f32 %v3272_v47, %v7737_v41  ;;  %v8728_v47 = vld [vmem:[#allocation47_spill] sm:$0xff] }
 0x59b   : > { %v7758_v51 = vpop.f32.mrf.mxu2 }
 0x59d   : > { %v3224_v26 = vpop.f32.mrf.mxu1 }
 0x59e   : > { %v3275_v40 = vpop.f32.mrf.mxu3  ;;  %v3304_v25 = vpop.f32.mrf.mxu0 }
 0x59f   : > { %v3276_v29 = vadd.f32 %v3275_v40, %v7737_v41 }
 0x5a3   : > { %v7762_v4 = vpop.f32.mrf.mxu2 }
 0x5a5   : > { %v3323_v5 = vpop.f32.mrf.mxu1 }
 0x5a6   : > { %v7764_v15 = vadd.f32 %v3323_v5, %v3295_v18  ;;  %v3277_v31 = vpop.f32.mrf.mxu3  ;;  %v3306_v18 = vpop.f32.mrf.mxu0 }
 0x5a7   : > { %v3278_v11 = vadd.f32 %v3277_v31, %v7737_v41  ;;  %v3271_v31 = vadd.f32 %v3270_v23, %v7737_v41  ;;  %v8726_v23 = vld [vmem:[#allocation52_spill] sm:$0xff] }
 0x5ab   : > { %v3236_v2 = vpop.f32.mrf.mxu2 }
 0x5ac   : > { %v7766_v17 = vadd.f32 %v3236_v2, %v3208_v63 }
 0x5ad   : > { %v7768_v28 = vpop.f32.mrf.mxu1 }
 0x5ae   : > { %8717 = vst [vmem:[#allocation59_spill] sm:$0xff] %v7766_v17  ;;  %v3280_v2 = vpop.f32.mrf.mxu3  ;;  %v3309_v22 = vpop.f32.mrf.mxu0 }
 0x5af   : > { %v3281_v53 = vadd.f32 %v3280_v2, %v7737_v41  ;;  %v3225_v2 = vadd.f32 %v3224_v26, %v3196_v48  ;;  %v8725_v26 = vld [vmem:[#allocation57_spill] sm:$0xff] }
 0x5b1   : > { %v3310_v1 = vadd.f32 %v3309_v22, %v3281_v53  ;;  %v3191_v22 = vadd.f32 %v7722_v60, %v7715_v32 }
 0x5b3   : > { %v7770_v16 = vpop.f32.mrf.mxu2  ;;  %v3220_v40 = vadd.f32 %v7751_v14, %v3191_v22  ;;  %v8733_v22 = vld [vmem:[#allocation42_spill] sm:$0xff] }
 0x5b4   : > { %8718 = vst [vmem:[#allocation60_spill] sm:$0xff] %v7770_v16  ;;  %v3307_v16 = vadd.f32 %v3306_v18, %v3278_v11  ;;  %v3300_v11 = vadd.f32 %v3299_v20, %v3271_v31  ;;  %v8729_v18 = vld [vmem:[#allocation34_spill] sm:$0xff]  ;;  %v8734_v31 = vld [vmem:[#allocation36_spill] sm:$0xff] }
 0x5b5   : > { %v3328_v54 = vpop.f32.mrf.mxu1 }
 0x5b6   : > { %v3282_v19 = vpop.f32.mrf.mxu3  ;;  %v3311_v17 = vpop.f32.mrf.mxu0 }
 0x5b7   : > { %v3283_v61 = vadd.f32 %v3282_v19, %v7737_v41  ;;  %v2247_v19 = vld [vmem:[%s8572_s16] sm:$0x3] }
 0x5b9   : > { %v3312_v36 = vadd.f32 %v3311_v17, %v3283_v61  ;;  %v3305_v17 = vadd.f32 %v3304_v25, %v3276_v29  ;;  %v3186_v29 = vadd.f32 %v7698_v10, %v7715_v32  ;;  %v3329_v25 = vadd.f32 %v3328_v54, %v3300_v11  ;;  %v8737_v11 = vld [vmem:[#allocation55_spill] sm:$0xff] }
 0x5ba   : > { %v3181_v10 = vadd.f32 %v7678_v39, %v7715_v32 }
 0x5bb   : > { %v7772_v49 = vpop.f32.mrf.mxu2  ;;  %v3215_v20 = vadd.f32 %v7742_v57, %v3186_v29  ;;  %v8721_v14 = vld [vmem:[#allocation60_spill] sm:$0xff] }
 0x5bc   : > { %v3242_v32 = vadd.f32 %v7772_v49, %v7735_v46  ;;  %v8723_v49 = vld [vmem:[#allocation49_spill] sm:$0xff] }
 0x5bd   : > { %v3330_v8 = vpop.f32.mrf.mxu1 }
 0x5c3   : > { %v7774_v6 = vpop.f32.mrf.mxu2 }
 0x5c5   : > { %v3333_v5 = vpop.f32.mrf.mxu1 }
 0x5cb   : > { %v3246_v30 = vpop.f32.mrf.mxu2 }
 0x5cd   : > { %v3335_v63 = vpop.f32.mrf.mxu1 }
 0x5ce   : > { %v3336_v61 = vadd.f32 %v3335_v63, %v3307_v16  ;;  %v8730_v63 = vld [vmem:[#allocation56_spill] sm:$0xff] }
 0x5d3   : > { %v3248_v59 = vpop.f32.mrf.mxu2 }
 0x5d4   : > { %v3249_v43 = vadd.f32 %v3248_v59, %v3220_v40 }
 0x5d5   : > { %v3338_v9 = vpop.f32.mrf.mxu1 }
 0x5d6   : > { %v3339_v38 = vadd.f32 %v3338_v9, %v3310_v1  ;;  %v2458_v9 = vperm.slane %v2247_v19, 1 }
 0x5d8   : > { %v2815_v60 = vadd.f32 %v7713_v62, %v2458_v9  ;;  %v2810_v59 = vadd.f32 %v7690_v52, %v2458_v9  ;;  %v2808_v57 = vadd.f32 %v7676_v37, %v2458_v9  ;;  %v2805_v52 = vadd.f32 %v7670_v0, %v2458_v9 }
 0x5da   : > { %v2834_v0 = vadd.f32 %v8725_v26, %v2805_v52  ;;  %v3346_v26 = vld [vmem:[#allocation13 + $0x18] sm:$0xff] }
 0x5db   : > { %v3251_v58 = vpop.f32.mrf.mxu2 }
 0x5dc   : > { %v3252_v16 = vadd.f32 %v3251_v58, %v7756_v50  ;;  %v2844_v50 = vadd.f32 %v7762_v4, %v2815_v60  ;;  %v3247_v58 = vadd.f32 %v3246_v30, %v7747_v7  ;;  %v3210_v7 = vadd.f32 %v7728_v34, %v3181_v10  ;;  %v8739_v60 = vld [vmem:[#allocation39_spill] sm:$0xff] }
 0x5dd   : > { %v3340_v55 = vpop.f32.mrf.mxu1  ;;  %v2839_v30 = vadd.f32 %v7753_v45, %v2810_v59  ;;  %v8744_v10 = vld [vmem:[#allocation35_spill] sm:$0xff]  ;;  %v8745_v59 = vld [vmem:[#allocation38_spill] sm:$0xff] }
 0x5de   : > { %v3341_v44 = vadd.f32 %v3340_v55, %v3312_v36  ;;  %v3302_v55 = vadd.f32 %v3301_v24, %v3273_v42  ;;  %v3334_v36 = vadd.f32 %v3333_v5, %v3305_v17  ;;  %v2873_v39 = vadd.f32 %v7730_v35, %v2844_v50  ;;  %v8720_v42 = vld [vmem:[#allocation53_spill] sm:$0xff]  ;;  %v8722_v35 = vld [vmem:[#allocation43_spill] sm:$0xff]  ;;  %v8742_v50 = vld [vmem:[#allocation54_spill] sm:$0xff] }
 0x5df   : > { %v3239_v45 = vadd.f32 %v8721_v14, %v3210_v7 }
 0x5e0   : > { %3424 = vmatpush.msra.mxu3 %v3341_v44  ;;  %v3268_v44 = vadd.f32 %v3267_v27, %v7737_v41  ;;  %v3331_v48 = vadd.f32 %v3330_v8, %v3302_v55  ;;  %v2457_v27 = vperm.slane %v2247_v19, 0  ;;  %v2813_v41 = vadd.f32 %v7696_v33, %v2458_v9 }
 0x5e1   : > { %v3244_v33 = vadd.f32 %v7774_v6, %v3215_v20  ;;  %v2798_v55 = vadd.f32 %v8734_v31, %v2458_v9  ;;  %v6167_v31 = vld [vmem:[%s8756_s25 + $0xd8] sm:$0xff] }
 0x5e2   : > { %3425 = vmatpush.msra.mxu3 %v3339_v38  ;;  %v3297_v38 = vadd.f32 %v7760_v56, %v3268_v44  ;;  %v2728_v54 = vadd.f32 %v7719_v13, %v2457_v27  ;;  %v2842_v62 = vadd.f32 %v7758_v51, %v2813_v41  ;;  %v2726_v4 = vadd.f32 %v7708_v12, %v2457_v27  ;;  %v8719_v13 = vld [vmem:[#allocation58_spill] sm:$0xff]  ;;  %v8724_v56 = vld [vmem:[#allocation37_spill] sm:$0xff]  ;;  %v8736_v44 = vld [vmem:[#allocation32_spill] sm:$0xff] }
 0x5e3   : > { %v3253_v53 = vpop.f32.mrf.mxu2  ;;  %v2723_v6 = vadd.f32 %v7694_v21, %v2457_v27  ;;  %v2837_v12 = vadd.f32 %v8719_v13, %v2808_v57  ;;  %v2803_v51 = vadd.f32 %v8722_v35, %v2458_v9  ;;  %v2721_v46 = vadd.f32 %v8723_v49, %v2457_v27  ;;  %v8741_v41 = vld [vmem:[#allocation30_spill] sm:$0xff]  ;;  %v8751_v13 = vld [vmem:[#allocation31_spill] sm:$0xff]  ;;  %v8755_v49 = vld [vmem:[#allocation25_spill] sm:$0xff] }
 0x5e4   : > { %v3254_v1 = vadd.f32 %v3253_v53, %v3225_v2  ;;  %3426 = vmatpush.msra.mxu3 %v3336_v61  ;;  %v3326_v8 = vadd.f32 %v7768_v28, %v3297_v38  ;;  %v2757_v37 = vadd.f32 %v7651_v3, %v2728_v54  ;;  %v2871_v34 = vadd.f32 %v8720_v42, %v2842_v62  ;;  %v8727_v3 = vld [vmem:[#allocation40_spill] sm:$0xff]  ;;  %v8731_v2 = vld [vmem:[#allocation51_spill] sm:$0xff] }
 0x5e5   : > { %v2868_v21 = vadd.f32 %v8726_v23, %v2839_v30  ;;  %v2800_v28 = vadd.f32 %v8727_v3, %v2458_v9  ;;  %v2718_v24 = vadd.f32 %v8728_v47, %v2457_v27  ;;  %v2752_v5 = vadd.f32 %v8729_v18, %v2723_v6  ;;  %v8732_v61 = vld [vmem:[#allocation59_spill] sm:$0xff]  ;;  %v8748_v30 = vld [vmem:[#allocation33_spill] sm:$0xff]  ;;  %v8750_v6 = vld [vmem:[#allocation44_spill] sm:$0xff] }
 0x5e6   : > { %3359 = vmatpush.msra.mxu2 %v3254_v1  ;;  %3427 = vmatpush.msra.mxu3 %v3334_v36  ;;  %v2832_v19 = vadd.f32 %v8730_v63, %v2803_v51  ;;  %v2866_v17 = vadd.f32 %v8731_v2, %v2837_v12  ;;  %v2786_v53 = vadd.f32 %v8733_v22, %v2757_v37  ;;  %v8735_v36 = vld [vmem:[#allocation45_spill] sm:$0xff]  ;;  %v3343_v42 = vld [vmem:[#allocation13] sm:$0xff]  ;;  %v8754_v35 = vld [vmem:[#allocation27_spill] sm:$0xff] }
 0x5e7   : > { %v2716_v1 = vadd.f32 %v8735_v36, %v2457_v27  ;;  %v2750_v40 = vadd.f32 %v8736_v44, %v2721_v46  ;;  %v2747_v20 = vadd.f32 %v8741_v41, %v2718_v24  ;;  %v2781_v54 = vadd.f32 %v8744_v10, %v2752_v5  ;;  %v3348_v23 = vld [vmem:[#allocation13 + $0x28] sm:$0xff]  ;;  %v3350_v3 = vld [vmem:[#allocation13 + $0x38] sm:$0xff]  ;;  %v3353_v24 = vld [vmem:[#allocation13 + $0x50] sm:$0xff] }
 0x5e8   : > { %3360 = vmatpush.msra.mxu2 %v3252_v16  ;;  %3428 = vmatpush.msra.mxu3 %v3331_v48  ;;  %v2829_v48 = vadd.f32 %v8737_v11, %v2800_v28  ;;  %v8738_v16 = vld [vmem:[#allocation50_spill] sm:$0xff]  ;;  %v2711_v62 = vadd.f32 %v8745_v59, %v2457_v27  ;;  %v3351_v28 = vld [vmem:[#allocation13 + $0x40] sm:$0xff]  ;;  %v3352_v47 = vld [vmem:[#allocation13 + $0x48] sm:$0xff] }
 0x5e9   : > { %v2863_v29 = vadd.f32 %v8738_v16, %v2834_v0  ;;  %v2776_v12 = vadd.f32 %v8751_v13, %v2747_v20  ;;  %v3347_v0 = vld [vmem:[#allocation13 + $0x20] sm:$0xff]  ;;  %v6171_v18 = vld [vmem:[%s8756_s25 + $0xf8] sm:$0xff]  ;;  %v6170_v5 = vld [vmem:[%s8756_s25 + $0xf0] sm:$0xff] }
 0x5ea   : > { %3361 = vmatpush.msra.mxu2 %v3249_v43  ;;  %3429 = vmatpush.msra.mxu3 %v3329_v25  ;;  %v8740_v25 = vld [vmem:[#allocation41_spill] sm:$0xff]  ;;  %v6163_v63 = vld [vmem:[%s8756_s25 + $0xb8] sm:$0xff] }
 0x5eb   : > { %v2713_v43 = vadd.f32 %v8740_v25, %v2457_v27  ;;  %v8753_v27 = vld [vmem:[#allocation29_spill] sm:$0xff] }
 0x5ec   : > { %3362 = vmatpush.msra.mxu2 %v3247_v58  ;;  %3430 = vmatpush.msra.mxu3 %v3326_v8  ;;  %v2827_v8 = vadd.f32 %v8742_v50, %v2798_v55  ;;  %v8743_v58 = vld [vmem:[#allocation48_spill] sm:$0xff]  ;;  %v6166_v36 = vld [vmem:[%s8756_s25 + $0xd0] sm:$0xff] }
 0x5ed   : > { %v2861_v9 = vadd.f32 %v8743_v58, %v2832_v19  ;;  %v3354_v19 = vld [vmem:[#allocation13 + $0x58] sm:$0xff]  ;;  %v6169_v2 = vld [vmem:[%s8756_s25 + $0xe8] sm:$0xff]  ;;  %v6158_v11 = vld [vmem:[%s8756_s25 + $0x90] sm:$0xff] }
 0x5ee   : > { %3363 = vmatpush.msra.mxu2 %v3244_v33  ;;  %3431 = vmatpush.msra.mxu3 %v7764_v15  ;;  %v2755_v15 = vadd.f32 %v8724_v56, %v2726_v4  ;;  %v8746_v33 = vld [vmem:[#allocation28_spill] sm:$0xff]  ;;  %v8747_v4 = vld [vmem:[#allocation46_spill] sm:$0xff]  ;;  %v2856_v37 = vadd.f32 %v8750_v6, %v2827_v8  ;;  %v3344_v56 = vld [vmem:[#allocation13 + $0x8] sm:$0xff] }
 0x5ef   : > { %v2745_v57 = vadd.f32 %v8746_v33, %v2716_v1  ;;  %v2858_v7 = vadd.f32 %v8747_v4, %v2829_v48  ;;  %v6161_v22 = vld [vmem:[%s8756_s25 + $0xa8] sm:$0xff]  ;;  %v6160_v55 = vld [vmem:[%s8756_s25 + $0xa0] sm:$0xff]  ;;  %v6159_v1 = vld [vmem:[%s8756_s25 + $0x98] sm:$0xff] }
 0x5f0   : > { %3364 = vmatpush.msra.mxu2 %v3242_v32  ;;  %3432 = vmatpush.msra.mxu3 %v2873_v39  ;;  %v2784_v38 = vadd.f32 %v8739_v60, %v2755_v15  ;;  %v2779_v39 = vadd.f32 %v8748_v30, %v2750_v40  ;;  %v8749_v32 = vld [vmem:[#allocation26_spill] sm:$0xff]  ;;  %v3356_v44 = vld [vmem:[#allocation13 + $0x68] sm:$0xff]  ;;  %v6164_v48 = vld [vmem:[%s8756_s25 + $0xc0] sm:$0xff] }
 0x5f1   : > { %v2742_v52 = vadd.f32 %v8749_v32, %v2713_v43  ;;  %v3345_v15 = vld [vmem:[#allocation13 + $0x10] sm:$0xff]  ;;  %v6165_v40 = vld [vmem:[%s8756_s25 + $0xc8] sm:$0xff]  ;;  %v6156_v60 = vld [vmem:[%s8756_s25 + $0x80] sm:$0xff] }
 0x5f2   : > { %3365 = vmatpush.msra.mxu2 %v3239_v45  ;;  %3433 = vmatpush.msra.mxu3 %v2871_v34  ;;  %v8752_v34 = vld [vmem:[#allocation24_spill] sm:$0xff]  ;;  %v2774_v45 = vadd.f32 %v8753_v27, %v2745_v57 }
 0x5f3   : > { %v2740_v14 = vadd.f32 %v8752_v34, %v2711_v62  ;;  %v2771_v51 = vadd.f32 %v8754_v35, %v2742_v52  ;;  %v6157_v16 = vld [vmem:[%s8756_s25 + $0x88] sm:$0xff] }
 0x5f4   : > { %3366 = vmatpush.msra.mxu2 %v8732_v61  ;;  %3434 = vmatpush.msra.mxu3 %v2868_v21  ;;  %v3349_v21 = vld [vmem:[#allocation13 + $0x30] sm:$0xff]  ;;  %v6168_v61 = vld [vmem:[%s8756_s25 + $0xe0] sm:$0xff] }
 0x5f5   : > { %v2769_v46 = vadd.f32 %v8755_v49, %v2740_v14  ;;  %v8757_v30 = vld [vmem:[#allocation20_spill] sm:$0xff] }
 0x5f6   : > { %3367 = vmatpush.msra.mxu2 %v2786_v53  ;;  %3435 = vmatpush.msra.mxu3 %v2866_v17  ;;  %v6162_v17 = vld [vmem:[%s8756_s25 + $0xb0] sm:$0xff]  ;;  %v3355_v53 = vld [vmem:[#allocation13 + $0x60] sm:$0xff] }
 0x5f8   : > { %3368 = vmatpush.msra.mxu2 %v2784_v38  ;;  %3436 = vmatpush.msra.mxu3 %v2863_v29  ;;  %v3357_v29 = vld [vmem:[#allocation13 + $0x70] sm:$0xff]  ;;  %v3358_v38 = vld [vmem:[#allocation13 + $0x78] sm:$0xff] }
 0x5fa   : > { %3369 = vmatpush.msra.mxu2 %v2781_v54  ;;  %3437 = vmatpush.msra.mxu3 %v2861_v9 }
 0x5fc   : > { %3370 = vmatpush.msra.mxu2 %v2779_v39  ;;  %3438 = vmatpush.msra.mxu3 %v2858_v7 }
 0x5fe   : > { %3371 = vmatpush.msra.mxu2 %v2776_v12  ;;  %3439 = vmatpush.msra.mxu3 %v2856_v37 }
 0x5ff   : > { %3440 = vmatmul.f32.vlgmr.msra.gmra.mxu3 %v3343_v42 }
 0x600   : > { %3372 = vmatpush.msra.mxu2 %v2774_v45  ;;  %4560 = vmatpush.bf16.msrb.mxu3 %v6171_v18 }
 0x602   : > { %3373 = vmatpush.msra.mxu2 %v2771_v51 }
 0x604   : > { %3374 = vmatpush.msra.mxu2 %v2769_v46  ;;  %4561 = vmatpush.bf16.msrb.mxu3 %v6170_v5 }
 0x605   : > { %3375 = vmatmul.f32.vlgmr.msra.gmra.mxu2 %v3343_v42 }
 0x606   : > { %4511 = vmatpush.bf16.msrb.mxu2 %v6163_v63 }
 0x607   : > { %3443 = vmatmul.f32.gmra.mxu3 %v3344_v56 }
 0x608   : > { %4562 = vmatpush.bf16.msrb.mxu3 %v6169_v2 }
 0x60a   : > { %4512 = vmatpush.bf16.msrb.mxu2 %v6162_v17 }
 0x60c   : > { %4563 = vmatpush.bf16.msrb.mxu3 %v6168_v61 }
 0x60d   : > { %3378 = vmatmul.f32.gmra.mxu2 %v3344_v56 }
 0x60e   : > { %4513 = vmatpush.bf16.msrb.mxu2 %v6161_v22 }
 0x60f   : > { %3446 = vmatmul.f32.gmra.mxu3 %v3345_v15 }
 0x610   : > { %4564 = vmatpush.bf16.msrb.mxu3 %v6167_v31 }
 0x612   : > { %4514 = vmatpush.bf16.msrb.mxu2 %v6160_v55 }
 0x614   : > { %4565 = vmatpush.bf16.msrb.mxu3 %v6166_v36 }
 0x615   : > { %3381 = vmatmul.f32.gmra.mxu2 %v3345_v15 }
 0x616   : > { %4515 = vmatpush.bf16.msrb.mxu2 %v6159_v1  ;;  %v6147_v1 = vld [vmem:[%s8756_s25 + $0x38] sm:$0xff] }
 0x617   : > { %3449 = vmatmul.f32.gmra.mxu3 %v3346_v26  ;;  %4413 = vmatpush.bf16.msra.mxu0 %v6147_v1  ;;  %v6144_v1 = vld [vmem:[%s8756_s25 + $0x20] sm:$0xff] }
 0x618   : > { %4566 = vmatpush.bf16.msrb.mxu3 %v6165_v40 }
 0x61a   : > { %4516 = vmatpush.bf16.msrb.mxu2 %v6158_v11  ;;  %v6153_v11 = vld [vmem:[%s8756_s25 + $0x68] sm:$0xff] }
 0x61c   : > { %4567 = vmatpush.bf16.msrb.mxu3 %v6164_v48 }
 0x61d   : > { %3384 = vmatmul.f32.gmra.mxu2 %v3346_v26 }
 0x61e   : > { %4517 = vmatpush.bf16.msrb.mxu2 %v6157_v16 }
 0x61f   : > { %3452 = vmatmul.f32.gmra.mxu3 %v3347_v0 }
 0x622   : > { %4518 = vmatpush.bf16.msrb.mxu2 %v6156_v60 }
 0x625   : > { %3387 = vmatmul.f32.gmra.mxu2 %v3347_v0 }
 0x627   : > { %3455 = vmatmul.f32.gmra.mxu3 %v3348_v23 }
 0x62d   : > { %3390 = vmatmul.f32.gmra.mxu2 %v3348_v23 }
 0x62f   : > { %3458 = vmatmul.f32.gmra.mxu3 %v3349_v21 }
 0x635   : > { %3393 = vmatmul.f32.gmra.mxu2 %v3349_v21 }
 0x637   : > { %3461 = vmatmul.f32.gmra.mxu3 %v3350_v3 }
 0x63d   : > { %3396 = vmatmul.f32.gmra.mxu2 %v3350_v3 }
 0x63f   : > { %3464 = vmatmul.f32.gmra.mxu3 %v3351_v28 }
 0x645   : > { %3399 = vmatmul.f32.gmra.mxu2 %v3351_v28 }
 0x647   : > { %3467 = vmatmul.f32.gmra.mxu3 %v3352_v47 }
 0x64d   : > { %3402 = vmatmul.f32.gmra.mxu2 %v3352_v47 }
 0x64f   : > { %3470 = vmatmul.f32.gmra.mxu3 %v3353_v24 }
 0x655   : > { %3405 = vmatmul.f32.gmra.mxu2 %v3353_v24 }
 0x657   : > { %3473 = vmatmul.f32.gmra.mxu3 %v3354_v19 }
 0x65d   : > { %3408 = vmatmul.f32.gmra.mxu2 %v3354_v19  ;;  %v6155_v19 = vld [vmem:[%s8756_s25 + $0x78] sm:$0xff] }
 0x65e   : > { %4462 = vmatpush.bf16.msrb.mxu1 %v6155_v19  ;;  %v6151_v19 = vld [vmem:[%s8756_s25 + $0x58] sm:$0xff] }
 0x65f   : > { %3476 = vmatmul.f32.gmra.mxu3 %v3355_v53 }
 0x665   : > { %3411 = vmatmul.f32.gmra.mxu2 %v3355_v53  ;;  %v6154_v53 = vld [vmem:[%s8756_s25 + $0x70] sm:$0xff] }
 0x666   : > { %4463 = vmatpush.bf16.msrb.mxu1 %v6154_v53 }
 0x667   : > { %3479 = vmatmul.f32.gmra.mxu3 %v3356_v44 }
 0x66a   : > { %4464 = vmatpush.bf16.msrb.mxu1 %v6153_v11 }
 0x66d   : > { %3414 = vmatmul.f32.gmra.mxu2 %v3356_v44 }
 0x66f   : > { %3482 = vmatmul.f32.gmra.mxu3 %v3357_v29 }
 0x675   : > { %3417 = vmatmul.f32.gmra.mxu2 %v3357_v29 }
 0x677   : > { %3485 = vmatmul.f32.gmra.mxu3 %v3358_v38 }
 0x67d   : > { %3420 = vmatmul.f32.gmra.mxu2 %v3358_v38  ;;  %v6146_v38 = vld [vmem:[%s8756_s25 + $0x30] sm:$0xff] }
 0x67e   : > { %4414 = vmatpush.bf16.msra.mxu0 %v6146_v38  ;;  %v6150_v38 = vld [vmem:[%s8756_s25 + $0x50] sm:$0xff] }
 0x682   : > { %v7902_v25 = vpop.f32.mrf.mxu3 }
 0x688   : > { %v7904_v43 = vpop.f32.mrf.mxu2 }
 0x68a   : > { %v7906_v41 = vpop.f32.mrf.mxu3 }
 0x68b   : > { %v4077_v20 = vpack.c.bf16 %v7906_v41, %v7902_v25 }
 0x68d   : > { %4568 = vmatmul.bf16.vlgmr.msrb.gmra.mxu3 %v4077_v20 }
 0x690   : > { %v7910_v50 = vpop.f32.mrf.mxu2 }
 0x691   : > { %v4076_v8 = vpack.c.bf16 %v7910_v50, %v7904_v43 }
 0x692   : > { %v7914_v58 = vpop.f32.mrf.mxu3 }
 0x693   : > { %4519 = vmatmul.bf16.vlgmr.msrb.gmra.mxu2 %v4076_v8  ;;  %v8590_v4 = vrot.slane %v7914_v58, 1 }
 0x698   : > { %v7916_v9 = vpop.f32.mrf.mxu2 }
 0x699   : > { %v8589_v13 = vrot.slane %v7916_v9, 1 }
 0x69a   : > { %v7918_v10 = vpop.f32.mrf.mxu3 }
 0x69b   : > { %v4083_v54 = vpack.c.bf16 %v7918_v10, %v7914_v58  ;;  %v3953_v62 = vrot.slane %v7918_v10, 1 }
 0x69d   : > { %4573 = vmatmul.bf16.gmra.mxu3 %v4083_v54  ;;  %v7939_v32 = vsel %vm931_vm2, %v8590_v4, %v3953_v62 }
 0x6a0   : > { %v7922_v59 = vpop.f32.mrf.mxu2 }
 0x6a1   : > { %v4082_v33 = vpack.c.bf16 %v7922_v59, %v7916_v9  ;;  %v3952_v6 = vrot.slane %v7922_v59, 1 }
 0x6a2   : > { %v7927_v57 = vpop.f32.mrf.mxu3 }
 0x6a3   : > { %v3955_v7 = vrot.slane %v7927_v57, 1  ;;  %4524 = vmatmul.bf16.gmra.mxu2 %v4082_v33  ;;  %v7958_v14 = vsel %vm931_vm2, %v8589_v13, %v3952_v6 }
 0x6a5   : > { %v7933_v39 = vsel %vm931_vm2, %v3953_v62, %v3955_v7 }
 0x6a8   : > { %v7944_v37 = vpop.f32.mrf.mxu2 }
 0x6a9   : > { %v3954_v12 = vrot.slane %v7944_v37, 1 }
 0x6aa   : > { %v7948_v42 = vpop.f32.mrf.mxu3 }
 0x6ab   : > { %v7952_v34 = vsel %vm931_vm2, %v3952_v6, %v3954_v12  ;;  %v4089_v45 = vpack.c.bf16 %v7948_v42, %v7927_v57  ;;  %v3957_v51 = vrot.slane %v7948_v42, 1  ;;  %v6152_v6 = vld [vmem:[%s8756_s25 + $0x60] sm:$0xff] }
 0x6ac   : > { %4465 = vmatpush.bf16.msrb.mxu1 %v6152_v6 }
 0x6ad   : > { %4578 = vmatmul.bf16.gmra.mxu3 %v4089_v45  ;;  %v7978_v26 = vsel %vm931_vm2, %v3955_v7, %v3957_v51 }
 0x6b0   : > { %v7964_v35 = vpop.f32.mrf.mxu2  ;;  %4466 = vmatpush.bf16.msrb.mxu1 %v6151_v19 }
 0x6b1   : > { %v4088_v49 = vpack.c.bf16 %v7964_v35, %v7944_v37  ;;  %v3956_v23 = vrot.slane %v7964_v35, 1 }
 0x6b2   : > { %v7969_v46 = vpop.f32.mrf.mxu3 }
 0x6b3   : > { %v3959_v56 = vrot.slane %v7969_v46, 1  ;;  %4529 = vmatmul.bf16.gmra.mxu2 %v4088_v49  ;;  %v7996_v18 = vsel %vm931_vm2, %v3954_v12, %v3956_v23 }
 0x6b4   : > { %4467 = vmatpush.bf16.msrb.mxu1 %v6150_v38 }
 0x6b5   : > { %v7974_v15 = vsel %vm931_vm2, %v3957_v51, %v3959_v56 }
 0x6b8   : > { %v7983_v21 = vpop.f32.mrf.mxu2 }
 0x6b9   : > { %v3958_v3 = vrot.slane %v7983_v21, 1 }
 0x6ba   : > { %v7986_v28 = vpop.f32.mrf.mxu3 }
 0x6bb   : > { %v4095_v47 = vpack.c.bf16 %v7986_v28, %v7969_v46  ;;  %v7992_v24 = vsel %vm931_vm2, %v3956_v23, %v3958_v3  ;;  %v3961_v2 = vrot.slane %v7986_v28, 1  ;;  %v8592_v29 = vrot.slane %v7986_v28, 7  ;;  %v6145_v23 = vld [vmem:[%s8756_s25 + $0x28] sm:$0xff] }
 0x6bc   : > { %4415 = vmatpush.bf16.msra.mxu0 %v6145_v23 }
 0x6bd   : > { %4583 = vmatmul.bf16.gmra.mxu3 %v4095_v47  ;;  %v8017_v55 = vsel %vm931_vm2, %v3959_v56, %v3961_v2 }
 0x6c0   : > { %v8000_v63 = vpop.f32.mrf.mxu2  ;;  %4416 = vmatpush.bf16.msra.mxu0 %v6144_v1 }
 0x6c1   : > { %v4094_v17 = vpack.c.bf16 %v8000_v63, %v7983_v21  ;;  %v3960_v44 = vrot.slane %v8000_v63, 1 }
 0x6c2   : > { %v3465_v61 = vpop.f32.mrf.mxu3 }
 0x6c3   : > { %v3963_v22 = vrot.slane %v3465_v61, 1  ;;  %4534 = vmatmul.bf16.gmra.mxu2 %v4094_v17  ;;  %v3819_v48 = vrot.slane %v3465_v61, 7  ;;  %v8038_v8 = vsel %vm931_vm2, %v3958_v3, %v3960_v44  ;;  %v8591_v3 = vrot.slane %v8000_v63, 7 }
 0x6c4   : > { %8758 = vst [vmem:[#allocation58_spill] sm:$0xff] %v8038_v8 }
 0x6c5   : > { %v8013_v31 = vsel %vm931_vm2, %v3961_v2, %v3963_v22  ;;  %v8049_v12 = vsel %vm906_vm1, %v8592_v29, %v3819_v48 }
 0x6c8   : > { %v3400_v40 = vpop.f32.mrf.mxu2 }
 0x6c9   : > { %v3962_v16 = vrot.slane %v3400_v40, 1  ;;  %v3818_v49 = vrot.slane %v3400_v40, 7 }
 0x6ca   : > { %v3468_v60 = vpop.f32.mrf.mxu3 }
 0x6cb   : > { %v8034_v20 = vsel %vm931_vm2, %v3960_v44, %v3962_v16  ;;  %v3821_v54 = vrot.slane %v3468_v60, 7  ;;  %v3965_v62 = vrot.slane %v3468_v60, 1  ;;  %v4101_v7 = vpack.c.bf16 %v3468_v60, %v3465_v61 }
 0x6cd   : > { %v8053_v45 = vsel %vm906_vm1, %v3819_v48, %v3821_v54  ;;  %v8057_v51 = vsel %vm931_vm2, %v3963_v22, %v3965_v62  ;;  %4588 = vmatmul.bf16.gmra.mxu3 %v4101_v7  ;;  %v8072_v22 = vsel %vm906_vm1, %v8591_v3, %v3818_v49  ;;  %v6143_v7 = vld [vmem:[%s8756_s25 + $0x18] sm:$0xff] }
 0x6ce   : > { %8759 = vst [vmem:[#allocation53_spill] sm:$0xff] %v8057_v51  ;;  %4417 = vmatpush.bf16.msra.mxu0 %v6143_v7  ;;  %v6148_v7 = vld [vmem:[%s8756_s25 + $0x40] sm:$0xff] }
 0x6d0   : > { %v3403_v47 = vpop.f32.mrf.mxu2 }
 0x6d1   : > { %v3820_v2 = vrot.slane %v3403_v47, 7  ;;  %v3964_v17 = vrot.slane %v3403_v47, 1  ;;  %v4100_v61 = vpack.c.bf16 %v3403_v47, %v3400_v40  ;;  %v6149_v47 = vld [vmem:[%s8756_s25 + $0x48] sm:$0xff] }
 0x6d2   : > { %v3471_v53 = vpop.f32.mrf.mxu3  ;;  %4468 = vmatpush.bf16.msrb.mxu1 %v6149_v47 }
 0x6d3   : > { %v8079_v44 = vsel %vm906_vm1, %v3818_v49, %v3820_v2  ;;  %v3823_v11 = vrot.slane %v3471_v53, 7  ;;  %v3967_v48 = vrot.slane %v3471_v53, 1  ;;  %4539 = vmatmul.bf16.gmra.mxu2 %v4100_v61  ;;  %v8083_v40 = vsel %vm931_vm2, %v3962_v16, %v3964_v17 }
 0x6d4   : > { %8760 = vst [vmem:[#allocation60_spill] sm:$0xff] %v8083_v40 }
 0x6d5   : > { %v8095_v6 = vsel %vm906_vm1, %v3821_v54, %v3823_v11  ;;  %v8099_v16 = vsel %vm931_vm2, %v3965_v62, %v3967_v48  ;;  %v6142_v54 = vld [vmem:[%s8756_s25 + $0x10] sm:$0xff] }
 0x6d6   : > { %8761 = vst [vmem:[#allocation43_spill] sm:$0xff] %v8099_v16  ;;  %4418 = vmatpush.bf16.msra.mxu0 %v6142_v54  ;;  %4469 = vmatpush.bf16.msrb.mxu1 %v6148_v7 }
 0x6d8   : > { %v3406_v23 = vpop.f32.mrf.mxu2 }
 0x6d9   : > { %v3822_v19 = vrot.slane %v3406_v23, 7  ;;  %v3966_v61 = vrot.slane %v3406_v23, 1 }
 0x6da   : > { %v3474_v1 = vpop.f32.mrf.mxu3 }
 0x6db   : > { %v3825_v62 = vrot.slane %v3474_v1, 7  ;;  %v3969_v33 = vrot.slane %v3474_v1, 1  ;;  %v4107_v38 = vpack.c.bf16 %v3474_v1, %v3471_v53  ;;  %v8111_v49 = vsel %vm906_vm1, %v3820_v2, %v3822_v19  ;;  %v6141_v1 = vld [vmem:[%s8756_s25 + $0x8] sm:$0xff] }
 0x6dc   : > { %v8118_v36 = vsel %vm931_vm2, %v3964_v17, %v3966_v61  ;;  %4419 = vmatpush.bf16.msra.mxu0 %v6141_v1 }
 0x6dd   : > { %8762 = vst [vmem:[#allocation49_spill] sm:$0xff] %v8118_v36  ;;  %v8122_v47 = vsel %vm931_vm2, %v3967_v48, %v3969_v33  ;;  %v8126_v53 = vsel %vm906_vm1, %v3823_v11, %v3825_v62  ;;  %4593 = vmatmul.bf16.gmra.mxu3 %v4107_v38  ;;  %v6140_v11 = vld [vmem:[%s8756_s25] sm:$0xff] }
 0x6de   : > { %8763 = vst [vmem:[#allocation37_spill] sm:$0xff] %v8122_v47 }
 0x6e0   : > { %v3409_v54 = vpop.f32.mrf.mxu2  ;;  %4420 = vmatpush.bf16.msra.mxu0 %v6140_v11 }
 0x6e1   : > { %v3824_v48 = vrot.slane %v3409_v54, 7  ;;  %v3968_v5 = vrot.slane %v3409_v54, 1  ;;  %v4106_v0 = vpack.c.bf16 %v3409_v54, %v3406_v23 }
 0x6e2   : > { %v3477_v27 = vpop.f32.mrf.mxu3 }
 0x6e3   : > { %v8140_v38 = vsel %vm931_vm2, %v3966_v61, %v3968_v5  ;;  %v3827_v7 = vrot.slane %v3477_v27, 7  ;;  %v3971_v2 = vrot.slane %v3477_v27, 1  ;;  %4544 = vmatmul.bf16.gmra.mxu2 %v4106_v0  ;;  %v8144_v52 = vsel %vm906_vm1, %v3822_v19, %v3824_v48 }
 0x6e4   : > { %8764 = vst [vmem:[#allocation57_spill] sm:$0xff] %v8140_v38 }
 0x6e5   : > { %v8150_v1 = vsel %vm906_vm1, %v3825_v62, %v3827_v7  ;;  %v8154_v54 = vsel %vm931_vm2, %v3969_v33, %v3971_v2 }
 0x6e6   : > { %8765 = vst [vmem:[#allocation52_spill] sm:$0xff] %v8154_v54 }
 0x6e8   : > { %v3412_v0 = vpop.f32.mrf.mxu2 }
 0x6e9   : > { %v3826_v13 = vrot.slane %v3412_v0, 7  ;;  %v3970_v4 = vrot.slane %v3412_v0, 1 }
 0x6ea   : > { %v3480_v19 = vpop.f32.mrf.mxu3 }
 0x6eb   : > { %v8160_v11 = vsel %vm906_vm1, %v3824_v48, %v3826_v13  ;;  %v8164_v23 = vsel %vm931_vm2, %v3968_v5, %v3970_v4  ;;  %v3829_v62 = vrot.slane %v3480_v19, 7  ;;  %v3973_v17 = vrot.slane %v3480_v19, 1 }
 0x6ec   : > { %8766 = vst [vmem:[#allocation40_spill] sm:$0xff] %v8164_v23  ;;  %v4113_v60 = vpack.c.bf16 %v3480_v19, %v3477_v27 }
 0x6ed   : > { %v8170_v61 = vsel %vm906_vm1, %v3827_v7, %v3829_v62  ;;  %v8174_v56 = vsel %vm931_vm2, %v3971_v2, %v3973_v17 }
 0x6ee   : > { %8767 = vst [vmem:[#allocation47_spill] sm:$0xff] %v8174_v56  ;;  %4598 = vmatmul.bf16.gmra.mxu3 %v4113_v60 }
 0x6f0   : > { %v3415_v5 = vpop.f32.mrf.mxu2 }
 0x6f1   : > { %v3828_v3 = vrot.slane %v3415_v5, 7  ;;  %v3972_v29 = vrot.slane %v3415_v5, 1  ;;  %v4112_v47 = vpack.c.bf16 %v3415_v5, %v3412_v0  ;;  %v3803_v5 = vrot.slane %v7902_v25, 7 }
 0x6f2   : > { %v3483_v54 = vpop.f32.mrf.mxu3 }
 0x6f3   : > { %v8180_v27 = vsel %vm906_vm1, %v3826_v13, %v3828_v3  ;;  %v3831_v19 = vrot.slane %v3483_v54, 7  ;;  %v3975_v7 = vrot.slane %v3483_v54, 1  ;;  %4549 = vmatmul.bf16.gmra.mxu2 %v4112_v47  ;;  %v8184_v2 = vsel %vm931_vm2, %v3970_v4, %v3972_v29 }
 0x6f4   : > { %v3598_v13 = vand.u32 31, %v8757_v30  ;;  %v3805_v4 = vrot.slane %v7906_v41, 7  ;;  %v3804_v47 = vrot.slane %v7910_v50, 7 }
 0x6f5   : > { %v8190_v60 = vsel %vm906_vm1, %v3829_v62, %v3831_v19  ;;  %v8194_v0 = vsel %vm931_vm2, %v3973_v17, %v3975_v7 }
 0x6f6   : > { %8768 = vst [vmem:[#allocation34_spill] sm:$0xff] %v8194_v0  ;;  %vm6196_vm15 = vcmp.ne.s32.totalorder %v3598_v13, 0  ;;  %v3863_v56 = vsel %vm906_vm1, %v3803_v5, %v3805_v4 }
 0x6f7   : > { %vm8226_vm3 = vmpackc.low %vm6680_vm14, %vm6196_vm15 }
 0x6f8   : > { %v3418_v48 = vpop.f32.mrf.mxu2 }
 0x6f9   : > { %v3830_v38 = vrot.slane %v3418_v48, 7  ;;  %v3974_v33 = vrot.slane %v3418_v48, 1 }
 0x6fa   : > { %v3486_v62 = vpop.f32.mrf.mxu3 }
 0x6fb   : > { %v3833_v40 = vrot.slane %v3486_v62, 7  ;;  %v3977_v36 = vrot.slane %v3486_v62, 1  ;;  %v4119_v17 = vpack.c.bf16 %v3486_v62, %v3483_v54  ;;  %v8204_v51 = vsel %vm906_vm1, %v3828_v3, %v3830_v38 }
 0x6fc   : > { %v8211_v0 = vsel %vm931_vm2, %v3972_v29, %v3974_v33  ;;  %v8769_v54 = vrot.slane %v7902_v25, 1  ;;  %v3808_v62 = vrot.slane %v7922_v59, 7  ;;  %v6178_v59 = vld [vmem:[%s8756_s25 + $0x130] sm:$0xff] }
 0x6fd   : > { %v3865_v23 = vsel %vm906_vm1, %v3833_v40, %v3803_v5  ;;  %v8217_v13 = vsel %vm931_vm2, %v3975_v7, %v3977_v36  ;;  %v8232_v29 = vsel %vm906_vm1, %v3831_v19, %v3833_v40  ;;  %v8604_v40 = vrot.slane %v7904_v43, 1 }
 0x6fe   : > { %v8223_v3 = vsel %vm931_vm2, %v3977_v36, %v8769_v54  ;;  %v5930_v5 = vpack.c.bf16 %v3863_v56, %v3865_v23  ;;  %4603 = vmatmul.bf16.gmra.mxu3 %v4119_v17  ;;  %v3802_v54 = vrot.slane %v7904_v43, 7 }
 0x700   : > { %v3421_v8 = vpop.f32.mrf.mxu2  ;;  %5931 = vmatmul.msk.bf16.vlgmr.msrb.gmra.mxu1 %vm8226_vm3, %v5930_v5  ;;  %v3862_v17 = vsel %vm906_vm1, %v3802_v54, %v3804_v47 }
 0x701   : > { %v3832_v19 = vrot.slane %v3421_v8, 7  ;;  %v3976_v56 = vrot.slane %v3421_v8, 1  ;;  %v4118_v23 = vpack.c.bf16 %v3421_v8, %v3418_v48 }
 0x703   : > { %v3864_v7 = vsel %vm906_vm1, %v3832_v19, %v3802_v54  ;;  %v8250_v36 = vsel %vm931_vm2, %v3974_v33, %v3976_v56  ;;  %v8256_v5 = vsel %vm931_vm2, %v3976_v56, %v8604_v40  ;;  %4554 = vmatmul.bf16.gmra.mxu2 %v4118_v23  ;;  %v8260_v8 = vsel %vm906_vm1, %v3830_v38, %v3832_v19  ;;  %v6179_v33 = vld [vmem:[%s8756_s25 + $0x138] sm:$0xff] }
 0x704   : > { %v5914_v48 = vpack.c.bf16 %v3862_v17, %v3864_v7  ;;  %v4116_v54 = vpack.c.bf16 %v8260_v8, %v8204_v51  ;;  %v6187_v56 = vld [vmem:[%s8756_s25 + $0x178] sm:$0xff]  ;;  %v3809_v38 = vrot.slane %v7918_v10, 7  ;;  %4609 = vmatpush.bf16.msrb.mxu0 %v6179_v33  ;;  %v3807_v7 = vrot.slane %v7914_v58, 7  ;;  %v8397_v51 = vld [vmem:[%s8784_s24] ss:$0 sm:$0xff] }
 0x705   : > { %4658 = vmatpush.bf16.msra.mxu1 %v6187_v56  ;;  %v8772_v56 = vld [vmem:[#allocation23_spill] sm:$0xff] }
 0x706   : > { %5915 = vmatmul.msk.bf16.vlgmr.msra.gmra.mxu0 %vm8226_vm3, %v5914_v48  ;;  %v3859_v19 = vsel %vm906_vm1, %v3807_v7, %v3809_v38  ;;  %v3861_v23 = vsel %vm906_vm1, %v3805_v4, %v3807_v7  ;;  %v3806_v48 = vrot.slane %v7916_v9, 7  ;;  %v3626_v40 = vand.u32 31, %v8772_v56  ;;  %v6186_v4 = vld [vmem:[%s8756_s25 + $0x170] sm:$0xff] }
 0x707   : > { %v4081_v17 = vpack.c.bf16 %v3859_v19, %v3861_v23  ;;  %v3813_v7 = vrot.slane %v7948_v42, 7  ;;  %v3811_v19 = vrot.slane %v7927_v57, 7  ;;  %v3812_v23 = vrot.slane %v7964_v35, 7  ;;  %v6185_v35 = vld [vmem:[%s8756_s25 + $0x168] sm:$0xff] }
 0x708   : > { %v3858_v16 = vsel %vm906_vm1, %v3806_v48, %v3808_v62  ;;  %v3860_v10 = vsel %vm906_vm1, %v3804_v47, %v3806_v48  ;;  %4610 = vmatpush.bf16.msrb.mxu0 %v6178_v59  ;;  %vm6197_vm5 = vcmp.ne.s32.totalorder %v3626_v40, 0  ;;  %v3810_v48 = vrot.slane %v7944_v37, 7 }
 0x709   : > { %v4080_v33 = vpack.c.bf16 %v3858_v16, %v3860_v10  ;;  %4659 = vmatpush.bf16.msra.mxu1 %v6186_v4  ;;  %v3855_v16 = vsel %vm906_vm1, %v3811_v19, %v3813_v7  ;;  %v3857_v47 = vsel %vm906_vm1, %v3809_v38, %v3811_v19  ;;  %vm5917_vm6 = vmpackc.low %vm6680_vm14, %vm6197_vm5  ;;  %v6177_v38 = vld [vmem:[%s8756_s25 + $0x128] sm:$0xff]  ;;  %v3815_v37 = vrot.slane %v7969_v46, 7 }
 0x70a   : > { %v3854_v42 = vsel %vm906_vm1, %v3810_v48, %v3812_v23  ;;  %v3856_v57 = vsel %vm906_vm1, %v3808_v62, %v3810_v48  ;;  %v8773_v10 = vrot.slane %v7986_v28, 7  ;;  %v3814_v59 = vrot.slane %v7983_v21, 7  ;;  %v6184_v21 = vld [vmem:[%s8756_s25 + $0x160] sm:$0xff]  ;;  %v6183_v48 = vld [vmem:[%s8756_s25 + $0x158] sm:$0xff] }
 0x70b   : > { %v5918_v40 = vpack.c.bf16 %v3854_v42, %v3856_v57  ;;  %v3853_v62 = vsel %vm906_vm1, %v3813_v7, %v3815_v37  ;;  %v8774_v4 = vrot.slane %v8000_v63, 7  ;;  %v6176_v7 = vld [vmem:[%s8756_s25 + $0x120] sm:$0xff]  ;;  %v8775_v63 = vpack.c.bf16 %v8053_v45, %v8049_v12  ;;  %v6182_v12 = vld [vmem:[%s8756_s25 + $0x150] sm:$0xff] }
 0x70c   : > { %4611 = vmatpush.bf16.msrb.mxu0 %v6177_v38  ;;  %v3852_v46 = vsel %vm906_vm1, %v3812_v23, %v3814_v59  ;;  %v8776_v23 = vpack.c.bf16 %v8079_v44, %v8072_v22  ;;  %v8777_v42 = vpack.c.bf16 %v8126_v53, %v8095_v6  ;;  %v3590_v45 = vadd.s32 96, %v8757_v30  ;;  %v6174_v57 = vld [vmem:[%s8756_s25 + $0x110] sm:$0xff]  ;;  %v6181_v6 = vld [vmem:[%s8756_s25 + $0x148] sm:$0xff]  ;;  %v6180_v53 = vld [vmem:[%s8756_s25 + $0x140] sm:$0xff] }
 0x70d   : > { %4660 = vmatpush.bf16.msra.mxu1 %v6185_v35  ;;  %v3850_v19 = vsel %vm906_vm1, %v3814_v59, %v8774_v4  ;;  %v8778_v22 = vpack.c.bf16 %v8144_v52, %v8111_v49  ;;  %v6173_v52 = vld [vmem:[%s8756_s25 + $0x108] sm:$0xff]  ;;  %v8779_v49 = vpack.c.bf16 %v8170_v61, %v8150_v1  ;;  %v8780_v38 = vpack.c.bf16 %v8180_v27, %v8160_v11 }
 0x70e   : > { %v4092_v28 = vpack.c.bf16 %v3850_v19, %v3852_v46  ;;  %v3682_v44 = vand.u32 31, %v3590_v45  ;;  %v8781_v35 = vpack.c.bf16 %v8232_v29, %v8190_v60  ;;  %v3949_v1 = vrot.slane %v7906_v41, 1  ;;  %v8787_v59 = vld [vmem:[#allocation21_spill] sm:$0xff] }
 0x70f   : > { %v8782_v61 = vrot.slane %v7914_v58, 1  ;;  %v3948_v60 = vrot.slane %v7910_v50, 1  ;;  %v8785_v41 = vrot.slane %v7916_v9, 1  ;;  %v3619_v4 = vand.u32 31, %v8787_v59  ;;  %v8802_v59 = vld [vmem:[#allocation52_spill] sm:$0xff] }
 0x710   : > { %4475 = vmatmul.bf16.gmra.mxu1 %v4081_v17  ;;  %v5934_v17 = vpack.c.bf16 %v3855_v16, %v3857_v47  ;;  %v3586_v16 = vadd.s32 64, %v8757_v30  ;;  %4612 = vmatpush.bf16.msrb.mxu0 %v6176_v7  ;;  %v8788_v46 = vpack.c.bf16 %v7933_v39, %v7939_v32  ;;  %v8790_v39 = vpack.c.bf16 %v7974_v15, %v7978_v26 }
 0x711   : > { %4661 = vmatpush.bf16.msra.mxu1 %v6184_v21  ;;  %v4004_v58 = vsel %vm931_vm2, %v3948_v60, %v8785_v41  ;;  %vm6200_vm10 = vcmp.ne.s32.totalorder %v3619_v4, 31  ;;  %v8793_v26 = vpack.c.bf16 %v8013_v31, %v8017_v55  ;;  %v3589_v55 = vadd.s32 88, %v8757_v30  ;;  %v8803_v4 = vld [vmem:[#allocation37_spill] sm:$0xff] }
 0x712   : > { %v3654_v47 = vand.u32 31, %v3586_v16  ;;  %vm5945_vm11 = vmpackc.low %vm6200_vm10, %vm6680_vm14 }
 0x714   : > { %vm6198_vm7 = vcmp.ne.s32.totalorder %v3654_v47, 0 }
 0x715   : > { %vm5921_vm8 = vmpackc.low %vm6680_vm14, %vm6198_vm7  ;;  %4662 = vmatpush.bf16.msra.mxu1 %v6183_v48 }
 0x716   : > { %4426 = vmatmul.bf16.gmra.mxu0 %v4080_v33  ;;  %v3851_v33 = vsel %vm906_vm1, %v3815_v37, %v8773_v10  ;;  %vm6199_vm1 = vcmp.ne.s32.totalorder %v3682_v44, 0  ;;  %v4005_v37 = vsel %vm931_vm2, %v3949_v1, %v8782_v61  ;;  %v8783_v10 = vrot.slane %v7902_v25, 1 }
 0x717   : > { %v4093_v56 = vpack.c.bf16 %v3851_v33, %v3853_v62  ;;  %vm5925_vm9 = vmpackc.low %vm6680_vm14, %vm6199_vm1  ;;  %v8786_v25 = vrot.slane %v7904_v43, 1 }
 0x718   : > { %v4007_v11 = vsel %vm931_vm2, %v8783_v10, %v3949_v1  ;;  %v8796_v10 = vld [vmem:[#allocation43_spill] sm:$0xff] }
 0x719   : > { %4663 = vmatpush.bf16.msra.mxu1 %v6182_v12  ;;  %v4079_v33 = vpack.c.bf16 %v4005_v37, %v4007_v11  ;;  %v4006_v29 = vsel %vm931_vm2, %v8786_v25, %v3948_v60  ;;  %v8797_v11 = vld [vmem:[#allocation53_spill] sm:$0xff] }
 0x71a   : > { %v8798_v31 = vpack.c.bf16 %v8796_v10, %v8797_v11 }
 0x71d   : > { %4664 = vmatpush.bf16.msra.mxu1 %v6181_v6 }
 0x720   : > { %5935 = vmatmul.msk.bf16.gmra.mxu1 %vm5917_vm6, %v5934_v17  ;;  %v6175_v17 = vld [vmem:[%s8756_s25 + $0x118] sm:$0xff] }
 0x721   : > { %4613 = vmatpush.bf16.msrb.mxu0 %v6175_v17  ;;  %4665 = vmatpush.bf16.msra.mxu1 %v6180_v53 }
 0x725   : > { %4614 = vmatpush.bf16.msrb.mxu0 %v6174_v57 }
 0x726   : > { %5919 = vmatmul.msk.bf16.gmra.mxu0 %vm5917_vm6, %v5918_v40  ;;  %v6172_v40 = vld [vmem:[%s8756_s25 + $0x100] sm:$0xff] }
 0x729   : > { %4615 = vmatpush.bf16.msrb.mxu0 %v6173_v52 }
 0x72d   : > { %4616 = vmatpush.bf16.msrb.mxu0 %v6172_v40  ;;  %v8794_v40 = vld [vmem:[#allocation58_spill] sm:$0xff] }
 0x730   : > { %4485 = vmatmul.bf16.gmra.mxu1 %v4093_v56 }
 0x736   : > { %4436 = vmatmul.bf16.gmra.mxu0 %v4092_v28 }
 0x740   : > { %5939 = vmatmul.msk.bf16.gmra.mxu1 %vm5921_vm8, %v8775_v63  ;;  %v8789_v63 = vpack.c.bf16 %v7952_v34, %v7958_v14  ;;  %v8791_v34 = vpack.c.bf16 %v7992_v24, %v7996_v18  ;;  %v8792_v14 = vld [vmem:[#allocation22_spill] sm:$0xff] }
 0x741   : > { %v3647_v44 = vand.u32 31, %v8792_v14  ;;  %v3593_v14 = vadd.s32 120, %v8757_v30 }
 0x743   : > { %vm6201_vm2 = vcmp.ne.s32.totalorder %v3647_v44, 31  ;;  %v4569_v44 = vpop.f32.mrf.mxu3 }
 0x744   : > { %vm5949_vm12 = vmpackc.low %vm6201_vm2, %vm6680_vm14 }
 0x746   : > { %5923 = vmatmul.msk.bf16.gmra.mxu0 %vm5921_vm8, %v8776_v23 }
 0x750   : > { %4495 = vmatmul.bf16.gmra.mxu1 %v8777_v42 }
 0x756   : > { %4446 = vmatmul.bf16.gmra.mxu0 %v8778_v22 }
 0x760   : > { %5943 = vmatmul.msk.bf16.gmra.mxu1 %vm5925_vm9, %v8779_v49 }
 0x766   : > { %5927 = vmatmul.msk.bf16.gmra.mxu0 %vm5925_vm9, %v8780_v38  ;;  %v8795_v38 = vpack.c.bf16 %v8034_v20, %v8794_v40  ;;  %v8799_v20 = vld [vmem:[#allocation49_spill] sm:$0xff] }
 0x770   : > { %4505 = vmatmul.bf16.gmra.mxu1 %v8781_v35 }
 0x776   : > { %4456 = vmatmul.bf16.gmra.mxu0 %v4116_v54  ;;  %v4078_v54 = vpack.c.bf16 %v4004_v58, %v4006_v29  ;;  %v8800_v58 = vld [vmem:[#allocation60_spill] sm:$0xff]  ;;  %v3675_v29 = vand.u32 31, %v3589_v55  ;;  %v8813_v55 = vpack.c.bf16 %v8256_v5, %v8250_v36 }
 0x777   : > { %v8801_v25 = vpack.c.bf16 %v8799_v20, %v8800_v58 }
 0x778   : > { %vm6202_vm13 = vcmp.ne.s32.totalorder %v3675_v29, 31 }
 0x779   : > { %vm5953_vm0 = vmpackc.low %vm6202_vm13, %vm6680_vm14 }
 0x77d   : > { %v4471_v27 = vpop.f32.mrf.mxu1 }
 0x780   : > { %4666 = vmatmul.bf16.vlgmr.msra.gmra.mxu1 %v4079_v33 }
 0x783   : > { %v4422_v8 = vpop.f32.mrf.mxu0 }
 0x784   : > { %v4423_v50 = vadd.f32 %v8397_v51, %v4422_v8 }
 0x785   : > { %v4473_v62 = vpop.f32.mrf.mxu1 }
 0x786   : > { %v8408_v56 = vadd.f32 %v4471_v27, %v4423_v50  ;;  %4617 = vmatmul.bf16.vlgmr.msrb.gmra.mxu0 %v4078_v54 }
 0x78b   : > { %v4424_v9 = vpop.f32.mrf.mxu0 }
 0x78c   : > { %v4425_v19 = vadd.f32 %v8397_v51, %v4424_v9  ;;  %v8804_v9 = vpack.c.bf16 %v8802_v59, %v8803_v4 }
 0x78d   : > { %v4476_v16 = vpop.f32.mrf.mxu1 }
 0x78e   : > { %v8413_v43 = vadd.f32 %v4473_v62, %v4425_v19 }
 0x790   : > { %5963 = vmatmul.msk.bf16.gmra.mxu1 %vm5945_vm11, %v8788_v46 }
 0x793   : > { %v4427_v28 = vpop.f32.mrf.mxu0 }
 0x794   : > { %v4428_v47 = vadd.f32 %v8397_v51, %v4427_v28 }
 0x795   : > { %v4478_v7 = vpop.f32.mrf.mxu1 }
 0x796   : > { %v8419_v21 = vadd.f32 %v4476_v16, %v4428_v47  ;;  %5947 = vmatmul.msk.bf16.gmra.mxu0 %vm5945_vm11, %v8789_v63  ;;  %v8805_v47 = vld [vmem:[#allocation40_spill] sm:$0xff] }
 0x79b   : > { %v4429_v23 = vpop.f32.mrf.mxu0 }
 0x79c   : > { %v4430_v17 = vadd.f32 %v8397_v51, %v4429_v23 }
 0x79d   : > { %v4481_v48 = vpop.f32.mrf.mxu1 }
 0x79e   : > { %v8425_v42 = vadd.f32 %v4478_v7, %v4430_v17  ;;  %v8806_v7 = vld [vmem:[#allocation57_spill] sm:$0xff] }
 0x79f   : > { %v8807_v63 = vpack.c.bf16 %v8805_v47, %v8806_v7 }
 0x7a0   : > { %4676 = vmatmul.bf16.gmra.mxu1 %v8790_v39 }
 0x7a3   : > { %v4432_v32 = vpop.f32.mrf.mxu0 }
 0x7a4   : > { %v4433_v12 = vadd.f32 %v8397_v51, %v4432_v32  ;;  %v4520_v32 = vpop.f32.mrf.mxu2 }
 0x7a5   : > { %v4483_v45 = vpop.f32.mrf.mxu1 }
 0x7a6   : > { %v8431_v22 = vadd.f32 %v4481_v48, %v4433_v12  ;;  %4627 = vmatmul.bf16.gmra.mxu0 %v8791_v34  ;;  %v8808_v12 = vld [vmem:[#allocation34_spill] sm:$0xff] }
 0x7ab   : > { %v4434_v57 = vpop.f32.mrf.mxu0 }
 0x7ac   : > { %v4435_v6 = vadd.f32 %v8397_v51, %v4434_v57 }
 0x7ad   : > { %v4486_v53 = vpop.f32.mrf.mxu1 }
 0x7ae   : > { %v8439_v15 = vadd.f32 %v4483_v45, %v4435_v6  ;;  %v8809_v45 = vld [vmem:[#allocation47_spill] sm:$0xff] }
 0x7af   : > { %v8810_v34 = vpack.c.bf16 %v8808_v12, %v8809_v45 }
 0x7b0   : > { %5967 = vmatmul.msk.bf16.gmra.mxu1 %vm5949_vm12, %v8793_v26 }
 0x7b3   : > { %v4437_v52 = vpop.f32.mrf.mxu0 }
 0x7b4   : > { %v4438_v49 = vadd.f32 %v8397_v51, %v4437_v52  ;;  %v8811_v52 = vpack.c.bf16 %v8211_v0, %v8184_v2 }
 0x7b5   : > { %v4488_v24 = vpop.f32.mrf.mxu1 }
 0x7b6   : > { %v8445_v18 = vadd.f32 %v4486_v53, %v4438_v49  ;;  %5951 = vmatmul.msk.bf16.gmra.mxu0 %vm5949_vm12, %v8795_v38  ;;  %v3703_v49 = vand.u32 31, %v3593_v14 }
 0x7b8   : > { %vm6203_vm4 = vcmp.ne.s32.totalorder %v3703_v49, 31 }
 0x7b9   : > { %vm5957_vm15 = vmpackc.low %vm6203_vm4, %vm6680_vm14  ;;  %vm4707_vm14 = vcmask 785408  }
 0x7bb   : > { %v4439_v35 = vpop.f32.mrf.mxu0 }
 0x7bc   : > { %v4440_v1 = vadd.f32 %v8397_v51, %v4439_v35  ;;  %v4571_v35 = vpop.f32.mrf.mxu3 }
 0x7bd   : > { %v4491_v61 = vpop.f32.mrf.mxu1 }
 0x7be   : > { %v8451_v37 = vadd.f32 %v4488_v24, %v4440_v1  ;;  %v4522_v24 = vpop.f32.mrf.mxu2 }
 0x7bf   : > { %v4523_v5 = vadd.f32 %v4522_v24, %v8413_v43 }
 0x7c0   : > { %4686 = vmatmul.bf16.gmra.mxu1 %v8798_v31 }
 0x7c3   : > { %v4442_v27 = vpop.f32.mrf.mxu0 }
 0x7c4   : > { %v4443_v33 = vadd.f32 %v8397_v51, %v4442_v27  ;;  %v4574_v27 = vpop.f32.mrf.mxu3 }
 0x7c5   : > { %v4493_v60 = vpop.f32.mrf.mxu1 }
 0x7c6   : > { %v8458_v41 = vadd.f32 %v4491_v61, %v4443_v33  ;;  %4637 = vmatmul.bf16.gmra.mxu0 %v8801_v25  ;;  %v8812_v61 = vpack.c.bf16 %v8223_v3, %v8217_v13  ;;  %v4525_v10 = vpop.f32.mrf.mxu2  ;;  %v4521_v3 = vadd.f32 %v4520_v32, %v8408_v56 }
 0x7c8   : > { %v4570_v29 = vadd.f32 %v4569_v44, %v4521_v3 }
 0x7cb   : > { %v4444_v8 = vpop.f32.mrf.mxu0 }
 0x7cc   : > { %v4445_v54 = vadd.f32 %v8397_v51, %v4444_v8  ;;  %v4576_v25 = vpop.f32.mrf.mxu3 }
 0x7cd   : > { %v4496_v50 = vpop.f32.mrf.mxu1 }
 0x7ce   : > { %v8465_v62 = vadd.f32 %v4493_v60, %v4445_v54  ;;  %v4527_v20 = vpop.f32.mrf.mxu2 }
 0x7cf   : > { %v4528_v32 = vadd.f32 %v4527_v20, %v8425_v42 }
 0x7d0   : > { %5971 = vmatmul.msk.bf16.gmra.mxu1 %vm5953_vm0, %v8804_v9 }
 0x7d1   : > { %v4577_v12 = vadd.f32 %v4576_v25, %v4528_v32 }
 0x7d3   : > { %v4447_v19 = vpop.f32.mrf.mxu0 }
 0x7d4   : > { %v4448_v16 = vadd.f32 %v8397_v51, %v4447_v19  ;;  %v4579_v4 = vpop.f32.mrf.mxu3 }
 0x7d5   : > { %v4498_v46 = vpop.f32.mrf.mxu1 }
 0x7d6   : > { %v8471_v28 = vadd.f32 %v4496_v50, %v4448_v16  ;;  %5955 = vmatmul.msk.bf16.gmra.mxu0 %vm5953_vm0, %v8807_v63  ;;  %v4530_v59 = vpop.f32.mrf.mxu2 }
 0x7db   : > { %v4449_v23 = vpop.f32.mrf.mxu0 }
 0x7dc   : > { %v4450_v17 = vadd.f32 %v8397_v51, %v4449_v23  ;;  %v4581_v43 = vpop.f32.mrf.mxu3 }
 0x7dd   : > { %v4501_v48 = vpop.f32.mrf.mxu1 }
 0x7de   : > { %v8477_v39 = vadd.f32 %v4498_v46, %v4450_v17  ;;  %v4526_v46 = vadd.f32 %v4525_v10, %v8419_v21  ;;  %v4532_v47 = vpop.f32.mrf.mxu2 }
 0x7e0   : > { %4696 = vmatmul.bf16.gmra.mxu1 %v8810_v34  ;;  %v4575_v7 = vadd.f32 %v4574_v27, %v4526_v46 }
 0x7e3   : > { %v4452_v57 = vpop.f32.mrf.mxu0 }
 0x7e4   : > { %v4453_v6 = vadd.f32 %v8397_v51, %v4452_v57  ;;  %v4531_v57 = vadd.f32 %v4530_v59, %v8431_v22 }
 0x7e5   : > { %v4503_v53 = vpop.f32.mrf.mxu1 }
 0x7e6   : > { %v8484_v26 = vadd.f32 %v4501_v48, %v4453_v6  ;;  %4647 = vmatmul.bf16.gmra.mxu0 %v8811_v52  ;;  %v4535_v45 = vpop.f32.mrf.mxu2  ;;  %v4584_v6 = vpop.f32.mrf.mxu3 }
 0x7eb   : > { %v4454_v40 = vpop.f32.mrf.mxu0 }
 0x7ec   : > { %v4455_v38 = vadd.f32 %v8397_v51, %v4454_v40 }
 0x7ed   : > { %v4506_v1 = vpop.f32.mrf.mxu1 }
 0x7ee   : > { %v8491_v30 = vadd.f32 %v4503_v53, %v4455_v38  ;;  %v4580_v53 = vadd.f32 %v4579_v4, %v4531_v57  ;;  %v4537_v24 = vpop.f32.mrf.mxu2  ;;  %v4533_v38 = vadd.f32 %v4532_v47, %v8439_v15 }
 0x7f0   : > { %5975 = vmatmul.msk.bf16.gmra.mxu1 %vm5957_vm15, %v8812_v61 }
 0x7f3   : > { %v4457_v11 = vpop.f32.mrf.mxu0 }
 0x7f4   : > { %v4458_v2 = vadd.f32 %v8397_v51, %v4457_v11 }
 0x7f5   : > { %v4508_v0 = vpop.f32.mrf.mxu1 }
 0x7f6   : > { %v8497_v31 = vadd.f32 %v4506_v1, %v4458_v2  ;;  %5959 = vmatmul.msk.bf16.gmra.mxu0 %vm5957_vm15, %v8813_v55  ;;  %v4582_v1 = vadd.f32 %v4581_v43, %v4533_v38  ;;  %v4536_v2 = vadd.f32 %v4535_v45, %v8445_v18 }
 0x7f8   : > { %v4585_v55 = vadd.f32 %v4584_v6, %v4536_v2 }
 0x7fb   : > { %v4459_v33 = vpop.f32.mrf.mxu0 }
 0x7fc   : > { %v4460_v60 = vadd.f32 %v8397_v51, %v4459_v33  ;;  %v4572_v51 = vadd.f32 %v4571_v35, %v4523_v5  ;;  %v4586_v35 = vpop.f32.mrf.mxu3 }
 0x7fd   : > { %v4667_v58 = vpop.f32.mrf.mxu1 }
 0x7fe   : > { %v8503_v13 = vadd.f32 %v4508_v0, %v4460_v60  ;;  %v4540_v0 = vpop.f32.mrf.mxu2 }
 0x803   : > { %v4618_v8 = vpop.f32.mrf.mxu0 }
 0x804   : > { %v4619_v54 = vadd.f32 %v4618_v8, %v4570_v29  ;;  %v4589_v27 = vpop.f32.mrf.mxu3 }
 0x805   : > { %v4669_v50 = vpop.f32.mrf.mxu1 }
 0x806   : > { %v4668_v36 = vadd.f32 %v4667_v58, %v4619_v54  ;;  %v4538_v58 = vadd.f32 %v4537_v24, %v8451_v37  ;;  %v4542_v3 = vpop.f32.mrf.mxu2 }
 0x808   : > { %4708 = vst.msk [vmem:[%s6918_s5] sm:$0xff] %vm4707_vm14, %v4668_v36  ;;  %v4587_v25 = vadd.f32 %v4586_v35, %v4538_v58  ;;  %v4541_v36 = vadd.f32 %v4540_v0, %v8458_v41 }
 0x80a   : > { %v4590_v5 = vadd.f32 %v4589_v27, %v4541_v36 }
 0x80b   : > { %v4620_v9 = vpop.f32.mrf.mxu0 }
 0x80c   : > { %v4621_v19 = vadd.f32 %v4620_v9, %v4572_v51  ;;  %v4591_v18 = vpop.f32.mrf.mxu3 }
 0x80d   : > { %v4672_v16 = vpop.f32.mrf.mxu1 }
 0x80e   : > { %v4670_v56 = vadd.f32 %v4669_v50, %v4621_v19  ;;  %v4545_v59 = vpop.f32.mrf.mxu2  ;;  %v4543_v19 = vadd.f32 %v4542_v3, %v8465_v62 }
 0x810   : > { %4709 = vst.msk [vmem:[%s6918_s5 + $0x8] sm:$0xff] %vm4707_vm14, %v4670_v56  ;;  %v4592_v56 = vadd.f32 %v4591_v18, %v4543_v19 }
 0x813   : > { %v4623_v63 = vpop.f32.mrf.mxu0 }
 0x814   : > { %v4624_v23 = vadd.f32 %v4623_v63, %v4575_v7 }
 0x815   : > { %v4674_v17 = vpop.f32.mrf.mxu1 }
 0x816   : > { %v4673_v48 = vadd.f32 %v4672_v16, %v4624_v23  ;;  %v4594_v16 = vpop.f32.mrf.mxu3  ;;  %v4547_v7 = vpop.f32.mrf.mxu2  ;;  %v4546_v23 = vadd.f32 %v4545_v59, %v8471_v28 }
 0x817   : > { %v4548_v45 = vadd.f32 %v4547_v7, %v8477_v39 }
 0x818   : > { %4710 = vst.msk [vmem:[%s6918_s5 + $0x10] sm:$0xff] %vm4707_vm14, %v4673_v48 }
 0x81b   : > { %v4625_v34 = vpop.f32.mrf.mxu0 }
 0x81c   : > { %v4626_v14 = vadd.f32 %v4625_v34, %v4577_v12 }
 0x81d   : > { %v4677_v21 = vpop.f32.mrf.mxu1 }
 0x81e   : > { %v4675_v44 = vadd.f32 %v4674_v17, %v4626_v14  ;;  %v4596_v43 = vpop.f32.mrf.mxu3  ;;  %v4595_v17 = vadd.f32 %v4594_v16, %v4546_v23  ;;  %v4550_v34 = vpop.f32.mrf.mxu2 }
 0x81f   : > { %v4597_v14 = vadd.f32 %v4596_v43, %v4548_v45  ;;  %v4551_v6 = vadd.f32 %v4550_v34, %v8484_v26 }
 0x820   : > { %4711 = vst.msk [vmem:[%s6918_s5 + $0x18] sm:$0xff] %vm4707_vm14, %v4675_v44 }
 0x823   : > { %v4628_v52 = vpop.f32.mrf.mxu0 }
 0x824   : > { %v4629_v49 = vadd.f32 %v4628_v52, %v4580_v53 }
 0x825   : > { %v4679_v42 = vpop.f32.mrf.mxu1 }
 0x826   : > { %v4678_v40 = vadd.f32 %v4677_v21, %v4629_v49  ;;  %v4599_v21 = vpop.f32.mrf.mxu3  ;;  %v4552_v52 = vpop.f32.mrf.mxu2 }
 0x827   : > { %v4600_v49 = vadd.f32 %v4599_v21, %v4551_v6  ;;  %v4553_v38 = vadd.f32 %v4552_v52, %v8491_v30 }
 0x828   : > { %4712 = vst.msk [vmem:[%s6918_s5 + $0x20] sm:$0xff] %vm4707_vm14, %v4678_v40 }
 0x82b   : > { %v4630_v61 = vpop.f32.mrf.mxu0 }
 0x82c   : > { %v4631_v10 = vadd.f32 %v4630_v61, %v4582_v1 }
 0x82d   : > { %v4682_v22 = vpop.f32.mrf.mxu1 }
 0x82e   : > { %v4680_v11 = vadd.f32 %v4679_v42, %v4631_v10  ;;  %v4601_v39 = vpop.f32.mrf.mxu3  ;;  %v4555_v61 = vpop.f32.mrf.mxu2 }
 0x82f   : > { %v4602_v1 = vadd.f32 %v4601_v39, %v4553_v38 }
 0x830   : > { %4713 = vst.msk [vmem:[%s6918_s5 + $0x28] sm:$0xff] %vm4707_vm14, %v4680_v11  ;;  %v4556_v11 = vadd.f32 %v4555_v61, %v8497_v31 }
 0x833   : > { %v4633_v33 = vpop.f32.mrf.mxu0 }
 0x834   : > { %v4634_v60 = vadd.f32 %v4633_v33, %v4585_v55 }
 0x835   : > { %v4684_v15 = vpop.f32.mrf.mxu1 }
 0x836   : > { %v4683_v20 = vadd.f32 %v4682_v22, %v4634_v60  ;;  %v4604_v2 = vpop.f32.mrf.mxu3  ;;  %v4557_v30 = vpop.f32.mrf.mxu2 }
 0x837   : > { %v4605_v0 = vadd.f32 %v4604_v2, %v4556_v11 }
 0x838   : > { %4714 = vst.msk [vmem:[%s6918_s5 + $0x30] sm:$0xff] %vm4707_vm14, %v4683_v20 }
 0x83b   : > { %v4635_v29 = vpop.f32.mrf.mxu0 }
 0x83c   : > { %v4636_v8 = vadd.f32 %v4635_v29, %v4587_v25 }
 0x83d   : > { %v4687_v54 = vpop.f32.mrf.mxu1 }
 0x83e   : > { %v4685_v50 = vadd.f32 %v4684_v15, %v4636_v8  ;;  %v4558_v15 = vadd.f32 %v4557_v30, %v8503_v13  ;;  %v4606_v20 = vpop.f32.mrf.mxu3 }
 0x840   : > { %4715 = vst.msk [vmem:[%s6918_s5 + $0x38] sm:$0xff] %vm4707_vm14, %v4685_v50  ;;  %v4607_v58 = vadd.f32 %v4606_v20, %v4558_v15 }
 0x843   : > { %v4638_v51 = vpop.f32.mrf.mxu0 }
 0x844   : > { %v4639_v4 = vadd.f32 %v4638_v51, %v4590_v5 }
 0x845   : > { %v4689_v37 = vpop.f32.mrf.mxu1 }
 0x846   : > { %v4688_v9 = vadd.f32 %v4687_v54, %v4639_v4 }
 0x848   : > { %4716 = vst.msk [vmem:[%s6918_s5 + $0x40] sm:$0xff] %vm4707_vm14, %v4688_v9 }
 0x84b   : > { %v4640_v46 = vpop.f32.mrf.mxu0 }
 0x84c   : > { %v4641_v47 = vadd.f32 %v4640_v46, %v4592_v56 }
 0x84d   : > { %v4692_v41 = vpop.f32.mrf.mxu1 }
 0x84e   : > { %v4690_v63 = vadd.f32 %v4689_v37, %v4641_v47 }
 0x850   : > { %4717 = vst.msk [vmem:[%s6918_s5 + $0x48] sm:$0xff] %vm4707_vm14, %v4690_v63 }
 0x853   : > { %v4643_v48 = vpop.f32.mrf.mxu0 }
 0x854   : > { %v4644_v32 = vadd.f32 %v4643_v48, %v4595_v17 }
 0x855   : > { %v4694_v62 = vpop.f32.mrf.mxu1 }
 0x856   : > { %v4693_v12 = vadd.f32 %v4692_v41, %v4644_v32 }
 0x858   : > { %4718 = vst.msk [vmem:[%s6918_s5 + $0x50] sm:$0xff] %vm4707_vm14, %v4693_v12 }
 0x85b   : > { %v4645_v44 = vpop.f32.mrf.mxu0 }
 0x85c   : > { %v4646_v57 = vadd.f32 %v4645_v44, %v4597_v14 }
 0x85d   : > { %v4697_v53 = vpop.f32.mrf.mxu1 }
 0x85e   : > { %v4695_v28 = vadd.f32 %v4694_v62, %v4646_v57 }
 0x860   : > { %4719 = vst.msk [vmem:[%s6918_s5 + $0x58] sm:$0xff] %vm4707_vm14, %v4695_v28 }
 0x863   : > { %v4648_v24 = vpop.f32.mrf.mxu0 }
 0x864   : > { %v4649_v42 = vadd.f32 %v4648_v24, %v4600_v49 }
 0x865   : > { %v4699_v35 = vpop.f32.mrf.mxu1 }
 0x866   : > { %v4698_v40 = vadd.f32 %v4697_v53, %v4649_v42 }
 0x868   : > { %4720 = vst.msk [vmem:[%s6918_s5 + $0x60] sm:$0xff] %vm4707_vm14, %v4698_v40 }
 0x86b   : > { %v4650_v10 = vpop.f32.mrf.mxu0 }
 0x86c   : > { %v4651_v26 = vadd.f32 %v4650_v10, %v4602_v1 }
 0x86d   : > { %v4702_v55 = vpop.f32.mrf.mxu1 }
 0x86e   : > { %v4700_v22 = vadd.f32 %v4699_v35, %v4651_v26 }
 0x870   : > { %4721 = vst.msk [vmem:[%s6918_s5 + $0x68] sm:$0xff] %vm4707_vm14, %v4700_v22 }
 0x873   : > { %v4653_v27 = vpop.f32.mrf.mxu0 }
 0x874   : > { %v4654_v33 = vadd.f32 %v4653_v27, %v4605_v0 }
 0x875   : > { %v4704_v29 = vpop.f32.mrf.mxu1 }
 0x876   : > { %v4703_v60 = vadd.f32 %v4702_v55, %v4654_v33 }
 0x878   : > { %4722 = vst.msk [vmem:[%s6918_s5 + $0x70] sm:$0xff] %vm4707_vm14, %v4703_v60 }
 0x87b   : > { %v4655_v3 = vpop.f32.mrf.mxu0 }
 0x87c   : > { %v4656_v25 = vadd.f32 %v4655_v3, %v4607_v58 }
 0x87e   : > { %v4705_v31 = vadd.f32 %v4704_v29, %v4656_v25 }
 0x880   : > { %4723 = vst.msk [vmem:[%s6918_s5 + $0x78] sm:$0xff] %vm4707_vm14, %v4705_v31 }
 0x881 PF: > { %s37_s3 = sadd.s32 1, %s6646_s3  }
 0x882   : > { %p34_p8 = scmp.ge.s32.totalorder %s37_s3, 4  }
 0x884   :  { %36 = sbr.rel (!%p34_p8) target bundleno = 17 (0x11), region = 193 }
 0x889   :  { %4748 = vsyncpa [#allocation3], 1 }
 0x88a   :  { %4750 = vsyncpa [#allocation3 + $0x1], 1 }
 0x88b   :  { %4751 = vsyncpa [#allocation5], 1 }
 0x88c   :  { %4752 = vsyncpa [#allocation8], 1 }
 0x88d   :  { %4753 = vsyncpa [#allocation11], 1 }
 0x88e   :  { %4754 = vsyncpa [#allocation14], 1 }

</bundles_post_ra>
